<compile_context>
chip_gen: v7x
topology: tpu7x:2x2x1
jax: 0.10.0
libtpu: 0.0.40
codegen_flags: <defaults>
</compile_context>

<pallas_src>
import functools

import jax
import jax.numpy as jnp
from jax.experimental import pallas as pl
from jax.experimental.pallas import tpu as pltpu

LATENT_DIM = 128
B = 2
H_IN, W_IN = 32, 32          # original module implies 528 x 1328 (see note above)
ENC_H, ENC_W = H_IN // 8, W_IN // 8
ENC_FEATS = 128 * ENC_H * ENC_W

VMEM_LIMIT_BYTES = 32 * 1024 * 1024   # explicit budget; safe on v5e/v6e (128 MiB) and v7x (64 MiB)


def _round_up(x, m):
    return ((x + m - 1) // m) * m


def _pick_tile(dim, candidates):
    for t in candidates:
        if dim % t == 0:
            return t
    return dim


# ----------------------------------------------------------------------------
# Pallas kernels
# ----------------------------------------------------------------------------
def _matmul_bias_act_kernel(x_ref, w_ref, b_ref, o_ref, acc_ref, *, activation):
    """Tiled (tm,tk)@(tk,tn) with f32 accumulator; bias + activation at last K step."""
    @pl.when(pl.program_id(2) == 0)
    def _():
        acc_ref[...] = jnp.zeros_like(acc_ref)

    acc_ref[...] += jnp.dot(x_ref[...], w_ref[...],
                            preferred_element_type=jnp.float32)

    @pl.when(pl.program_id(2) == pl.num_programs(2) - 1)
    def _():
        res = acc_ref[...] + b_ref[...]          # b is (1, tn), broadcasts over rows
        if activation == "relu":
            res = jnp.maximum(res, 0.0)
        elif activation == "sigmoid":
            res = jax.nn.sigmoid(res)
        o_ref[...] = res.astype(o_ref.dtype)


def _fc_stats_reparam_kernel(x_ref, w_ref, b_ref, eps_ref, ml_ref, z_ref, acc_ref):
    """Fused [fc_mu | fc_logvar] matmul + reparameterize epilogue.

    Output ml = enc @ [W_mu | W_logvar] + [b_mu | b_logvar]  (shape (B, 2*LATENT)),
    z = mu + eps * exp(0.5 * logvar).
    """
    @pl.when(pl.program_id(0) == 0)
    def _():
        acc_ref[...] = jnp.zeros_like(acc_ref)

    acc_ref[...] += jnp.dot(x_ref[...], w_ref[...],
                            preferred_element_type=jnp.float32)

    @pl.when(pl.program_id(0) == pl.num_programs(0) - 1)
    def _():
        ml = acc_ref[...] + b_ref[...]
        ml_ref[...] = ml
        mu = ml[:, :LATENT_DIM]
        logvar = ml[:, LATENT_DIM:]
        z_ref[...] = mu + eps_ref[...] * jnp.exp(0.5 * logvar)


# ----------------------------------------------------------------------------
# Kernel wrappers
# ----------------------------------------------------------------------------
def matmul_bias_act(x, w, b, *, activation="none", out_dtype=jnp.float32):
    """x: (M, K), w: (K, N), b: (N,) -> (M, N).  bf16 MXU operands, f32 accumulate.

    N is zero-padded to a multiple of 128 for lane-dense (unmasked) stores and
    sliced back afterwards.
    """
    m, k = x.shape
    k2, n = w.shape
    assert k == k2
    x = x.astype(jnp.bfloat16)
    w = w.astype(jnp.bfloat16)
    b = b.astype(jnp.float32)

    n_pad = _round_up(n, 128)
    if n_pad != n:
        w = jnp.pad(w, ((0, 0), (0, n_pad - n)))
        b = jnp.pad(b, (0, n_pad - n))

    tm = _pick_tile(m, (256, 128, 64, 32, 16, 8))          # 256 keeps v7x (64 MiB VMEM) happy
    tk = _pick_tile(k, (512, 256, 128)) if k % 128 == 0 else k
    tn = _pick_tile(n_pad, (512, 256, 128))
    grid = (m // tm, n_pad // tn, k // tk)                  # K (reduction) last

    kernel = functools.partial(_matmul_bias_act_kernel, activation=activation)
    out = pl.pallas_call(
        kernel,
        out_shape=jax.ShapeDtypeStruct((m, n_pad), out_dtype),
        grid=grid,
        in_specs=[
            pl.BlockSpec((tm, tk), lambda i, j, kk: (i, kk)),
            pl.BlockSpec((tk, tn), lambda i, j, kk: (kk, j)),
            pl.BlockSpec((1, tn), lambda i, j, kk: (0, j)),
        ],
        out_specs=pl.BlockSpec((tm, tn), lambda i, j, kk: (i, j)),
        scratch_shapes=[pltpu.VMEM((tm, tn), jnp.float32)],
        compiler_params=pltpu.CompilerParams(
            dimension_semantics=("parallel", "parallel", "arbitrary"),
            vmem_limit_bytes=VMEM_LIMIT_BYTES),
    )(x, w, b.reshape(1, n_pad))

    if n_pad != n:
        out = out[:, :n]
    return out


def fc_stats_reparam(enc, w_stats, b_stats, eps):
    """enc: (B, K) -> mu, logvar, z  via one fused Pallas call."""
    m, k = enc.shape
    n2 = w_stats.shape[1]                                   # 2 * LATENT_DIM (multiple of 128)
    tk = _pick_tile(k, (512, 256, 128)) if k % 128 == 0 else k

    ml, z = pl.pallas_call(
        _fc_stats_reparam_kernel,
        out_shape=(jax.ShapeDtypeStruct((m, n2), jnp.float32),
                   jax.ShapeDtypeStruct((m, LATENT_DIM), jnp.float32)),
        grid=(k // tk,),
        in_specs=[
            pl.BlockSpec((m, tk), lambda kk: (0, kk)),
            pl.BlockSpec((tk, n2), lambda kk: (kk, 0)),
            pl.BlockSpec((1, n2), lambda kk: (0, 0)),
            pl.BlockSpec((m, LATENT_DIM), lambda kk: (0, 0)),
        ],
        out_specs=[
            pl.BlockSpec((m, n2), lambda kk: (0, 0)),
            pl.BlockSpec((m, LATENT_DIM), lambda kk: (0, 0)),
        ],
        scratch_shapes=[pltpu.VMEM((m, n2), jnp.float32)],
        compiler_params=pltpu.CompilerParams(
            dimension_semantics=("arbitrary",),
            vmem_limit_bytes=VMEM_LIMIT_BYTES),
    )(enc.astype(jnp.bfloat16), w_stats.astype(jnp.bfloat16),
      b_stats.reshape(1, n2).astype(jnp.float32), eps.astype(jnp.float32))

    mu = ml[:, :LATENT_DIM]
    logvar = ml[:, LATENT_DIM:]
    return mu, logvar, z


# ----------------------------------------------------------------------------
# Glue: im2col patch extraction / weight reshaping (plain JAX, no heavy compute)
# ----------------------------------------------------------------------------
def _extract_patches(x, k, stride, pad):
    """x: NHWC -> (N, Ho, Wo, k*k*C) with (kh, kw, c) ordering in the last dim."""
    if pad:
        x = jnp.pad(x, ((0, 0), (pad, pad), (pad, pad), (0, 0)))
    n, hp, wp, c = x.shape
    ho = (hp - k) // stride + 1
    wo = (wp - k) // stride + 1
    cols = []
    for kh in range(k):
        for kw in range(k):
            cols.append(x[:, kh:kh + stride * ho:stride, kw:kw + stride * wo:stride, :])
    p = jnp.stack(cols, axis=3)                              # (N, Ho, Wo, k*k, C)
    return p.reshape(n, ho, wo, k * k * c), ho, wo


def _conv_weight_to_mat(w_oihw):
    """(Cout, Cin, kH, kW) -> (kH*kW*Cin, Cout), matching _extract_patches ordering."""
    co, ci, kh, kw = w_oihw.shape
    return jnp.transpose(w_oihw, (2, 3, 1, 0)).reshape(kh * kw * ci, co)


def _convT_phase_weights(w_iohw):
    """ConvTranspose2d weight (Cin, Cout, 4, 4) -> 2x2 sub-pixel phase matrices.

    y[2m+a, 2n+b] = sum_{dh,dw in {0,1}} x_pad[m+a+dh, n+b+dw] . w[:, :, 3-a-2dh, 3-b-2dw]
    where x_pad is the input zero-padded by 1.  Returns mats[a][b]: (4*Cin, Cout).
    """
    ci, co, _, _ = w_iohw.shape
    mats = []
    for a in range(2):
        row = []
        for pb in range(2):
            sub = w_iohw[:, :, (3 - a, 1 - a), :]            # (Cin, Cout, 2, 4), dh order
            sub = sub[:, :, :, (3 - pb, 1 - pb)]             # (Cin, Cout, 2, 2), dw order
            mat = jnp.transpose(sub, (2, 3, 0, 1)).reshape(4 * ci, co)
            row.append(mat.astype(jnp.bfloat16))
        mats.append(row)
    return mats


def conv2d(x_nhwc, w_mat, b, *, activation, out_dtype):
    """Conv2d(k=4, stride=2, pad=1) as bf16 im2col + Pallas tiled matmul."""
    n = x_nhwc.shape[0]
    cout = b.shape[0]
    patches, ho, wo = _extract_patches(x_nhwc.astype(jnp.bfloat16), 4, 2, 1)
    flat = patches.reshape(n * ho * wo, patches.shape[-1])
    out = matmul_bias_act(flat, w_mat, b, activation=activation, out_dtype=out_dtype)
    return out.reshape(n, ho, wo, cout)


def conv_transpose2d(x_nhwc, phase_mats, b, *, activation, out_dtype):
    """ConvTranspose2d(k=4, stride=2, pad=1) via 4-phase sub-pixel decomposition.

    No zero-dilation: each output parity (a,b) is a stride-1 2x2 conv over the
    1-padded input, then the 4 phase outputs are interleaved spatially.
    """
    n, h, w, cin = x_nhwc.shape
    cout = b.shape[0]
    xp = jnp.pad(x_nhwc.astype(jnp.bfloat16), ((0, 0), (1, 1), (1, 1), (0, 0)))
    phase_outs = []
    for a in range(2):
        for pb in range(2):
            view = xp[:, a:a + h + 1, pb:pb + w + 1, :]
            patches, ho, wo = _extract_patches(view, 2, 1, 0)    # (N, h, w, 4*Cin)
            flat = patches.reshape(n * ho * wo, 4 * cin)
            o = matmul_bias_act(flat, phase_mats[a][pb], b,
                                activation=activation, out_dtype=out_dtype)
            phase_outs.append(o.reshape(n, ho, wo, cout))
    y = jnp.stack(phase_outs, axis=3).reshape(n, h, w, 2, 2, cout)
    y = jnp.transpose(y, (0, 1, 3, 2, 4, 5)).reshape(n, 2 * h, 2 * w, cout)
    return y


# ----------------------------------------------------------------------------
# Parameter init (deterministic, synthetic) + forward pass
# ----------------------------------------------------------------------------
def init_params(key):
    ks = jax.random.split(key, 9)
    scale = 0.05
    p = {}
    enc = []
    for i, (ci, co) in enumerate([(3, 32), (32, 64), (64, 128)]):
        w = scale * jax.random.normal(ks[i], (co, ci, 4, 4), jnp.float32)
        b = jnp.zeros((co,), jnp.float32)
        enc.append((_conv_weight_to_mat(w).astype(jnp.bfloat16), b))
    p["enc"] = enc
    # Linear weights in PyTorch are (out, in); store as (in, out); fuse mu|logvar along N.
    w_mu = scale * jax.random.normal(ks[3], (ENC_FEATS, LATENT_DIM), jnp.float32)
    w_lv = scale * jax.random.normal(ks[4], (ENC_FEATS, LATENT_DIM), jnp.float32)
    p["w_stats"] = jnp.concatenate([w_mu, w_lv], axis=1).astype(jnp.bfloat16)
    p["b_stats"] = jnp.zeros((2 * LATENT_DIM,), jnp.float32)
    p["fc_decode"] = (
        (scale * jax.random.normal(ks[5], (LATENT_DIM, ENC_FEATS), jnp.float32)
         ).astype(jnp.bfloat16),
        jnp.zeros((ENC_FEATS,), jnp.float32))
    dec = []
    for i, (ci, co) in enumerate([(128, 64), (64, 32), (32, 3)]):
        w = scale * jax.random.normal(ks[6 + i], (ci, co, 4, 4), jnp.float32)
        b = jnp.zeros((co,), jnp.float32)
        dec.append((_convT_phase_weights(w), b))
    p["dec"] = dec
    return p


def vae_forward(params, x_nchw, eps):
    n = x_nchw.shape[0]
    h = jnp.transpose(x_nchw, (0, 2, 3, 1)).astype(jnp.bfloat16)   # -> NHWC, bf16
    # encoder: 3 x (conv k4 s2 p1 + ReLU), bf16 activations between layers
    for w_mat, b in params["enc"]:
        h = conv2d(h, w_mat, b, activation="relu", out_dtype=jnp.bfloat16)
    # flatten in PyTorch NCHW (C,H,W) order
    enc = jnp.transpose(h, (0, 3, 1, 2)).reshape(n, -1)            # (B, 128*ENC_H*ENC_W)
    # fused fc_mu | fc_logvar matmul + reparameterize (deterministic eps replaces randn_like)
    mu, logvar, z = fc_stats_reparam(enc, params["w_stats"], params["b_stats"], eps)
    dec_in = matmul_bias_act(z, *params["fc_decode"],
                             activation="none", out_dtype=jnp.bfloat16)
    dec_in = dec_in.reshape(n, 128, ENC_H, ENC_W)                  # NCHW, like .view()
    h = jnp.transpose(dec_in, (0, 2, 3, 1))                        # -> NHWC for convs
    # decoder: convT + ReLU, convT + ReLU, convT + Sigmoid (final output in f32)
    acts = ["relu", "relu", "sigmoid"]
    dtypes = [jnp.bfloat16, jnp.bfloat16, jnp.float32]
    for (mats, b), act, dt in zip(params["dec"], acts, dtypes):
        h = conv_transpose2d(h, mats, b, activation=act, out_dtype=dt)
    recon = jnp.transpose(h, (0, 3, 1, 2))                         # back to NCHW
    return recon, mu, logvar


if __name__ == "__main__":
    key = jax.random.PRNGKey(0)
    k_param, k_x, k_eps = jax.random.split(key, 3)
    params = init_params(k_param)
    x = jax.random.normal(k_x, (B, 3, H_IN, W_IN), jnp.float32)
    eps = jax.random.normal(k_eps, (B, LATENT_DIM), jnp.float32)

    fwd = jax.jit(vae_forward)
    recon, mu, logvar = fwd(params, x, eps)
    jax.block_until_ready((recon, mu, logvar))

    assert recon.shape == (B, 3, H_IN, W_IN)
    assert recon.dtype == jnp.float32
    assert mu.shape == (B, LATENT_DIM) and logvar.shape == (B, LATENT_DIM)
    print("KERNEL_OK")
</pallas_src>

<mosaic_0001>
module attributes {stable_mosaic.version = 11 : i64} {
  func.func @_matmul_bias_act_kernel(%arg0: i32, %arg1: i32, %arg2: i32, %arg3: memref<256x48xbf16, #tpu.memory_space<vmem>>, %arg4: memref<48x128xbf16, #tpu.memory_space<vmem>>, %arg5: memref<1x128xf32, #tpu.memory_space<vmem>>, %arg6: memref<256x128xbf16, #tpu.memory_space<vmem>>, %arg7: memref<256x128xf32, #tpu.memory_space<vmem>>) attributes {dimension_semantics = [#tpu.dimension_semantics<parallel>, #tpu.dimension_semantics<parallel>, #tpu.dimension_semantics<arbitrary>], iteration_bounds = array<i64: 2, 1, 1>, scalar_prefetch = 0 : i64, scratch_operands = 1 : i64, tpu.core_type = #tpu.core_type<tc>, window_params = [{transform_indices = @transform_0, window_bounds = array<i64: 256, 48>}, {transform_indices = @transform_1, window_bounds = array<i64: 48, 128>}, {transform_indices = @transform_2, window_bounds = array<i64: 1, 128>}, {transform_indices = @transform_3, window_bounds = array<i64: 256, 128>}]} {
    %c0_i32 = arith.constant 0 : i32
    %0 = arith.cmpi eq, %arg2, %c0_i32 : i32
    %1 = arith.extui %0 : i1 to i32
    %c0_i32_0 = arith.constant 0 : i32
    %2 = arith.cmpi ne, %1, %c0_i32_0 : i32
    scf.if %2 {
      %cst_10 = arith.constant 0.000000e+00 : f32
      %12 = vector.broadcast %cst_10 : f32 to vector<256x128xf32>
      %c0_11 = arith.constant 0 : index
      %c0_12 = arith.constant 0 : index
      %13 = vector.load %arg7[%c0_11, %c0_12] : memref<256x128xf32, #tpu.memory_space<vmem>>, vector<256x128xf32>
      tpu.vector_store %arg7[%c0_11, %c0_12], %12 {strides = array<i32>} : memref<256x128xf32, #tpu.memory_space<vmem>>, vector<256x128xf32>,
    } else {
    }
    %c0 = arith.constant 0 : index
    %c0_1 = arith.constant 0 : index
    %3 = vector.load %arg7[%c0, %c0_1] : memref<256x128xf32, #tpu.memory_space<vmem>>, vector<256x128xf32>
    %c0_2 = arith.constant 0 : index
    %c0_3 = arith.constant 0 : index
    %4 = vector.load %arg3[%c0_2, %c0_3] : memref<256x48xbf16, #tpu.memory_space<vmem>>, vector<256x48xbf16>
    %c0_4 = arith.constant 0 : index
    %c0_5 = arith.constant 0 : index
    %5 = vector.load %arg4[%c0_4, %c0_5] : memref<48x128xbf16, #tpu.memory_space<vmem>>, vector<48x128xbf16>
    %cst = arith.constant dense<0.000000e+00> : vector<256x128xf32>
    %6 = tpu.matmul %4, %5, %cst {dimension_numbers = #tpu.dot_dimension_numbers<[1], [0], [0], [1], [0, 0, 1, 1], [], []>} : vector<256x48xbf16>, vector<48x128xbf16>, vector<256x128xf32> -> vector<256x128xf32>
    %7 = arith.addf %3, %6 : vector<256x128xf32>
    %c0_6 = arith.constant 0 : index
    %c0_7 = arith.constant 0 : index
    %8 = vector.load %arg7[%c0_6, %c0_7] : memref<256x128xf32, #tpu.memory_space<vmem>>, vector<256x128xf32>
    tpu.vector_store %arg7[%c0_6, %c0_7], %7 {strides = array<i32>} : memref<256x128xf32, #tpu.memory_space<vmem>>, vector<256x128xf32>,
    %c0_i32_8 = arith.constant 0 : i32
    %9 = arith.cmpi eq, %arg2, %c0_i32_8 : i32
    %10 = arith.extui %9 : i1 to i32
    %c0_i32_9 = arith.constant 0 : i32
    %11 = arith.cmpi ne, %10, %c0_i32_9 : i32
    scf.if %11 {
      %c0_10 = arith.constant 0 : index
      %c0_11 = arith.constant 0 : index
      %12 = vector.load %arg7[%c0_10, %c0_11] : memref<256x128xf32, #tpu.memory_space<vmem>>, vector<256x128xf32>
      %c0_12 = arith.constant 0 : index
      %c0_13 = arith.constant 0 : index
      %13 = vector.load %arg5[%c0_12, %c0_13] : memref<1x128xf32, #tpu.memory_space<vmem>>, vector<1x128xf32>
      %14 = vector.broadcast %13 : vector<1x128xf32> to vector<256x128xf32>
      %15 = arith.addf %12, %14 : vector<256x128xf32>
      %cst_14 = arith.constant 0.000000e+00 : f32
      %16 = vector.broadcast %cst_14 : f32 to vector<256x128xf32>
      %17 = arith.maximumf %15, %16 : vector<256x128xf32>
      %18 = arith.truncf %17 : vector<256x128xf32> to vector<256x128xbf16>
      %c0_15 = arith.constant 0 : index
      %c0_16 = arith.constant 0 : index
      %19 = vector.load %arg6[%c0_15, %c0_16] : memref<256x128xbf16, #tpu.memory_space<vmem>>, vector<256x128xbf16>
      tpu.vector_store %arg6[%c0_15, %c0_16], %18 {strides = array<i32>} : memref<256x128xbf16, #tpu.memory_space<vmem>>, vector<256x128xbf16>,
    } else {
    }
    return
  }
  func.func @transform_0(%arg0: i32, %arg1: i32, %arg2: i32) -> (i32, i32) {
    %c0_i32 = arith.constant 0 : i32
    return %arg0, %arg2 : i32, i32
  }
  func.func @transform_1(%arg0: i32, %arg1: i32, %arg2: i32) -> (i32, i32) {
    %c0_i32 = arith.constant 0 : i32
    return %arg2, %arg1 : i32, i32
  }
  func.func @transform_2(%arg0: i32, %arg1: i32, %arg2: i32) -> (i32, i32) {
    %c0_i32 = arith.constant 0 : i32
    %c0_i32_0 = arith.constant 0 : i32
    return %c0_i32, %arg1 : i32, i32
  }
  func.func @transform_3(%arg0: i32, %arg1: i32, %arg2: i32) -> (i32, i32) {
    %c0_i32 = arith.constant 0 : i32
    return %arg0, %arg1 : i32, i32
  }
}

module attributes {stable_mosaic.version = 11 : i64} {
  func.func @_matmul_bias_act_kernel(%arg0: i32, %arg1: i32, %arg2: i32, %arg3: memref<128x512xbf16, #tpu.memory_space<vmem>>, %arg4: memref<512x128xbf16, #tpu.memory_space<vmem>>, %arg5: memref<1x128xf32, #tpu.memory_space<vmem>>, %arg6: memref<128x128xbf16, #tpu.memory_space<vmem>>, %arg7: memref<128x128xf32, #tpu.memory_space<vmem>>) attributes {dimension_semantics = [#tpu.dimension_semantics<parallel>, #tpu.dimension_semantics<parallel>, #tpu.dimension_semantics<arbitrary>], iteration_bounds = array<i64: 1, 1, 1>, scalar_prefetch = 0 : i64, scratch_operands = 1 : i64, tpu.core_type = #tpu.core_type<tc>, window_params = [{transform_indices = @transform_0, window_bounds = array<i64: 128, 512>}, {transform_indices = @transform_1, window_bounds = array<i64: 512, 128>}, {transform_indices = @transform_2, window_bounds = array<i64: 1, 128>}, {transform_indices = @transform_3, window_bounds = array<i64: 128, 128>}]} {
    %c0_i32 = arith.constant 0 : i32
    %0 = arith.cmpi eq, %arg2, %c0_i32 : i32
    %1 = arith.extui %0 : i1 to i32
    %c0_i32_0 = arith.constant 0 : i32
    %2 = arith.cmpi ne, %1, %c0_i32_0 : i32
    scf.if %2 {
      %cst_10 = arith.constant 0.000000e+00 : f32
      %12 = vector.broadcast %cst_10 : f32 to vector<128x128xf32>
      %c0_11 = arith.constant 0 : index
      %c0_12 = arith.constant 0 : index
      %13 = vector.load %arg7[%c0_11, %c0_12] : memref<128x128xf32, #tpu.memory_space<vmem>>, vector<128x128xf32>
      tpu.vector_store %arg7[%c0_11, %c0_12], %12 {strides = array<i32>} : memref<128x128xf32, #tpu.memory_space<vmem>>, vector<128x128xf32>,
    } else {
    }
    %c0 = arith.constant 0 : index
    %c0_1 = arith.constant 0 : index
    %3 = vector.load %arg7[%c0, %c0_1] : memref<128x128xf32, #tpu.memory_space<vmem>>, vector<128x128xf32>
    %c0_2 = arith.constant 0 : index
    %c0_3 = arith.constant 0 : index
    %4 = vector.load %arg3[%c0_2, %c0_3] : memref<128x512xbf16, #tpu.memory_space<vmem>>, vector<128x512xbf16>
    %c0_4 = arith.constant 0 : index
    %c0_5 = arith.constant 0 : index
    %5 = vector.load %arg4[%c0_4, %c0_5] : memref<512x128xbf16, #tpu.memory_space<vmem>>, vector<512x128xbf16>
    %cst = arith.constant dense<0.000000e+00> : vector<128x128xf32>
    %6 = tpu.matmul %4, %5, %cst {dimension_numbers = #tpu.dot_dimension_numbers<[1], [0], [0], [1], [0, 0, 1, 1], [], []>} : vector<128x512xbf16>, vector<512x128xbf16>, vector<128x128xf32> -> vector<128x128xf32>
    %7 = arith.addf %3, %6 : vector<128x128xf32>
    %c0_6 = arith.constant 0 : index
    %c0_7 = arith.constant 0 : index
    %8 = vector.load %arg7[%c0_6, %c0_7] : memref<128x128xf32, #tpu.memory_space<vmem>>, vector<128x128xf32>
    tpu.vector_store %arg7[%c0_6, %c0_7], %7 {strides = array<i32>} : memref<128x128xf32, #tpu.memory_space<vmem>>, vector<128x128xf32>,
    %c0_i32_8 = arith.constant 0 : i32
    %9 = arith.cmpi eq, %arg2, %c0_i32_8 : i32
    %10 = arith.extui %9 : i1 to i32
    %c0_i32_9 = arith.constant 0 : i32
    %11 = arith.cmpi ne, %10, %c0_i32_9 : i32
    scf.if %11 {
      %c0_10 = arith.constant 0 : index
      %c0_11 = arith.constant 0 : index
      %12 = vector.load %arg7[%c0_10, %c0_11] : memref<128x128xf32, #tpu.memory_space<vmem>>, vector<128x128xf32>
      %c0_12 = arith.constant 0 : index
      %c0_13 = arith.constant 0 : index
      %13 = vector.load %arg5[%c0_12, %c0_13] : memref<1x128xf32, #tpu.memory_space<vmem>>, vector<1x128xf32>
      %14 = vector.broadcast %13 : vector<1x128xf32> to vector<128x128xf32>
      %15 = arith.addf %12, %14 : vector<128x128xf32>
      %cst_14 = arith.constant 0.000000e+00 : f32
      %16 = vector.broadcast %cst_14 : f32 to vector<128x128xf32>
      %17 = arith.maximumf %15, %16 : vector<128x128xf32>
      %18 = arith.truncf %17 : vector<128x128xf32> to vector<128x128xbf16>
      %c0_15 = arith.constant 0 : index
      %c0_16 = arith.constant 0 : index
      %19 = vector.load %arg6[%c0_15, %c0_16] : memref<128x128xbf16, #tpu.memory_space<vmem>>, vector<128x128xbf16>
      tpu.vector_store %arg6[%c0_15, %c0_16], %18 {strides = array<i32>} : memref<128x128xbf16, #tpu.memory_space<vmem>>, vector<128x128xbf16>,
    } else {
    }
    return
  }
  func.func @transform_0(%arg0: i32, %arg1: i32, %arg2: i32) -> (i32, i32) {
    %c0_i32 = arith.constant 0 : i32
    return %arg0, %arg2 : i32, i32
  }
  func.func @transform_1(%arg0: i32, %arg1: i32, %arg2: i32) -> (i32, i32) {
    %c0_i32 = arith.constant 0 : i32
    return %arg2, %arg1 : i32, i32
  }
  func.func @transform_2(%arg0: i32, %arg1: i32, %arg2: i32) -> (i32, i32) {
    %c0_i32 = arith.constant 0 : i32
    %c0_i32_0 = arith.constant 0 : i32
    return %c0_i32, %arg1 : i32, i32
  }
  func.func @transform_3(%arg0: i32, %arg1: i32, %arg2: i32) -> (i32, i32) {
    %c0_i32 = arith.constant 0 : i32
    return %arg0, %arg1 : i32, i32
  }
}

module attributes {stable_mosaic.version = 11 : i64} {
  func.func @_matmul_bias_act_kernel(%arg0: i32, %arg1: i32, %arg2: i32, %arg3: memref<32x512xbf16, #tpu.memory_space<vmem>>, %arg4: memref<512x128xbf16, #tpu.memory_space<vmem>>, %arg5: memref<1x128xf32, #tpu.memory_space<vmem>>, %arg6: memref<32x128xbf16, #tpu.memory_space<vmem>>, %arg7: memref<32x128xf32, #tpu.memory_space<vmem>>) attributes {dimension_semantics = [#tpu.dimension_semantics<parallel>, #tpu.dimension_semantics<parallel>, #tpu.dimension_semantics<arbitrary>], iteration_bounds = array<i64: 1, 1, 2>, scalar_prefetch = 0 : i64, scratch_operands = 1 : i64, tpu.core_type = #tpu.core_type<tc>, window_params = [{transform_indices = @transform_0, window_bounds = array<i64: 32, 512>}, {transform_indices = @transform_1, window_bounds = array<i64: 512, 128>}, {transform_indices = @transform_2, window_bounds = array<i64: 1, 128>}, {transform_indices = @transform_3, window_bounds = array<i64: 32, 128>}]} {
    %c0_i32 = arith.constant 0 : i32
    %0 = arith.cmpi eq, %arg2, %c0_i32 : i32
    %1 = arith.extui %0 : i1 to i32
    %c0_i32_0 = arith.constant 0 : i32
    %2 = arith.cmpi ne, %1, %c0_i32_0 : i32
    scf.if %2 {
      %cst_9 = arith.constant 0.000000e+00 : f32
      %12 = vector.broadcast %cst_9 : f32 to vector<32x128xf32>
      %c0_10 = arith.constant 0 : index
      %c0_11 = arith.constant 0 : index
      %13 = vector.load %arg7[%c0_10, %c0_11] : memref<32x128xf32, #tpu.memory_space<vmem>>, vector<32x128xf32>
      tpu.vector_store %arg7[%c0_10, %c0_11], %12 {strides = array<i32>} : memref<32x128xf32, #tpu.memory_space<vmem>>, vector<32x128xf32>,
    } else {
    }
    %c0 = arith.constant 0 : index
    %c0_1 = arith.constant 0 : index
    %3 = vector.load %arg7[%c0, %c0_1] : memref<32x128xf32, #tpu.memory_space<vmem>>, vector<32x128xf32>
    %c0_2 = arith.constant 0 : index
    %c0_3 = arith.constant 0 : index
    %4 = vector.load %arg3[%c0_2, %c0_3] : memref<32x512xbf16, #tpu.memory_space<vmem>>, vector<32x512xbf16>
    %c0_4 = arith.constant 0 : index
    %c0_5 = arith.constant 0 : index
    %5 = vector.load %arg4[%c0_4, %c0_5] : memref<512x128xbf16, #tpu.memory_space<vmem>>, vector<512x128xbf16>
    %cst = arith.constant dense<0.000000e+00> : vector<32x128xf32>
    %6 = tpu.matmul %4, %5, %cst {dimension_numbers = #tpu.dot_dimension_numbers<[1], [0], [0], [1], [0, 0, 1, 1], [], []>} : vector<32x512xbf16>, vector<512x128xbf16>, vector<32x128xf32> -> vector<32x128xf32>
    %7 = arith.addf %3, %6 : vector<32x128xf32>
    %c0_6 = arith.constant 0 : index
    %c0_7 = arith.constant 0 : index
    %8 = vector.load %arg7[%c0_6, %c0_7] : memref<32x128xf32, #tpu.memory_space<vmem>>, vector<32x128xf32>
    tpu.vector_store %arg7[%c0_6, %c0_7], %7 {strides = array<i32>} : memref<32x128xf32, #tpu.memory_space<vmem>>, vector<32x128xf32>,
    %c1_i32 = arith.constant 1 : i32
    %9 = arith.cmpi eq, %arg2, %c1_i32 : i32
    %10 = arith.extui %9 : i1 to i32
    %c0_i32_8 = arith.constant 0 : i32
    %11 = arith.cmpi ne, %10, %c0_i32_8 : i32
    scf.if %11 {
      %c0_9 = arith.constant 0 : index
      %c0_10 = arith.constant 0 : index
      %12 = vector.load %arg7[%c0_9, %c0_10] : memref<32x128xf32, #tpu.memory_space<vmem>>, vector<32x128xf32>
      %c0_11 = arith.constant 0 : index
      %c0_12 = arith.constant 0 : index
      %13 = vector.load %arg5[%c0_11, %c0_12] : memref<1x128xf32, #tpu.memory_space<vmem>>, vector<1x128xf32>
      %14 = vector.broadcast %13 : vector<1x128xf32> to vector<32x128xf32>
      %15 = arith.addf %12, %14 : vector<32x128xf32>
      %cst_13 = arith.constant 0.000000e+00 : f32
      %16 = vector.broadcast %cst_13 : f32 to vector<32x128xf32>
      %17 = arith.maximumf %15, %16 : vector<32x128xf32>
      %18 = arith.truncf %17 : vector<32x128xf32> to vector<32x128xbf16>
      %c0_14 = arith.constant 0 : index
      %c0_15 = arith.constant 0 : index
      %19 = vector.load %arg6[%c0_14, %c0_15] : memref<32x128xbf16, #tpu.memory_space<vmem>>, vector<32x128xbf16>
      tpu.vector_store %arg6[%c0_14, %c0_15], %18 {strides = array<i32>} : memref<32x128xbf16, #tpu.memory_space<vmem>>, vector<32x128xbf16>,
    } else {
    }
    return
  }
  func.func @transform_0(%arg0: i32, %arg1: i32, %arg2: i32) -> (i32, i32) {
    %c0_i32 = arith.constant 0 : i32
    return %arg0, %arg2 : i32, i32
  }
  func.func @transform_1(%arg0: i32, %arg1: i32, %arg2: i32) -> (i32, i32) {
    %c0_i32 = arith.constant 0 : i32
    return %arg2, %arg1 : i32, i32
  }
  func.func @transform_2(%arg0: i32, %arg1: i32, %arg2: i32) -> (i32, i32) {
    %c0_i32 = arith.constant 0 : i32
    %c0_i32_0 = arith.constant 0 : i32
    return %c0_i32, %arg1 : i32, i32
  }
  func.func @transform_3(%arg0: i32, %arg1: i32, %arg2: i32) -> (i32, i32) {
    %c0_i32 = arith.constant 0 : i32
    return %arg0, %arg1 : i32, i32
  }
}

module attributes {stable_mosaic.version = 11 : i64} {
  func.func @_fc_stats_reparam_kernel(%arg0: i32, %arg1: memref<2x512xbf16, #tpu.memory_space<vmem>>, %arg2: memref<512x256xbf16, #tpu.memory_space<vmem>>, %arg3: memref<1x256xf32, #tpu.memory_space<vmem>>, %arg4: memref<2x128xf32, #tpu.memory_space<vmem>>, %arg5: memref<2x256xf32, #tpu.memory_space<vmem>>, %arg6: memref<2x128xf32, #tpu.memory_space<vmem>>, %arg7: memref<2x256xf32, #tpu.memory_space<vmem>>) attributes {dimension_semantics = [#tpu.dimension_semantics<arbitrary>], iteration_bounds = array<i64: 4>, scalar_prefetch = 0 : i64, scratch_operands = 1 : i64, tpu.core_type = #tpu.core_type<tc>, window_params = [{transform_indices = @transform_0, window_bounds = array<i64: 2, 512>}, {transform_indices = @transform_1, window_bounds = array<i64: 512, 256>}, {pipeline_mode = #tpu.pipeline_mode<synchronous>, transform_indices = @transform_2, window_bounds = array<i64: 1, 256>}, {pipeline_mode = #tpu.pipeline_mode<synchronous>, transform_indices = @transform_3, window_bounds = array<i64: 2, 128>}, {pipeline_mode = #tpu.pipeline_mode<synchronous>, transform_indices = @transform_4, window_bounds = array<i64: 2, 256>}, {pipeline_mode = #tpu.pipeline_mode<synchronous>, transform_indices = @transform_5, window_bounds = array<i64: 2, 128>}]} {
    %c0_i32 = arith.constant 0 : i32
    %0 = arith.cmpi eq, %arg0, %c0_i32 : i32
    %1 = arith.extui %0 : i1 to i32
    %c0_i32_0 = arith.constant 0 : i32
    %2 = arith.cmpi ne, %1, %c0_i32_0 : i32
    scf.if %2 {
      %cst_9 = arith.constant 0.000000e+00 : f32
      %12 = vector.broadcast %cst_9 : f32 to vector<2x256xf32>
      %c0_10 = arith.constant 0 : index
      %c0_11 = arith.constant 0 : index
      %13 = vector.load %arg7[%c0_10, %c0_11] : memref<2x256xf32, #tpu.memory_space<vmem>>, vector<2x256xf32>
      tpu.vector_store %arg7[%c0_10, %c0_11], %12 {strides = array<i32>} : memref<2x256xf32, #tpu.memory_space<vmem>>, vector<2x256xf32>,
    } else {
    }
    %c0 = arith.constant 0 : index
    %c0_1 = arith.constant 0 : index
    %3 = vector.load %arg7[%c0, %c0_1] : memref<2x256xf32, #tpu.memory_space<vmem>>, vector<2x256xf32>
    %c0_2 = arith.constant 0 : index
    %c0_3 = arith.constant 0 : index
    %4 = vector.load %arg1[%c0_2, %c0_3] : memref<2x512xbf16, #tpu.memory_space<vmem>>, vector<2x512xbf16>
    %c0_4 = arith.constant 0 : index
    %c0_5 = arith.constant 0 : index
    %5 = vector.load %arg2[%c0_4, %c0_5] : memref<512x256xbf16, #tpu.memory_space<vmem>>, vector<512x256xbf16>
    %cst = arith.constant dense<0.000000e+00> : vector<2x256xf32>
    %6 = tpu.matmul %4, %5, %cst {dimension_numbers = #tpu.dot_dimension_numbers<[1], [0], [0], [1], [0, 0, 1, 1], [], []>} : vector<2x512xbf16>, vector<512x256xbf16>, vector<2x256xf32> -> vector<2x256xf32>
    %7 = arith.addf %3, %6 : vector<2x256xf32>
    %c0_6 = arith.constant 0 : index
    %c0_7 = arith.constant 0 : index
    %8 = vector.load %arg7[%c0_6, %c0_7] : memref<2x256xf32, #tpu.memory_space<vmem>>, vector<2x256xf32>
    tpu.vector_store %arg7[%c0_6, %c0_7], %7 {strides = array<i32>} : memref<2x256xf32, #tpu.memory_space<vmem>>, vector<2x256xf32>,
    %c3_i32 = arith.constant 3 : i32
    %9 = arith.cmpi eq, %arg0, %c3_i32 : i32
    %10 = arith.extui %9 : i1 to i32
    %c0_i32_8 = arith.constant 0 : i32
    %11 = arith.cmpi ne, %10, %c0_i32_8 : i32
    scf.if %11 {
      %c0_9 = arith.constant 0 : index
      %c0_10 = arith.constant 0 : index
      %12 = vector.load %arg7[%c0_9, %c0_10] : memref<2x256xf32, #tpu.memory_space<vmem>>, vector<2x256xf32>
      %c0_11 = arith.constant 0 : index
      %c0_12 = arith.constant 0 : index
      %13 = vector.load %arg3[%c0_11, %c0_12] : memref<1x256xf32, #tpu.memory_space<vmem>>, vector<1x256xf32>
      %14 = vector.broadcast %13 : vector<1x256xf32> to vector<2x256xf32>
      %15 = arith.addf %12, %14 : vector<2x256xf32>
      %c0_13 = arith.constant 0 : index
      %c0_14 = arith.constant 0 : index
      %16 = vector.load %arg5[%c0_13, %c0_14] : memref<2x256xf32, #tpu.memory_space<vmem>>, vector<2x256xf32>
      tpu.vector_store %arg5[%c0_13, %c0_14], %15 {strides = array<i32>} : memref<2x256xf32, #tpu.memory_space<vmem>>, vector<2x256xf32>,
      %17 = vector.extract_strided_slice %15 {offsets = [0, 0], sizes = [2, 128], strides = [1, 1]} : vector<2x256xf32> to vector<2x128xf32>
      %18 = vector.extract_strided_slice %15 {offsets = [0, 128], sizes = [2, 128], strides = [1, 1]} : vector<2x256xf32> to vector<2x128xf32>
      %c0_15 = arith.constant 0 : index
      %c0_16 = arith.constant 0 : index
      %19 = vector.load %arg4[%c0_15, %c0_16] : memref<2x128xf32, #tpu.memory_space<vmem>>, vector<2x128xf32>
      %cst_17 = arith.constant 5.000000e-01 : f32
      %20 = vector.broadcast %cst_17 : f32 to vector<2x128xf32>
      %21 = arith.mulf %20, %18 : vector<2x128xf32>
      %22 = math.exp %21 : vector<2x128xf32>
      %23 = arith.mulf %19, %22 : vector<2x128xf32>
      %24 = arith.addf %17, %23 : vector<2x128xf32>
      %c0_18 = arith.constant 0 : index
      %c0_19 = arith.constant 0 : index
      %25 = vector.load %arg6[%c0_18, %c0_19] : memref<2x128xf32, #tpu.memory_space<vmem>>, vector<2x128xf32>
      tpu.vector_store %arg6[%c0_18, %c0_19], %24 {strides = array<i32>} : memref<2x128xf32, #tpu.memory_space<vmem>>, vector<2x128xf32>,
    } else {
    }
    return
  }
  func.func @transform_0(%arg0: i32) -> (i32, i32) {
    %c0_i32 = arith.constant 0 : i32
    %c0_i32_0 = arith.constant 0 : i32
    return %c0_i32, %arg0 : i32, i32
  }
  func.func @transform_1(%arg0: i32) -> (i32, i32) {
    %c0_i32 = arith.constant 0 : i32
    %c0_i32_0 = arith.constant 0 : i32
    return %arg0, %c0_i32 : i32, i32
  }
  func.func @transform_2(%arg0: i32) -> (i32, i32) {
    %c0_i32 = arith.constant 0 : i32
    %c0_i32_0 = arith.constant 0 : i32
    %c0_i32_1 = arith.constant 0 : i32
    return %c0_i32, %c0_i32_0 : i32, i32
  }
  func.func @transform_3(%arg0: i32) -> (i32, i32) {
    %c0_i32 = arith.constant 0 : i32
    %c0_i32_0 = arith.constant 0 : i32
    %c0_i32_1 = arith.constant 0 : i32
    return %c0_i32, %c0_i32_0 : i32, i32
  }
  func.func @transform_4(%arg0: i32) -> (i32, i32) {
    %c0_i32 = arith.constant 0 : i32
    %c0_i32_0 = arith.constant 0 : i32
    %c0_i32_1 = arith.constant 0 : i32
    return %c0_i32, %c0_i32_0 : i32, i32
  }
  func.func @transform_5(%arg0: i32) -> (i32, i32) {
    %c0_i32 = arith.constant 0 : i32
    %c0_i32_0 = arith.constant 0 : i32
    %c0_i32_1 = arith.constant 0 : i32
    return %c0_i32, %c0_i32_0 : i32, i32
  }
}

module attributes {stable_mosaic.version = 11 : i64} {
  func.func @_matmul_bias_act_kernel(%arg0: i32, %arg1: i32, %arg2: i32, %arg3: memref<2x128xbf16, #tpu.memory_space<vmem>>, %arg4: memref<128x512xbf16, #tpu.memory_space<vmem>>, %arg5: memref<1x512xf32, #tpu.memory_space<vmem>>, %arg6: memref<2x512xbf16, #tpu.memory_space<vmem>>, %arg7: memref<2x512xf32, #tpu.memory_space<vmem>>) attributes {dimension_semantics = [#tpu.dimension_semantics<parallel>, #tpu.dimension_semantics<parallel>, #tpu.dimension_semantics<arbitrary>], iteration_bounds = array<i64: 1, 4, 1>, scalar_prefetch = 0 : i64, scratch_operands = 1 : i64, tpu.core_type = #tpu.core_type<tc>, window_params = [{transform_indices = @transform_0, window_bounds = array<i64: 2, 128>}, {transform_indices = @transform_1, window_bounds = array<i64: 128, 512>}, {transform_indices = @transform_2, window_bounds = array<i64: 1, 512>}, {transform_indices = @transform_3, window_bounds = array<i64: 2, 512>}]} {
    %c0_i32 = arith.constant 0 : i32
    %0 = arith.cmpi eq, %arg2, %c0_i32 : i32
    %1 = arith.extui %0 : i1 to i32
    %c0_i32_0 = arith.constant 0 : i32
    %2 = arith.cmpi ne, %1, %c0_i32_0 : i32
    scf.if %2 {
      %cst_10 = arith.constant 0.000000e+00 : f32
      %12 = vector.broadcast %cst_10 : f32 to vector<2x512xf32>
      %c0_11 = arith.constant 0 : index
      %c0_12 = arith.constant 0 : index
      %13 = vector.load %arg7[%c0_11, %c0_12] : memref<2x512xf32, #tpu.memory_space<vmem>>, vector<2x512xf32>
      tpu.vector_store %arg7[%c0_11, %c0_12], %12 {strides = array<i32>} : memref<2x512xf32, #tpu.memory_space<vmem>>, vector<2x512xf32>,
    } else {
    }
    %c0 = arith.constant 0 : index
    %c0_1 = arith.constant 0 : index
    %3 = vector.load %arg7[%c0, %c0_1] : memref<2x512xf32, #tpu.memory_space<vmem>>, vector<2x512xf32>
    %c0_2 = arith.constant 0 : index
    %c0_3 = arith.constant 0 : index
    %4 = vector.load %arg3[%c0_2, %c0_3] : memref<2x128xbf16, #tpu.memory_space<vmem>>, vector<2x128xbf16>
    %c0_4 = arith.constant 0 : index
    %c0_5 = arith.constant 0 : index
    %5 = vector.load %arg4[%c0_4, %c0_5] : memref<128x512xbf16, #tpu.memory_space<vmem>>, vector<128x512xbf16>
    %cst = arith.constant dense<0.000000e+00> : vector<2x512xf32>
    %6 = tpu.matmul %4, %5, %cst {dimension_numbers = #tpu.dot_dimension_numbers<[1], [0], [0], [1], [0, 0, 1, 1], [], []>} : vector<2x128xbf16>, vector<128x512xbf16>, vector<2x512xf32> -> vector<2x512xf32>
    %7 = arith.addf %3, %6 : vector<2x512xf32>
    %c0_6 = arith.constant 0 : index
    %c0_7 = arith.constant 0 : index
    %8 = vector.load %arg7[%c0_6, %c0_7] : memref<2x512xf32, #tpu.memory_space<vmem>>, vector<2x512xf32>
    tpu.vector_store %arg7[%c0_6, %c0_7], %7 {strides = array<i32>} : memref<2x512xf32, #tpu.memory_space<vmem>>, vector<2x512xf32>,
    %c0_i32_8 = arith.constant 0 : i32
    %9 = arith.cmpi eq, %arg2, %c0_i32_8 : i32
    %10 = arith.extui %9 : i1 to i32
    %c0_i32_9 = arith.constant 0 : i32
    %11 = arith.cmpi ne, %10, %c0_i32_9 : i32
    scf.if %11 {
      %c0_10 = arith.constant 0 : index
      %c0_11 = arith.constant 0 : index
      %12 = vector.load %arg7[%c0_10, %c0_11] : memref<2x512xf32, #tpu.memory_space<vmem>>, vector<2x512xf32>
      %c0_12 = arith.constant 0 : index
      %c0_13 = arith.constant 0 : index
      %13 = vector.load %arg5[%c0_12, %c0_13] : memref<1x512xf32, #tpu.memory_space<vmem>>, vector<1x512xf32>
      %14 = vector.broadcast %13 : vector<1x512xf32> to vector<2x512xf32>
      %15 = arith.addf %12, %14 : vector<2x512xf32>
      %16 = arith.truncf %15 : vector<2x512xf32> to vector<2x512xbf16>
      %c0_14 = arith.constant 0 : index
      %c0_15 = arith.constant 0 : index
      %17 = vector.load %arg6[%c0_14, %c0_15] : memref<2x512xbf16, #tpu.memory_space<vmem>>, vector<2x512xbf16>
      tpu.vector_store %arg6[%c0_14, %c0_15], %16 {strides = array<i32>} : memref<2x512xbf16, #tpu.memory_space<vmem>>, vector<2x512xbf16>,
    } else {
    }
    return
  }
  func.func @transform_0(%arg0: i32, %arg1: i32, %arg2: i32) -> (i32, i32) {
    %c0_i32 = arith.constant 0 : i32
    return %arg0, %arg2 : i32, i32
  }
  func.func @transform_1(%arg0: i32, %arg1: i32, %arg2: i32) -> (i32, i32) {
    %c0_i32 = arith.constant 0 : i32
    return %arg2, %arg1 : i32, i32
  }
  func.func @transform_2(%arg0: i32, %arg1: i32, %arg2: i32) -> (i32, i32) {
    %c0_i32 = arith.constant 0 : i32
    %c0_i32_0 = arith.constant 0 : i32
    return %c0_i32, %arg1 : i32, i32
  }
  func.func @transform_3(%arg0: i32, %arg1: i32, %arg2: i32) -> (i32, i32) {
    %c0_i32 = arith.constant 0 : i32
    return %arg0, %arg1 : i32, i32
  }
}

module attributes {stable_mosaic.version = 11 : i64} {
  func.func @_matmul_bias_act_kernel(%arg0: i32, %arg1: i32, %arg2: i32, %arg3: memref<32x512xbf16, #tpu.memory_space<vmem>>, %arg4: memref<512x128xbf16, #tpu.memory_space<vmem>>, %arg5: memref<1x128xf32, #tpu.memory_space<vmem>>, %arg6: memref<32x128xbf16, #tpu.memory_space<vmem>>, %arg7: memref<32x128xf32, #tpu.memory_space<vmem>>) attributes {dimension_semantics = [#tpu.dimension_semantics<parallel>, #tpu.dimension_semantics<parallel>, #tpu.dimension_semantics<arbitrary>], iteration_bounds = array<i64: 1, 1, 1>, scalar_prefetch = 0 : i64, scratch_operands = 1 : i64, tpu.core_type = #tpu.core_type<tc>, window_params = [{transform_indices = @transform_0, window_bounds = array<i64: 32, 512>}, {transform_indices = @transform_1, window_bounds = array<i64: 512, 128>}, {transform_indices = @transform_2, window_bounds = array<i64: 1, 128>}, {transform_indices = @transform_3, window_bounds = array<i64: 32, 128>}]} {
    %c0_i32 = arith.constant 0 : i32
    %0 = arith.cmpi eq, %arg2, %c0_i32 : i32
    %1 = arith.extui %0 : i1 to i32
    %c0_i32_0 = arith.constant 0 : i32
    %2 = arith.cmpi ne, %1, %c0_i32_0 : i32
    scf.if %2 {
      %cst_10 = arith.constant 0.000000e+00 : f32
      %12 = vector.broadcast %cst_10 : f32 to vector<32x128xf32>
      %c0_11 = arith.constant 0 : index
      %c0_12 = arith.constant 0 : index
      %13 = vector.load %arg7[%c0_11, %c0_12] : memref<32x128xf32, #tpu.memory_space<vmem>>, vector<32x128xf32>
      tpu.vector_store %arg7[%c0_11, %c0_12], %12 {strides = array<i32>} : memref<32x128xf32, #tpu.memory_space<vmem>>, vector<32x128xf32>,
    } else {
    }
    %c0 = arith.constant 0 : index
    %c0_1 = arith.constant 0 : index
    %3 = vector.load %arg7[%c0, %c0_1] : memref<32x128xf32, #tpu.memory_space<vmem>>, vector<32x128xf32>
    %c0_2 = arith.constant 0 : index
    %c0_3 = arith.constant 0 : index
    %4 = vector.load %arg3[%c0_2, %c0_3] : memref<32x512xbf16, #tpu.memory_space<vmem>>, vector<32x512xbf16>
    %c0_4 = arith.constant 0 : index
    %c0_5 = arith.constant 0 : index
    %5 = vector.load %arg4[%c0_4, %c0_5] : memref<512x128xbf16, #tpu.memory_space<vmem>>, vector<512x128xbf16>
    %cst = arith.constant dense<0.000000e+00> : vector<32x128xf32>
    %6 = tpu.matmul %4, %5, %cst {dimension_numbers = #tpu.dot_dimension_numbers<[1], [0], [0], [1], [0, 0, 1, 1], [], []>} : vector<32x512xbf16>, vector<512x128xbf16>, vector<32x128xf32> -> vector<32x128xf32>
    %7 = arith.addf %3, %6 : vector<32x128xf32>
    %c0_6 = arith.constant 0 : index
    %c0_7 = arith.constant 0 : index
    %8 = vector.load %arg7[%c0_6, %c0_7] : memref<32x128xf32, #tpu.memory_space<vmem>>, vector<32x128xf32>
    tpu.vector_store %arg7[%c0_6, %c0_7], %7 {strides = array<i32>} : memref<32x128xf32, #tpu.memory_space<vmem>>, vector<32x128xf32>,
    %c0_i32_8 = arith.constant 0 : i32
    %9 = arith.cmpi eq, %arg2, %c0_i32_8 : i32
    %10 = arith.extui %9 : i1 to i32
    %c0_i32_9 = arith.constant 0 : i32
    %11 = arith.cmpi ne, %10, %c0_i32_9 : i32
    scf.if %11 {
      %c0_10 = arith.constant 0 : index
      %c0_11 = arith.constant 0 : index
      %12 = vector.load %arg7[%c0_10, %c0_11] : memref<32x128xf32, #tpu.memory_space<vmem>>, vector<32x128xf32>
      %c0_12 = arith.constant 0 : index
      %c0_13 = arith.constant 0 : index
      %13 = vector.load %arg5[%c0_12, %c0_13] : memref<1x128xf32, #tpu.memory_space<vmem>>, vector<1x128xf32>
      %14 = vector.broadcast %13 : vector<1x128xf32> to vector<32x128xf32>
      %15 = arith.addf %12, %14 : vector<32x128xf32>
      %cst_14 = arith.constant 0.000000e+00 : f32
      %16 = vector.broadcast %cst_14 : f32 to vector<32x128xf32>
      %17 = arith.maximumf %15, %16 : vector<32x128xf32>
      %18 = arith.truncf %17 : vector<32x128xf32> to vector<32x128xbf16>
      %c0_15 = arith.constant 0 : index
      %c0_16 = arith.constant 0 : index
      %19 = vector.load %arg6[%c0_15, %c0_16] : memref<32x128xbf16, #tpu.memory_space<vmem>>, vector<32x128xbf16>
      tpu.vector_store %arg6[%c0_15, %c0_16], %18 {strides = array<i32>} : memref<32x128xbf16, #tpu.memory_space<vmem>>, vector<32x128xbf16>,
    } else {
    }
    return
  }
  func.func @transform_0(%arg0: i32, %arg1: i32, %arg2: i32) -> (i32, i32) {
    %c0_i32 = arith.constant 0 : i32
    return %arg0, %arg2 : i32, i32
  }
  func.func @transform_1(%arg0: i32, %arg1: i32, %arg2: i32) -> (i32, i32) {
    %c0_i32 = arith.constant 0 : i32
    return %arg2, %arg1 : i32, i32
  }
  func.func @transform_2(%arg0: i32, %arg1: i32, %arg2: i32) -> (i32, i32) {
    %c0_i32 = arith.constant 0 : i32
    %c0_i32_0 = arith.constant 0 : i32
    return %c0_i32, %arg1 : i32, i32
  }
  func.func @transform_3(%arg0: i32, %arg1: i32, %arg2: i32) -> (i32, i32) {
    %c0_i32 = arith.constant 0 : i32
    return %arg0, %arg1 : i32, i32
  }
}

module attributes {stable_mosaic.version = 11 : i64} {
  func.func @_matmul_bias_act_kernel(%arg0: i32, %arg1: i32, %arg2: i32, %arg3: memref<128x256xbf16, #tpu.memory_space<vmem>>, %arg4: memref<256x128xbf16, #tpu.memory_space<vmem>>, %arg5: memref<1x128xf32, #tpu.memory_space<vmem>>, %arg6: memref<128x128xbf16, #tpu.memory_space<vmem>>, %arg7: memref<128x128xf32, #tpu.memory_space<vmem>>) attributes {dimension_semantics = [#tpu.dimension_semantics<parallel>, #tpu.dimension_semantics<parallel>, #tpu.dimension_semantics<arbitrary>], iteration_bounds = array<i64: 1, 1, 1>, scalar_prefetch = 0 : i64, scratch_operands = 1 : i64, tpu.core_type = #tpu.core_type<tc>, window_params = [{transform_indices = @transform_0, window_bounds = array<i64: 128, 256>}, {transform_indices = @transform_1, window_bounds = array<i64: 256, 128>}, {transform_indices = @transform_2, window_bounds = array<i64: 1, 128>}, {transform_indices = @transform_3, window_bounds = array<i64: 128, 128>}]} {
    %c0_i32 = arith.constant 0 : i32
    %0 = arith.cmpi eq, %arg2, %c0_i32 : i32
    %1 = arith.extui %0 : i1 to i32
    %c0_i32_0 = arith.constant 0 : i32
    %2 = arith.cmpi ne, %1, %c0_i32_0 : i32
    scf.if %2 {
      %cst_10 = arith.constant 0.000000e+00 : f32
      %12 = vector.broadcast %cst_10 : f32 to vector<128x128xf32>
      %c0_11 = arith.constant 0 : index
      %c0_12 = arith.constant 0 : index
      %13 = vector.load %arg7[%c0_11, %c0_12] : memref<128x128xf32, #tpu.memory_space<vmem>>, vector<128x128xf32>
      tpu.vector_store %arg7[%c0_11, %c0_12], %12 {strides = array<i32>} : memref<128x128xf32, #tpu.memory_space<vmem>>, vector<128x128xf32>,
    } else {
    }
    %c0 = arith.constant 0 : index
    %c0_1 = arith.constant 0 : index
    %3 = vector.load %arg7[%c0, %c0_1] : memref<128x128xf32, #tpu.memory_space<vmem>>, vector<128x128xf32>
    %c0_2 = arith.constant 0 : index
    %c0_3 = arith.constant 0 : index
    %4 = vector.load %arg3[%c0_2, %c0_3] : memref<128x256xbf16, #tpu.memory_space<vmem>>, vector<128x256xbf16>
    %c0_4 = arith.constant 0 : index
    %c0_5 = arith.constant 0 : index
    %5 = vector.load %arg4[%c0_4, %c0_5] : memref<256x128xbf16, #tpu.memory_space<vmem>>, vector<256x128xbf16>
    %cst = arith.constant dense<0.000000e+00> : vector<128x128xf32>
    %6 = tpu.matmul %4, %5, %cst {dimension_numbers = #tpu.dot_dimension_numbers<[1], [0], [0], [1], [0, 0, 1, 1], [], []>} : vector<128x256xbf16>, vector<256x128xbf16>, vector<128x128xf32> -> vector<128x128xf32>
    %7 = arith.addf %3, %6 : vector<128x128xf32>
    %c0_6 = arith.constant 0 : index
    %c0_7 = arith.constant 0 : index
    %8 = vector.load %arg7[%c0_6, %c0_7] : memref<128x128xf32, #tpu.memory_space<vmem>>, vector<128x128xf32>
    tpu.vector_store %arg7[%c0_6, %c0_7], %7 {strides = array<i32>} : memref<128x128xf32, #tpu.memory_space<vmem>>, vector<128x128xf32>,
    %c0_i32_8 = arith.constant 0 : i32
    %9 = arith.cmpi eq, %arg2, %c0_i32_8 : i32
    %10 = arith.extui %9 : i1 to i32
    %c0_i32_9 = arith.constant 0 : i32
    %11 = arith.cmpi ne, %10, %c0_i32_9 : i32
    scf.if %11 {
      %c0_10 = arith.constant 0 : index
      %c0_11 = arith.constant 0 : index
      %12 = vector.load %arg7[%c0_10, %c0_11] : memref<128x128xf32, #tpu.memory_space<vmem>>, vector<128x128xf32>
      %c0_12 = arith.constant 0 : index
      %c0_13 = arith.constant 0 : index
      %13 = vector.load %arg5[%c0_12, %c0_13] : memref<1x128xf32, #tpu.memory_space<vmem>>, vector<1x128xf32>
      %14 = vector.broadcast %13 : vector<1x128xf32> to vector<128x128xf32>
      %15 = arith.addf %12, %14 : vector<128x128xf32>
      %cst_14 = arith.constant 0.000000e+00 : f32
      %16 = vector.broadcast %cst_14 : f32 to vector<128x128xf32>
      %17 = arith.maximumf %15, %16 : vector<128x128xf32>
      %18 = arith.truncf %17 : vector<128x128xf32> to vector<128x128xbf16>
      %c0_15 = arith.constant 0 : index
      %c0_16 = arith.constant 0 : index
      %19 = vector.load %arg6[%c0_15, %c0_16] : memref<128x128xbf16, #tpu.memory_space<vmem>>, vector<128x128xbf16>
      tpu.vector_store %arg6[%c0_15, %c0_16], %18 {strides = array<i32>} : memref<128x128xbf16, #tpu.memory_space<vmem>>, vector<128x128xbf16>,
    } else {
    }
    return
  }
  func.func @transform_0(%arg0: i32, %arg1: i32, %arg2: i32) -> (i32, i32) {
    %c0_i32 = arith.constant 0 : i32
    return %arg0, %arg2 : i32, i32
  }
  func.func @transform_1(%arg0: i32, %arg1: i32, %arg2: i32) -> (i32, i32) {
    %c0_i32 = arith.constant 0 : i32
    return %arg2, %arg1 : i32, i32
  }
  func.func @transform_2(%arg0: i32, %arg1: i32, %arg2: i32) -> (i32, i32) {
    %c0_i32 = arith.constant 0 : i32
    %c0_i32_0 = arith.constant 0 : i32
    return %c0_i32, %arg1 : i32, i32
  }
  func.func @transform_3(%arg0: i32, %arg1: i32, %arg2: i32) -> (i32, i32) {
    %c0_i32 = arith.constant 0 : i32
    return %arg0, %arg1 : i32, i32
  }
}

module attributes {stable_mosaic.version = 11 : i64} {
  func.func @_matmul_bias_act_kernel(%arg0: i32, %arg1: i32, %arg2: i32, %arg3: memref<256x128xbf16, #tpu.memory_space<vmem>>, %arg4: memref<128x128xbf16, #tpu.memory_space<vmem>>, %arg5: memref<1x128xf32, #tpu.memory_space<vmem>>, %arg6: memref<256x128xf32, #tpu.memory_space<vmem>>, %arg7: memref<256x128xf32, #tpu.memory_space<vmem>>) attributes {dimension_semantics = [#tpu.dimension_semantics<parallel>, #tpu.dimension_semantics<parallel>, #tpu.dimension_semantics<arbitrary>], iteration_bounds = array<i64: 2, 1, 1>, scalar_prefetch = 0 : i64, scratch_operands = 1 : i64, tpu.core_type = #tpu.core_type<tc>, window_params = [{transform_indices = @transform_0, window_bounds = array<i64: 256, 128>}, {transform_indices = @transform_1, window_bounds = array<i64: 128, 128>}, {transform_indices = @transform_2, window_bounds = array<i64: 1, 128>}, {transform_indices = @transform_3, window_bounds = array<i64: 256, 128>}]} {
    %c0_i32 = arith.constant 0 : i32
    %0 = arith.cmpi eq, %arg2, %c0_i32 : i32
    %1 = arith.extui %0 : i1 to i32
    %c0_i32_0 = arith.constant 0 : i32
    %2 = arith.cmpi ne, %1, %c0_i32_0 : i32
    scf.if %2 {
      %cst_10 = arith.constant 0.000000e+00 : f32
      %12 = vector.broadcast %cst_10 : f32 to vector<256x128xf32>
      %c0_11 = arith.constant 0 : index
      %c0_12 = arith.constant 0 : index
      %13 = vector.load %arg7[%c0_11, %c0_12] : memref<256x128xf32, #tpu.memory_space<vmem>>, vector<256x128xf32>
      tpu.vector_store %arg7[%c0_11, %c0_12], %12 {strides = array<i32>} : memref<256x128xf32, #tpu.memory_space<vmem>>, vector<256x128xf32>,
    } else {
    }
    %c0 = arith.constant 0 : index
    %c0_1 = arith.constant 0 : index
    %3 = vector.load %arg7[%c0, %c0_1] : memref<256x128xf32, #tpu.memory_space<vmem>>, vector<256x128xf32>
    %c0_2 = arith.constant 0 : index
    %c0_3 = arith.constant 0 : index
    %4 = vector.load %arg3[%c0_2, %c0_3] : memref<256x128xbf16, #tpu.memory_space<vmem>>, vector<256x128xbf16>
    %c0_4 = arith.constant 0 : index
    %c0_5 = arith.constant 0 : index
    %5 = vector.load %arg4[%c0_4, %c0_5] : memref<128x128xbf16, #tpu.memory_space<vmem>>, vector<128x128xbf16>
    %cst = arith.constant dense<0.000000e+00> : vector<256x128xf32>
    %6 = tpu.matmul %4, %5, %cst {dimension_numbers = #tpu.dot_dimension_numbers<[1], [0], [0], [1], [0, 0, 1, 1], [], []>} : vector<256x128xbf16>, vector<128x128xbf16>, vector<256x128xf32> -> vector<256x128xf32>
    %7 = arith.addf %3, %6 : vector<256x128xf32>
    %c0_6 = arith.constant 0 : index
    %c0_7 = arith.constant 0 : index
    %8 = vector.load %arg7[%c0_6, %c0_7] : memref<256x128xf32, #tpu.memory_space<vmem>>, vector<256x128xf32>
    tpu.vector_store %arg7[%c0_6, %c0_7], %7 {strides = array<i32>} : memref<256x128xf32, #tpu.memory_space<vmem>>, vector<256x128xf32>,
    %c0_i32_8 = arith.constant 0 : i32
    %9 = arith.cmpi eq, %arg2, %c0_i32_8 : i32
    %10 = arith.extui %9 : i1 to i32
    %c0_i32_9 = arith.constant 0 : i32
    %11 = arith.cmpi ne, %10, %c0_i32_9 : i32
    scf.if %11 {
      %c0_10 = arith.constant 0 : index
      %c0_11 = arith.constant 0 : index
      %12 = vector.load %arg7[%c0_10, %c0_11] : memref<256x128xf32, #tpu.memory_space<vmem>>, vector<256x128xf32>
      %c0_12 = arith.constant 0 : index
      %c0_13 = arith.constant 0 : index
      %13 = vector.load %arg5[%c0_12, %c0_13] : memref<1x128xf32, #tpu.memory_space<vmem>>, vector<1x128xf32>
      %14 = vector.broadcast %13 : vector<1x128xf32> to vector<256x128xf32>
      %15 = arith.addf %12, %14 : vector<256x128xf32>
      %16 = arith.negf %15 : vector<256x128xf32>
      %17 = math.exp %16 : vector<256x128xf32>
      %cst_14 = arith.constant 1.000000e+00 : f32
      %18 = vector.broadcast %cst_14 : f32 to vector<256x128xf32>
      %19 = arith.addf %18, %17 : vector<256x128xf32>
      %20 = arith.divf %18, %19 : vector<256x128xf32>
      %c0_15 = arith.constant 0 : index
      %c0_16 = arith.constant 0 : index
      %21 = vector.load %arg6[%c0_15, %c0_16] : memref<256x128xf32, #tpu.memory_space<vmem>>, vector<256x128xf32>
      tpu.vector_store %arg6[%c0_15, %c0_16], %20 {strides = array<i32>} : memref<256x128xf32, #tpu.memory_space<vmem>>, vector<256x128xf32>,
    } else {
    }
    return
  }
  func.func @transform_0(%arg0: i32, %arg1: i32, %arg2: i32) -> (i32, i32) {
    %c0_i32 = arith.constant 0 : i32
    return %arg0, %arg2 : i32, i32
  }
  func.func @transform_1(%arg0: i32, %arg1: i32, %arg2: i32) -> (i32, i32) {
    %c0_i32 = arith.constant 0 : i32
    return %arg2, %arg1 : i32, i32
  }
  func.func @transform_2(%arg0: i32, %arg1: i32, %arg2: i32) -> (i32, i32) {
    %c0_i32 = arith.constant 0 : i32
    %c0_i32_0 = arith.constant 0 : i32
    return %c0_i32, %arg1 : i32, i32
  }
  func.func @transform_3(%arg0: i32, %arg1: i32, %arg2: i32) -> (i32, i32) {
    %c0_i32 = arith.constant 0 : i32
    return %arg0, %arg1 : i32, i32
  }
}

</mosaic_0001>

<bundles_post_ra>
// kernel: vae_forward.17
= control target key start
LH: loop header
LB: loop body
LE: loop exit
PB: predicated region body
PF: predicated region fallthrough
CT: control target
= control target key end

     0   :  { %s1473_s12 = smov 0   ;;  %s1475_s13 = smov 0   ;;  %s1611_s0 = inlined_call_operand.vmem [shape: bf16[512,48], index: 0, kind: input, shape index: {}]   ;;  %s1612_s1 = inlined_call_operand.vmem [shape: bf16[48,128], index: 1, kind: input, shape index: {}]   ;;  %s1613_s2 = inlined_call_operand.vmem [shape: f32[1,128], index: 2, kind: input, shape index: {}]   ;;  %s1614_s3 = inlined_call_operand.vmem [shape: bf16[512,128], index: 3, kind: output, shape index: {}]  }
   0x1   :  { %s1477_s14 = smov 0  }
   0x2 LB: > { %s32_s15 = sadd.s32 1, %s1447_s13  ;;  %p1121_p0 = scmp.ge.s32.totalorder %s1451_s14, 1  ;;  %s1451_s14 = sphi %s1477_s14, %s13_s14   ;;  %s1447_s13 = sphi %s1475_s13, %s1616_s13   ;;  %s1443_s12 = sphi %s1473_s12, %s1615_s12  }
   0x3   : > { %p34_p1 = scmp.ge.s32.totalorder %s32_s15, 2  ;;  %p188_p2 = scmp.lt.s32.totalorder %s1451_s14, 3 }
   0x5   : > { %s1618_s15 = smov (%p34_p1, %s32_s15), 0  ;;  %p189_p3 = pnand %p1121_p0, %p188_p2 }
   0x6   : > { %v1410_v0 = vld [vmem:[%s1612_s1] sm:$0xff] (!%p189_p3)   ;;  %s1122_s18 = sshll.u32 (!%p189_p3), %s1443_s12, 5  ;;  %v1411_v1 = vld [vmem:[%s1612_s1 + $0x8] sm:$0xff] (!%p189_p3)   ;;  %v1412_v2 = vld [vmem:[%s1612_s1 + $0x10] sm:$0xff] (!%p189_p3)   ;;  %vm464_vm0 = vcmask (!%p189_p3), 392192  }
   0x7   : > { %192 = sbr.rel (%p189_p3) target bundleno = 266 (0x10a), region = 32  ;;  %p230_p4 = scmp.lt.s32.totalorder (!%p189_p3), %s1122_s18, 63  ;;  %1342 = vmatprep.subr.bf16.mxu0 (!%p189_p3), %v1410_v0  ;;  %1380 = vmatprep.subr.bf16.mxu1 (!%p189_p3), %v1410_v0  ;;  %v1545_v19 = vld [vmem:[%s1613_s2] ss:$0 sm:$0xff] (!%p189_p3) }
   0x8   : > { %1343 = vmatpush3.bf16.msra.mxu0 (!%p189_p3), %v1410_v0  ;;  %1383 = vmatpush3.bf16.msra.mxu1 (!%p189_p3), %v1410_v0 }
   0x9   : > { %1344 = vmatprep.subr.bf16.mxu0 (!%p189_p3), %v1411_v1  ;;  %1381 = vmatprep.subr.bf16.mxu1 (!%p189_p3), %v1411_v1 }
   0xc   : > { %1345 = vmatpush3.bf16.msra.mxu0 (!%p189_p3), %v1411_v1  ;;  %1384 = vmatpush3.bf16.msra.mxu1 (!%p189_p3), %v1411_v1 }
   0xd   : > { %1346 = vmatprep.subr.bf16.mxu0 (!%p189_p3), %v1412_v2  ;;  %1382 = vmatprep.subr.bf16.mxu1 (!%p189_p3), %v1412_v2 }
   0xe   : > { %s1620_s18 = smov (!%p230_p4, %s1122_s18), 63 }
   0xf   : > { %s1123_s23 = sshll.u32 %s1620_s18, 2 }
  0x10   : > { %s1508_s26 = scalar_lea.vmem %s1611_s0, %s1123_s23  ;;  %1347 = vmatpush3.bf16.msra.mxu0 %v1412_v2  ;;  %1385 = vmatpush3.bf16.msra.mxu1 %v1412_v2  ;;  %s1560_s4 = scalar_lea.vmem %s1614_s3, %s1123_s23 }
  0x11   : > { %v1413_v3 = vld [vmem:[%s1508_s26] sm:$0xff]   ;;  %v1415_v5 = vld [vmem:[%s1508_s26 + $0x8] sm:$0xff]   ;;  %v1417_v7 = vld [vmem:[%s1508_s26 + $0x10] sm:$0xff]  }
  0x12   : > { %v1414_v4 = vld [vmem:[%s1508_s26 + $0x40] sm:$0xff]   ;;  %1348 = vmatprep.mubr.msk.bf16.mxu0 %vm464_vm0, %v1413_v3  ;;  %v1416_v6 = vld [vmem:[%s1508_s26 + $0x48] sm:$0xff]   ;;  %v1418_v8 = vld [vmem:[%s1508_s26 + $0x50] sm:$0xff]  }
  0x13   : > { %1364 = vmatprep.mubr.msk.bf16.mxu1 %vm464_vm0, %v1414_v4  ;;  %1349 = vmatmul.mubr.msk.bf16.vlgmr.msra.gmra.mrb[0].mxu0 %vm464_vm0, %v1415_v5  ;;  %v1419_v9 = vld [vmem:[%s1508_s26 + $0x18] sm:$0xff]   ;;  %v1421_v11 = vld [vmem:[%s1508_s26 + $0x20] sm:$0xff]   ;;  %v1423_v13 = vld [vmem:[%s1508_s26 + $0x28] sm:$0xff]  }
  0x14   : > { %1365 = vmatmul.mubr.msk.bf16.vlgmr.msra.gmra.mrb[0].mxu1 %vm464_vm0, %v1416_v6  ;;  %1352 = vmatprep.mubr.msk.bf16.mxu0 %vm464_vm0, %v1417_v7  ;;  %v1420_v10 = vld [vmem:[%s1508_s26 + $0x58] sm:$0xff]   ;;  %v1422_v12 = vld [vmem:[%s1508_s26 + $0x60] sm:$0xff]   ;;  %v1424_v14 = vld [vmem:[%s1508_s26 + $0x68] sm:$0xff]  }
  0x15   : > { %1368 = vmatprep.mubr.msk.bf16.mxu1 %vm464_vm0, %v1418_v8  ;;  %v1425_v15 = vld [vmem:[%s1508_s26 + $0x30] sm:$0xff]   ;;  %v1427_v17 = vld [vmem:[%s1508_s26 + $0x38] sm:$0xff]  }
  0x16   : > { %v1426_v16 = vld [vmem:[%s1508_s26 + $0x70] sm:$0xff]   ;;  %v1428_v18 = vld [vmem:[%s1508_s26 + $0x78] sm:$0xff]  }
  0x1b   : > { %1353 = vmatmul.mubr.msk.bf16.gmra.mrb[4].mxu0 %vm464_vm0, %v1419_v9 }
  0x1c   : > { %1369 = vmatmul.mubr.msk.bf16.gmra.mrb[4].mxu1 %vm464_vm0, %v1420_v10  ;;  %1356 = vmatprep.mubr.msk.bf16.mxu0 %vm464_vm0, %v1421_v11 }
  0x1d   : > { %1372 = vmatprep.mubr.msk.bf16.mxu1 %vm464_vm0, %v1422_v12 }
  0x23   : > { %1357 = vmatmul.mubr.msk.bf16.gmra.mrb[8].mxu0 %vm464_vm0, %v1423_v13 }
  0x24   : > { %1373 = vmatmul.mubr.msk.bf16.gmra.mrb[8].mxu1 %vm464_vm0, %v1424_v14  ;;  %1360 = vmatprep.mubr.msk.bf16.mxu0 %vm464_vm0, %v1425_v15 }
  0x25   : > { %1376 = vmatprep.mubr.msk.bf16.mxu1 %vm464_vm0, %v1426_v16 }
  0x2b   : > { %1361 = vmatmul.mubr.msk.bf16.gmra.mrb[12].mxu0 %vm464_vm0, %v1427_v17 }
  0x2c   : > { %1377 = vmatmul.mubr.msk.bf16.gmra.mrb[12].mxu1 %vm464_vm0, %v1428_v18 }
  0xe6   : > { %v1350_v20 = vpop.f32.mrb[0].mxu0 }
  0xe7   : > { %v1366_v21 = vpop.f32.mrb[0].mxu1  ;;  %v782_v22 = vadd.f32 %v1350_v20, %v1545_v19  ;;  %v547_v24 = vpop.f32.mrb[1].mxu0 }
  0xe8   : > { %v798_v23 = vadd.f32 %v1366_v21, %v1545_v19  ;;  %v611_v25 = vpop.f32.mrb[1].mxu1  ;;  %v780_v26 = vadd.f32 %v1545_v19, %v547_v24  ;;  %v1351_v28 = vpop.f32.mrb[2].mxu0 }
  0xe9   : > { %v796_v27 = vadd.f32 %v1545_v19, %v611_v25  ;;  %v1367_v29 = vpop.f32.mrb[2].mxu1  ;;  %v783_v30 = vadd.f32 %v1351_v28, %v1545_v19  ;;  %v550_v32 = vpop.f32.mrb[3].mxu0  ;;  %v814_v36 = vmax.f32 %v782_v22, 0.0 }
  0xea   : > { %v799_v31 = vadd.f32 %v1367_v29, %v1545_v19  ;;  %v614_v33 = vpop.f32.mrb[3].mxu1  ;;  %v781_v34 = vadd.f32 %v1545_v19, %v550_v32  ;;  %v830_v37 = vmax.f32 %v798_v23, 0.0  ;;  %v812_v40 = vmax.f32 %v780_v26, 0.0 }
  0xeb   : > { %v797_v35 = vadd.f32 %v1545_v19, %v614_v33  ;;  %v815_v38 = vmax.f32 %v783_v30, 0.0  ;;  %v828_v41 = vmax.f32 %v796_v27, 0.0 }
  0xec   : > { %v831_v39 = vmax.f32 %v799_v31, 0.0  ;;  %v813_v42 = vmax.f32 %v781_v34, 0.0 }
  0xed   : > { %v829_v43 = vmax.f32 %v797_v35, 0.0  ;;  %v1236_v44 = vpack.c.bf16 %v815_v38, %v814_v36 }
  0xee   : > { %v1276_v45 = vpack.c.bf16 %v831_v39, %v830_v37  ;;  %v1231_v46 = vpack.c.bf16 %v813_v42, %v812_v40  ;;  %v1354_v48 = vpop.f32.mrb[4].mxu0 }
  0xef   : > { %v1271_v47 = vpack.c.bf16 %v829_v43, %v828_v41  ;;  %v1370_v49 = vpop.f32.mrb[4].mxu1  ;;  %1308 = vst [vmem:[%s1560_s4 + $0x8] sm:$0xff] %v1236_v44   ;;  %v786_v50 = vadd.f32 %v1354_v48, %v1545_v19  ;;  %v563_v52 = vpop.f32.mrb[5].mxu0 }
  0xf0   : > { %1316 = vst [vmem:[%s1560_s4 + $0x48] sm:$0xff] %v1276_v45   ;;  %v802_v51 = vadd.f32 %v1370_v49, %v1545_v19  ;;  %v627_v53 = vpop.f32.mrb[5].mxu1  ;;  %1232 = vst [vmem:[%s1560_s4] sm:$0xff] %v1231_v46   ;;  %v784_v54 = vadd.f32 %v1545_v19, %v563_v52  ;;  %v1355_v56 = vpop.f32.mrb[6].mxu0 }
  0xf1   : > { %1315 = vst [vmem:[%s1560_s4 + $0x40] sm:$0xff] %v1271_v47   ;;  %v800_v55 = vadd.f32 %v1545_v19, %v627_v53  ;;  %v1371_v57 = vpop.f32.mrb[6].mxu1  ;;  %v787_v58 = vadd.f32 %v1355_v56, %v1545_v19  ;;  %v566_v60 = vpop.f32.mrb[7].mxu0  ;;  %v818_v0 = vmax.f32 %v786_v50, 0.0 }
  0xf2   : > { %v803_v59 = vadd.f32 %v1371_v57, %v1545_v19  ;;  %v630_v61 = vpop.f32.mrb[7].mxu1  ;;  %v785_v62 = vadd.f32 %v1545_v19, %v566_v60  ;;  %v834_v1 = vmax.f32 %v802_v51, 0.0  ;;  %v816_v4 = vmax.f32 %v784_v54, 0.0 }
  0xf3   : > { %v801_v63 = vadd.f32 %v1545_v19, %v630_v61  ;;  %v819_v2 = vmax.f32 %v787_v58, 0.0  ;;  %v832_v5 = vmax.f32 %v800_v55, 0.0 }
  0xf4   : > { %v835_v3 = vmax.f32 %v803_v59, 0.0  ;;  %v817_v6 = vmax.f32 %v785_v62, 0.0 }
  0xf5   : > { %v833_v7 = vmax.f32 %v801_v63, 0.0  ;;  %v1246_v8 = vpack.c.bf16 %v819_v2, %v818_v0 }
  0xf6   : > { %v1286_v9 = vpack.c.bf16 %v835_v3, %v834_v1  ;;  %v1241_v10 = vpack.c.bf16 %v817_v6, %v816_v4  ;;  %v1358_v12 = vpop.f32.mrb[8].mxu0 }
  0xf7   : > { %v1281_v11 = vpack.c.bf16 %v833_v7, %v832_v5  ;;  %v1374_v13 = vpop.f32.mrb[8].mxu1  ;;  %1310 = vst [vmem:[%s1560_s4 + $0x18] sm:$0xff] %v1246_v8   ;;  %v790_v14 = vadd.f32 %v1358_v12, %v1545_v19  ;;  %v579_v16 = vpop.f32.mrb[9].mxu0 }
  0xf8   : > { %1318 = vst [vmem:[%s1560_s4 + $0x58] sm:$0xff] %v1286_v9   ;;  %v806_v15 = vadd.f32 %v1374_v13, %v1545_v19  ;;  %v643_v17 = vpop.f32.mrb[9].mxu1  ;;  %1309 = vst [vmem:[%s1560_s4 + $0x10] sm:$0xff] %v1241_v10   ;;  %v788_v18 = vadd.f32 %v1545_v19, %v579_v16  ;;  %v1359_v21 = vpop.f32.mrb[10].mxu0 }
  0xf9   : > { %1317 = vst [vmem:[%s1560_s4 + $0x50] sm:$0xff] %v1281_v11   ;;  %v804_v20 = vadd.f32 %v1545_v19, %v643_v17  ;;  %v1375_v22 = vpop.f32.mrb[10].mxu1  ;;  %v791_v23 = vadd.f32 %v1359_v21, %v1545_v19  ;;  %v582_v25 = vpop.f32.mrb[11].mxu0  ;;  %v822_v29 = vmax.f32 %v790_v14, 0.0 }
  0xfa   : > { %v807_v24 = vadd.f32 %v1375_v22, %v1545_v19  ;;  %v646_v26 = vpop.f32.mrb[11].mxu1  ;;  %v789_v27 = vadd.f32 %v1545_v19, %v582_v25  ;;  %v838_v30 = vmax.f32 %v806_v15, 0.0  ;;  %v820_v33 = vmax.f32 %v788_v18, 0.0 }
  0xfb   : > { %v805_v28 = vadd.f32 %v1545_v19, %v646_v26  ;;  %v823_v31 = vmax.f32 %v791_v23, 0.0  ;;  %v836_v34 = vmax.f32 %v804_v20, 0.0 }
  0xfc   : > { %v839_v32 = vmax.f32 %v807_v24, 0.0  ;;  %v821_v35 = vmax.f32 %v789_v27, 0.0 }
  0xfd   : > { %v837_v36 = vmax.f32 %v805_v28, 0.0  ;;  %v1256_v37 = vpack.c.bf16 %v823_v31, %v822_v29 }
  0xfe   : > { %v1296_v38 = vpack.c.bf16 %v839_v32, %v838_v30  ;;  %v1251_v39 = vpack.c.bf16 %v821_v35, %v820_v33  ;;  %v1362_v41 = vpop.f32.mrb[12].mxu0 }
  0xff   : > { %v1291_v40 = vpack.c.bf16 %v837_v36, %v836_v34  ;;  %v1378_v42 = vpop.f32.mrb[12].mxu1  ;;  %1312 = vst [vmem:[%s1560_s4 + $0x28] sm:$0xff] %v1256_v37   ;;  %v794_v43 = vadd.f32 %v1362_v41, %v1545_v19  ;;  %v595_v45 = vpop.f32.mrb[13].mxu0 }
 0x100   : > { %1320 = vst [vmem:[%s1560_s4 + $0x68] sm:$0xff] %v1296_v38   ;;  %v810_v44 = vadd.f32 %v1378_v42, %v1545_v19  ;;  %v659_v46 = vpop.f32.mrb[13].mxu1  ;;  %1311 = vst [vmem:[%s1560_s4 + $0x20] sm:$0xff] %v1251_v39   ;;  %v792_v47 = vadd.f32 %v1545_v19, %v595_v45  ;;  %v1363_v49 = vpop.f32.mrb[14].mxu0 }
 0x101   : > { %1319 = vst [vmem:[%s1560_s4 + $0x60] sm:$0xff] %v1291_v40   ;;  %v808_v48 = vadd.f32 %v1545_v19, %v659_v46  ;;  %v1379_v50 = vpop.f32.mrb[14].mxu1  ;;  %v795_v51 = vadd.f32 %v1363_v49, %v1545_v19  ;;  %v598_v53 = vpop.f32.mrb[15].mxu0  ;;  %v826_v57 = vmax.f32 %v794_v43, 0.0 }
 0x102   : > { %v811_v52 = vadd.f32 %v1379_v50, %v1545_v19  ;;  %v662_v54 = vpop.f32.mrb[15].mxu1  ;;  %v793_v55 = vadd.f32 %v1545_v19, %v598_v53  ;;  %v842_v58 = vmax.f32 %v810_v44, 0.0  ;;  %v824_v61 = vmax.f32 %v792_v47, 0.0 }
 0x103   : > { %v809_v56 = vadd.f32 %v1545_v19, %v662_v54  ;;  %v827_v59 = vmax.f32 %v795_v51, 0.0  ;;  %v840_v62 = vmax.f32 %v808_v48, 0.0 }
 0x104   : > { %v843_v60 = vmax.f32 %v811_v52, 0.0  ;;  %v825_v63 = vmax.f32 %v793_v55, 0.0 }
 0x105   : > { %v841_v0 = vmax.f32 %v809_v56, 0.0  ;;  %v1266_v1 = vpack.c.bf16 %v827_v59, %v826_v57 }
 0x106   : > { %v1306_v2 = vpack.c.bf16 %v843_v60, %v842_v58  ;;  %v1261_v3 = vpack.c.bf16 %v825_v63, %v824_v61 }
 0x107   : > { %v1301_v4 = vpack.c.bf16 %v841_v0, %v840_v62  ;;  %1314 = vst [vmem:[%s1560_s4 + $0x38] sm:$0xff] %v1266_v1  }
 0x108   : > { %1322 = vst [vmem:[%s1560_s4 + $0x78] sm:$0xff] %v1306_v2   ;;  %1313 = vst [vmem:[%s1560_s4 + $0x30] sm:$0xff] %v1261_v3  }
 0x109   : > { %1321 = vst [vmem:[%s1560_s4 + $0x70] sm:$0xff] %v1301_v4  }
 0x10a PF: > { %s13_s14 = sadd.s32 1, %s1451_s14   ;;  %s1615_s12 = smov %s1447_s13 }
 0x10b   : > { %p10_p5 = scmp.ge.s32.totalorder %s13_s14, 4   ;;  %s1616_s13 = smov %s1618_s15 }
 0x10d   :  { %12 = sbr.rel (!%p10_p5) target bundleno = 2 (0x2), region = 76 }

// kernel: vae_forward.18
= control target key start
LH: loop header
LB: loop body
LE: loop exit
PB: predicated region body
PF: predicated region fallthrough
CT: control target
= control target key end

     0   :  { %s1476_s1 = inlined_call_operand.vmem [shape: bf16[512,128], index: 1, kind: input, shape index: {}]   ;;  %s1477_s0 = inlined_call_operand.vmem [shape: bf16[128,512], index: 0, kind: input, shape index: {}]   ;;  %s1478_s2 = inlined_call_operand.vmem [shape: f32[1,128], index: 2, kind: input, shape index: {}]   ;;  %s1479_s3 = inlined_call_operand.vmem [shape: bf16[128,128], index: 3, kind: output, shape index: {}]  }
   0x1   :  { %v1139_v0 = vld [vmem:[%s1476_s1 + $0x40] sm:$0xff]   ;;  %v1143_v4 = vld [vmem:[%s1476_s1 + $0x48] sm:$0xff]   ;;  %v1147_v8 = vld [vmem:[%s1476_s1 + $0x50] sm:$0xff]  }
   0x2   :  { %v1140_v1 = vld [vmem:[%s1476_s1 + $0xc0] sm:$0xff]   ;;  %1011 = vmatprep.subr.bf16.mxu0 %v1139_v0  ;;  %v1144_v5 = vld [vmem:[%s1476_s1 + $0xc8] sm:$0xff]   ;;  %v1148_v9 = vld [vmem:[%s1476_s1 + $0xd0] sm:$0xff]  }
   0x3   :  { %v1141_v2 = vld [vmem:[%s1476_s1] sm:$0xff]   ;;  %1075 = vmatprep.subr.bf16.mxu1 %v1140_v1  ;;  %v1145_v6 = vld [vmem:[%s1476_s1 + $0x8] sm:$0xff]   ;;  %v1149_v10 = vld [vmem:[%s1476_s1 + $0x10] sm:$0xff]  }
   0x4   :  { %v1142_v3 = vld [vmem:[%s1476_s1 + $0x80] sm:$0xff]   ;;  %1012 = vmatpush3.bf16.msra.mxu0 %v1141_v2  ;;  %v1146_v7 = vld [vmem:[%s1476_s1 + $0x88] sm:$0xff]   ;;  %v1150_v11 = vld [vmem:[%s1476_s1 + $0x90] sm:$0xff]  }
   0x5   :  { %1076 = vmatpush3.bf16.msra.mxu1 %v1142_v3  ;;  %1013 = vmatprep.subr.bf16.mxu0 %v1143_v4  ;;  %v1151_v12 = vld [vmem:[%s1476_s1 + $0x58] sm:$0xff]   ;;  %v1155_v16 = vld [vmem:[%s1476_s1 + $0x60] sm:$0xff]   ;;  %v1159_v20 = vld [vmem:[%s1476_s1 + $0x68] sm:$0xff]  }
   0x6   :  { %1077 = vmatprep.subr.bf16.mxu1 %v1144_v5  ;;  %v1152_v13 = vld [vmem:[%s1476_s1 + $0xd8] sm:$0xff]   ;;  %v1156_v17 = vld [vmem:[%s1476_s1 + $0xe0] sm:$0xff]   ;;  %v1160_v21 = vld [vmem:[%s1476_s1 + $0xe8] sm:$0xff]  }
   0x7   :  { %v1153_v14 = vld [vmem:[%s1476_s1 + $0x18] sm:$0xff]   ;;  %v1157_v18 = vld [vmem:[%s1476_s1 + $0x20] sm:$0xff]   ;;  %v1161_v22 = vld [vmem:[%s1476_s1 + $0x28] sm:$0xff]  }
   0x8   :  { %1014 = vmatpush3.bf16.msra.mxu0 %v1145_v6  ;;  %v1154_v15 = vld [vmem:[%s1476_s1 + $0x98] sm:$0xff]   ;;  %v1158_v19 = vld [vmem:[%s1476_s1 + $0xa0] sm:$0xff]   ;;  %v1162_v23 = vld [vmem:[%s1476_s1 + $0xa8] sm:$0xff]  }
   0x9   :  { %1078 = vmatpush3.bf16.msra.mxu1 %v1146_v7  ;;  %1015 = vmatprep.subr.bf16.mxu0 %v1147_v8  ;;  %v1163_v24 = vld [vmem:[%s1476_s1 + $0x70] sm:$0xff]   ;;  %v1167_v28 = vld [vmem:[%s1476_s1 + $0x78] sm:$0xff]  }
   0xa   :  { %1079 = vmatprep.subr.bf16.mxu1 %v1148_v9  ;;  %v1164_v25 = vld [vmem:[%s1476_s1 + $0xf0] sm:$0xff]   ;;  %v1168_v29 = vld [vmem:[%s1476_s1 + $0xf8] sm:$0xff]   ;;  %v1434_v9 = vld [vmem:[%s1478_s2] ss:$0 sm:$0xff] }
   0xb   :  { %v1165_v26 = vld [vmem:[%s1476_s1 + $0x30] sm:$0xff]   ;;  %v1169_v30 = vld [vmem:[%s1476_s1 + $0x38] sm:$0xff]  }
   0xc   :  { %1016 = vmatpush3.bf16.msra.mxu0 %v1149_v10  ;;  %v1166_v27 = vld [vmem:[%s1476_s1 + $0xb0] sm:$0xff]   ;;  %v1170_v31 = vld [vmem:[%s1476_s1 + $0xb8] sm:$0xff]  }
   0xd   :  { %1080 = vmatpush3.bf16.msra.mxu1 %v1150_v11  ;;  %1017 = vmatprep.subr.bf16.mxu0 %v1151_v12  ;;  %v1171_v32 = vld [vmem:[%s1477_s0] ss:$16 sps:$4 sm:$0xff]   ;;  %v1173_v33 = vld [vmem:[%s1477_s0 + $0x4] ss:$16 sps:$4 sm:$0xff]   ;;  %v1174_v34 = vld [vmem:[%s1477_s0 + $0x8] ss:$16 sps:$4 sm:$0xff]  }
   0xe   :  { %1081 = vmatprep.subr.bf16.mxu1 %v1152_v13  ;;  %v1176_v35 = vld [vmem:[%s1477_s0 + $0xc] ss:$16 sps:$4 sm:$0xff]   ;;  %531 = vmatprep.mubr.bf16.mxu0 %v1173_v33  ;;  %v1177_v36 = vld [vmem:[%s1477_s0 + $0x24] ss:$16 sps:$4 sm:$0xff]   ;;  %v1181_v38 = vld [vmem:[%s1477_s0 + $0x20] ss:$16 sps:$4 sm:$0xff]  }
   0xf   :  { %628 = vmatprep.mubr.bf16.mxu1 %v1176_v35  ;;  %v1179_v37 = vld [vmem:[%s1477_s0 + $0x2c] ss:$16 sps:$4 sm:$0xff]   ;;  %v1182_v39 = vld [vmem:[%s1477_s0 + $0x28] ss:$16 sps:$4 sm:$0xff]   ;;  %v1183_v40 = vld [vmem:[%s1477_s0 + $0x44] ss:$16 sps:$4 sm:$0xff]  }
  0x10   :  { %1018 = vmatpush3.bf16.msra.mxu0 %v1153_v14  ;;  %v1185_v41 = vld [vmem:[%s1477_s0 + $0x4c] ss:$16 sps:$4 sm:$0xff]   ;;  %v1187_v42 = vld [vmem:[%s1477_s0 + $0x40] ss:$16 sps:$4 sm:$0xff]   ;;  %v1188_v43 = vld [vmem:[%s1477_s0 + $0x48] ss:$16 sps:$4 sm:$0xff]  }
  0x11   :  { %1082 = vmatpush3.bf16.msra.mxu1 %v1154_v15  ;;  %1019 = vmatprep.subr.bf16.mxu0 %v1155_v16  ;;  %v1189_v44 = vld [vmem:[%s1477_s0 + $0x64] ss:$16 sps:$4 sm:$0xff]   ;;  %v1191_v45 = vld [vmem:[%s1477_s0 + $0x6c] ss:$16 sps:$4 sm:$0xff]   ;;  %v1193_v46 = vld [vmem:[%s1477_s0 + $0x60] ss:$16 sps:$4 sm:$0xff]  }
  0x12   :  { %1083 = vmatprep.subr.bf16.mxu1 %v1156_v17  ;;  %v1194_v47 = vld [vmem:[%s1477_s0 + $0x68] ss:$16 sps:$4 sm:$0xff]   ;;  %v1195_v48 = vld [vmem:[%s1477_s0 + $0x84] ss:$16 sps:$4 sm:$0xff]   ;;  %v1197_v49 = vld [vmem:[%s1477_s0 + $0x8c] ss:$16 sps:$4 sm:$0xff]  }
  0x13   :  { %v1199_v50 = vld [vmem:[%s1477_s0 + $0x80] ss:$16 sps:$4 sm:$0xff]   ;;  %v1200_v51 = vld [vmem:[%s1477_s0 + $0x88] ss:$16 sps:$4 sm:$0xff]   ;;  %v1201_v52 = vld [vmem:[%s1477_s0 + $0xa4] ss:$16 sps:$4 sm:$0xff]  }
  0x14   :  { %1020 = vmatpush3.bf16.msra.mxu0 %v1157_v18  ;;  %v1203_v53 = vld [vmem:[%s1477_s0 + $0xac] ss:$16 sps:$4 sm:$0xff]   ;;  %v1205_v54 = vld [vmem:[%s1477_s0 + $0xa0] ss:$16 sps:$4 sm:$0xff]   ;;  %v1206_v55 = vld [vmem:[%s1477_s0 + $0xa8] ss:$16 sps:$4 sm:$0xff]  }
  0x15   :  { %1084 = vmatpush3.bf16.msra.mxu1 %v1158_v19  ;;  %1021 = vmatprep.subr.bf16.mxu0 %v1159_v20  ;;  %v1207_v56 = vld [vmem:[%s1477_s0 + $0xc4] ss:$16 sps:$4 sm:$0xff]   ;;  %v1209_v57 = vld [vmem:[%s1477_s0 + $0xcc] ss:$16 sps:$4 sm:$0xff]   ;;  %v1211_v58 = vld [vmem:[%s1477_s0 + $0xc0] ss:$16 sps:$4 sm:$0xff]  }
  0x16   :  { %1085 = vmatprep.subr.bf16.mxu1 %v1160_v21  ;;  %v1212_v59 = vld [vmem:[%s1477_s0 + $0xc8] ss:$16 sps:$4 sm:$0xff]   ;;  %v1213_v60 = vld [vmem:[%s1477_s0 + $0xe4] ss:$16 sps:$4 sm:$0xff]   ;;  %v1215_v61 = vld [vmem:[%s1477_s0 + $0xec] ss:$16 sps:$4 sm:$0xff]  }
  0x17   :  { %v1217_v62 = vld [vmem:[%s1477_s0 + $0xe0] ss:$16 sps:$4 sm:$0xff]   ;;  %v1218_v63 = vld [vmem:[%s1477_s0 + $0xe8] ss:$16 sps:$4 sm:$0xff]  }
  0x18   :  { %1022 = vmatpush3.bf16.msra.mxu0 %v1161_v22 }
  0x19   :  { %1086 = vmatpush3.bf16.msra.mxu1 %v1162_v23  ;;  %1023 = vmatprep.subr.bf16.mxu0 %v1163_v24 }
  0x1a   :  { %1087 = vmatprep.subr.bf16.mxu1 %v1164_v25 }
  0x1c   :  { %1024 = vmatpush3.bf16.msra.mxu0 %v1165_v26 }
  0x1d   :  { %1088 = vmatpush3.bf16.msra.mxu1 %v1166_v27  ;;  %1025 = vmatprep.subr.bf16.mxu0 %v1167_v28 }
  0x1e   :  { %1089 = vmatprep.subr.bf16.mxu1 %v1168_v29 }
  0x20   :  { %1026 = vmatpush3.bf16.msra.mxu0 %v1169_v30 }
  0x21   :  { %1090 = vmatpush3.bf16.msra.mxu1 %v1170_v31 }
  0x23   :  { %532 = vmatmul.mubr.bf16.vlgmr.msra.gmra.mrb[0].mxu0 %v1171_v32 }
  0x24   :  { %629 = vmatmul.mubr.bf16.vlgmr.msra.gmra.mrb[0].mxu1 %v1174_v34  ;;  %539 = vmatprep.mubr.bf16.mxu0 %v1177_v36 }
  0x25   :  { %636 = vmatprep.mubr.bf16.mxu1 %v1179_v37 }
  0x2b   :  { %540 = vmatmul.mubr.bf16.gmra.mrb[4].mxu0 %v1181_v38 }
  0x2c   :  { %637 = vmatmul.mubr.bf16.gmra.mrb[4].mxu1 %v1182_v39  ;;  %547 = vmatprep.mubr.bf16.mxu0 %v1183_v40 }
  0x2d   :  { %644 = vmatprep.mubr.bf16.mxu1 %v1185_v41 }
  0x33   :  { %548 = vmatmul.mubr.bf16.gmra.mrb[8].mxu0 %v1187_v42 }
  0x34   :  { %645 = vmatmul.mubr.bf16.gmra.mrb[8].mxu1 %v1188_v43  ;;  %555 = vmatprep.mubr.bf16.mxu0 %v1189_v44 }
  0x35   :  { %652 = vmatprep.mubr.bf16.mxu1 %v1191_v45 }
  0x3b   :  { %556 = vmatmul.mubr.bf16.gmra.mrb[12].mxu0 %v1193_v46 }
  0x3c   :  { %653 = vmatmul.mubr.bf16.gmra.mrb[12].mxu1 %v1194_v47  ;;  %563 = vmatprep.mubr.bf16.mxu0 %v1195_v48 }
  0x3d   :  { %660 = vmatprep.mubr.bf16.mxu1 %v1197_v49 }
  0x43   :  { %564 = vmatmul.mubr.bf16.gmra.mrb[16].mxu0 %v1199_v50 }
  0x44   :  { %661 = vmatmul.mubr.bf16.gmra.mrb[16].mxu1 %v1200_v51  ;;  %571 = vmatprep.mubr.bf16.mxu0 %v1201_v52 }
  0x45   :  { %668 = vmatprep.mubr.bf16.mxu1 %v1203_v53 }
  0x4b   :  { %572 = vmatmul.mubr.bf16.gmra.mrb[20].mxu0 %v1205_v54 }
  0x4c   :  { %669 = vmatmul.mubr.bf16.gmra.mrb[20].mxu1 %v1206_v55  ;;  %579 = vmatprep.mubr.bf16.mxu0 %v1207_v56 }
  0x4d   :  { %676 = vmatprep.mubr.bf16.mxu1 %v1209_v57 }
  0x53   :  { %580 = vmatmul.mubr.bf16.gmra.mrb[24].mxu0 %v1211_v58 }
  0x54   :  { %677 = vmatmul.mubr.bf16.gmra.mrb[24].mxu1 %v1212_v59  ;;  %587 = vmatprep.mubr.bf16.mxu0 %v1213_v60 }
  0x55   :  { %684 = vmatprep.mubr.bf16.mxu1 %v1215_v61 }
  0x5b   :  { %588 = vmatmul.mubr.bf16.gmra.mrb[28].mxu0 %v1217_v62 }
  0x5c   :  { %685 = vmatmul.mubr.bf16.gmra.mrb[28].mxu1 %v1218_v63 }
  0xf6   :  { %v1027_v0 = vpop.f32.mrb[0].mxu0 }
  0xf7   :  { %v1091_v1 = vpop.f32.mrb[0].mxu1  ;;  %v1028_v2 = vpop.f32.mrb[1].mxu0 }
  0xf8   :  { %v1029_v3 = vadd.f32 %v1028_v2, %v1027_v0  ;;  %v1092_v4 = vpop.f32.mrb[1].mxu1  ;;  %v1030_v5 = vpop.f32.mrb[2].mxu0 }
  0xf9   :  { %v1093_v6 = vadd.f32 %v1092_v4, %v1091_v1  ;;  %v1094_v7 = vpop.f32.mrb[2].mxu1  ;;  %v1031_v8 = vpop.f32.mrb[3].mxu0 }
  0xfa   :  { %v1032_v10 = vadd.f32 %v1031_v8, %v1030_v5  ;;  %v1095_v11 = vpop.f32.mrb[3].mxu1 }
  0xfb   :  { %v631_v12 = vadd.f32 %v1093_v6, %v1029_v3  ;;  %v1096_v13 = vadd.f32 %v1095_v11, %v1094_v7 }
  0xfd   :  { %v751_v14 = vadd.f32 %v1434_v9, %v631_v12  ;;  %v634_v15 = vadd.f32 %v1096_v13, %v1032_v10 }
  0xfe   :  { %v1033_v16 = vpop.f32.mrb[4].mxu0 }
  0xff   :  { %v752_v17 = vadd.f32 %v1434_v9, %v634_v15  ;;  %v1097_v18 = vpop.f32.mrb[4].mxu1  ;;  %v1034_v19 = vpop.f32.mrb[5].mxu0  ;;  %v767_v23 = vmax.f32 %v751_v14, 0.0 }
 0x100   :  { %v1035_v20 = vadd.f32 %v1034_v19, %v1033_v16  ;;  %v1098_v21 = vpop.f32.mrb[5].mxu1  ;;  %v1036_v22 = vpop.f32.mrb[6].mxu0 }
 0x101   :  { %v768_v24 = vmax.f32 %v752_v17, 0.0  ;;  %v1099_v25 = vadd.f32 %v1098_v21, %v1097_v18  ;;  %v1100_v26 = vpop.f32.mrb[6].mxu1  ;;  %v1037_v27 = vpop.f32.mrb[7].mxu0 }
 0x102   :  { %v1038_v28 = vadd.f32 %v1037_v27, %v1036_v22  ;;  %v1101_v29 = vpop.f32.mrb[7].mxu1 }
 0x103   :  { %v967_v30 = vpack.c.bf16 %v768_v24, %v767_v23  ;;  %v639_v31 = vadd.f32 %v1099_v25, %v1035_v20  ;;  %v1102_v32 = vadd.f32 %v1101_v29, %v1100_v26 }
 0x105   :  { %968 = vst [vmem:[%s1479_s3] sm:$0xff] %v967_v30   ;;  %v753_v33 = vadd.f32 %v1434_v9, %v639_v31  ;;  %v642_v34 = vadd.f32 %v1102_v32, %v1038_v28 }
 0x106   :  { %v1039_v35 = vpop.f32.mrb[8].mxu0 }
 0x107   :  { %v754_v36 = vadd.f32 %v1434_v9, %v642_v34  ;;  %v1103_v37 = vpop.f32.mrb[8].mxu1  ;;  %v1040_v38 = vpop.f32.mrb[9].mxu0  ;;  %v769_v42 = vmax.f32 %v753_v33, 0.0 }
 0x108   :  { %v1041_v39 = vadd.f32 %v1040_v38, %v1039_v35  ;;  %v1104_v40 = vpop.f32.mrb[9].mxu1  ;;  %v1042_v41 = vpop.f32.mrb[10].mxu0 }
 0x109   :  { %v770_v43 = vmax.f32 %v754_v36, 0.0  ;;  %v1105_v44 = vadd.f32 %v1104_v40, %v1103_v37  ;;  %v1106_v45 = vpop.f32.mrb[10].mxu1  ;;  %v1043_v46 = vpop.f32.mrb[11].mxu0 }
 0x10a   :  { %v1044_v47 = vadd.f32 %v1043_v46, %v1042_v41  ;;  %v1107_v48 = vpop.f32.mrb[11].mxu1 }
 0x10b   :  { %v972_v49 = vpack.c.bf16 %v770_v43, %v769_v42  ;;  %v647_v50 = vadd.f32 %v1105_v44, %v1041_v39  ;;  %v1108_v51 = vadd.f32 %v1107_v48, %v1106_v45 }
 0x10d   :  { %1004 = vst [vmem:[%s1479_s3 + $0x8] sm:$0xff] %v972_v49   ;;  %v755_v52 = vadd.f32 %v1434_v9, %v647_v50  ;;  %v650_v53 = vadd.f32 %v1108_v51, %v1044_v47 }
 0x10e   :  { %v1045_v54 = vpop.f32.mrb[12].mxu0 }
 0x10f   :  { %v756_v55 = vadd.f32 %v1434_v9, %v650_v53  ;;  %v1109_v56 = vpop.f32.mrb[12].mxu1  ;;  %v1046_v57 = vpop.f32.mrb[13].mxu0  ;;  %v771_v61 = vmax.f32 %v755_v52, 0.0 }
 0x110   :  { %v1047_v58 = vadd.f32 %v1046_v57, %v1045_v54  ;;  %v1110_v59 = vpop.f32.mrb[13].mxu1  ;;  %v1048_v60 = vpop.f32.mrb[14].mxu0 }
 0x111   :  { %v772_v62 = vmax.f32 %v756_v55, 0.0  ;;  %v1111_v63 = vadd.f32 %v1110_v59, %v1109_v56  ;;  %v1112_v0 = vpop.f32.mrb[14].mxu1  ;;  %v1049_v1 = vpop.f32.mrb[15].mxu0 }
 0x112   :  { %v1050_v2 = vadd.f32 %v1049_v1, %v1048_v60  ;;  %v1113_v3 = vpop.f32.mrb[15].mxu1 }
 0x113   :  { %v977_v4 = vpack.c.bf16 %v772_v62, %v771_v61  ;;  %v655_v5 = vadd.f32 %v1111_v63, %v1047_v58  ;;  %v1114_v6 = vadd.f32 %v1113_v3, %v1112_v0 }
 0x115   :  { %1005 = vst [vmem:[%s1479_s3 + $0x10] sm:$0xff] %v977_v4   ;;  %v757_v7 = vadd.f32 %v1434_v9, %v655_v5  ;;  %v658_v8 = vadd.f32 %v1114_v6, %v1050_v2 }
 0x116   :  { %v1051_v10 = vpop.f32.mrb[16].mxu0 }
 0x117   :  { %v758_v11 = vadd.f32 %v1434_v9, %v658_v8  ;;  %v1115_v12 = vpop.f32.mrb[16].mxu1  ;;  %v1052_v13 = vpop.f32.mrb[17].mxu0  ;;  %v773_v17 = vmax.f32 %v757_v7, 0.0 }
 0x118   :  { %v1053_v14 = vadd.f32 %v1052_v13, %v1051_v10  ;;  %v1116_v15 = vpop.f32.mrb[17].mxu1  ;;  %v1054_v16 = vpop.f32.mrb[18].mxu0 }
 0x119   :  { %v774_v18 = vmax.f32 %v758_v11, 0.0  ;;  %v1117_v19 = vadd.f32 %v1116_v15, %v1115_v12  ;;  %v1118_v20 = vpop.f32.mrb[18].mxu1  ;;  %v1055_v21 = vpop.f32.mrb[19].mxu0 }
 0x11a   :  { %v1056_v22 = vadd.f32 %v1055_v21, %v1054_v16  ;;  %v1119_v23 = vpop.f32.mrb[19].mxu1 }
 0x11b   :  { %v982_v24 = vpack.c.bf16 %v774_v18, %v773_v17  ;;  %v663_v25 = vadd.f32 %v1117_v19, %v1053_v14  ;;  %v1120_v26 = vadd.f32 %v1119_v23, %v1118_v20 }
 0x11d   :  { %1006 = vst [vmem:[%s1479_s3 + $0x18] sm:$0xff] %v982_v24   ;;  %v759_v27 = vadd.f32 %v1434_v9, %v663_v25  ;;  %v666_v28 = vadd.f32 %v1120_v26, %v1056_v22 }
 0x11e   :  { %v1057_v29 = vpop.f32.mrb[20].mxu0 }
 0x11f   :  { %v760_v30 = vadd.f32 %v1434_v9, %v666_v28  ;;  %v1121_v31 = vpop.f32.mrb[20].mxu1  ;;  %v1058_v32 = vpop.f32.mrb[21].mxu0  ;;  %v775_v36 = vmax.f32 %v759_v27, 0.0 }
 0x120   :  { %v1059_v33 = vadd.f32 %v1058_v32, %v1057_v29  ;;  %v1122_v34 = vpop.f32.mrb[21].mxu1  ;;  %v1060_v35 = vpop.f32.mrb[22].mxu0 }
 0x121   :  { %v776_v37 = vmax.f32 %v760_v30, 0.0  ;;  %v1123_v38 = vadd.f32 %v1122_v34, %v1121_v31  ;;  %v1124_v39 = vpop.f32.mrb[22].mxu1  ;;  %v1061_v40 = vpop.f32.mrb[23].mxu0 }
 0x122   :  { %v1062_v41 = vadd.f32 %v1061_v40, %v1060_v35  ;;  %v1125_v42 = vpop.f32.mrb[23].mxu1 }
 0x123   :  { %v987_v43 = vpack.c.bf16 %v776_v37, %v775_v36  ;;  %v671_v44 = vadd.f32 %v1123_v38, %v1059_v33  ;;  %v1126_v45 = vadd.f32 %v1125_v42, %v1124_v39 }
 0x125   :  { %1007 = vst [vmem:[%s1479_s3 + $0x20] sm:$0xff] %v987_v43   ;;  %v761_v46 = vadd.f32 %v1434_v9, %v671_v44  ;;  %v674_v47 = vadd.f32 %v1126_v45, %v1062_v41 }
 0x126   :  { %v1063_v48 = vpop.f32.mrb[24].mxu0 }
 0x127   :  { %v762_v49 = vadd.f32 %v1434_v9, %v674_v47  ;;  %v1127_v50 = vpop.f32.mrb[24].mxu1  ;;  %v1064_v51 = vpop.f32.mrb[25].mxu0  ;;  %v777_v55 = vmax.f32 %v761_v46, 0.0 }
 0x128   :  { %v1065_v52 = vadd.f32 %v1064_v51, %v1063_v48  ;;  %v1128_v53 = vpop.f32.mrb[25].mxu1  ;;  %v1066_v54 = vpop.f32.mrb[26].mxu0 }
 0x129   :  { %v778_v56 = vmax.f32 %v762_v49, 0.0  ;;  %v1129_v57 = vadd.f32 %v1128_v53, %v1127_v50  ;;  %v1130_v58 = vpop.f32.mrb[26].mxu1  ;;  %v1067_v59 = vpop.f32.mrb[27].mxu0 }
 0x12a   :  { %v1068_v60 = vadd.f32 %v1067_v59, %v1066_v54  ;;  %v1131_v61 = vpop.f32.mrb[27].mxu1 }
 0x12b   :  { %v992_v62 = vpack.c.bf16 %v778_v56, %v777_v55  ;;  %v679_v63 = vadd.f32 %v1129_v57, %v1065_v52  ;;  %v1132_v0 = vadd.f32 %v1131_v61, %v1130_v58 }
 0x12d   :  { %1008 = vst [vmem:[%s1479_s3 + $0x28] sm:$0xff] %v992_v62   ;;  %v763_v1 = vadd.f32 %v1434_v9, %v679_v63  ;;  %v682_v2 = vadd.f32 %v1132_v0, %v1068_v60 }
 0x12e   :  { %v1069_v3 = vpop.f32.mrb[28].mxu0 }
 0x12f   :  { %v764_v4 = vadd.f32 %v1434_v9, %v682_v2  ;;  %v1133_v5 = vpop.f32.mrb[28].mxu1  ;;  %v1070_v6 = vpop.f32.mrb[29].mxu0  ;;  %v779_v11 = vmax.f32 %v763_v1, 0.0 }
 0x130   :  { %v1071_v7 = vadd.f32 %v1070_v6, %v1069_v3  ;;  %v1134_v8 = vpop.f32.mrb[29].mxu1  ;;  %v1072_v10 = vpop.f32.mrb[30].mxu0 }
 0x131   :  { %v780_v12 = vmax.f32 %v764_v4, 0.0  ;;  %v1135_v13 = vadd.f32 %v1134_v8, %v1133_v5  ;;  %v1136_v14 = vpop.f32.mrb[30].mxu1  ;;  %v1073_v15 = vpop.f32.mrb[31].mxu0 }
 0x132   :  { %v1074_v16 = vadd.f32 %v1073_v15, %v1072_v10  ;;  %v1137_v17 = vpop.f32.mrb[31].mxu1 }
 0x133   :  { %v997_v18 = vpack.c.bf16 %v780_v12, %v779_v11  ;;  %v687_v19 = vadd.f32 %v1135_v13, %v1071_v7  ;;  %v1138_v20 = vadd.f32 %v1137_v17, %v1136_v14 }
 0x135   :  { %1009 = vst [vmem:[%s1479_s3 + $0x30] sm:$0xff] %v997_v18   ;;  %v765_v21 = vadd.f32 %v1434_v9, %v687_v19  ;;  %v690_v22 = vadd.f32 %v1138_v20, %v1074_v16 }
 0x137   :  { %v766_v23 = vadd.f32 %v1434_v9, %v690_v22  ;;  %v781_v24 = vmax.f32 %v765_v21, 0.0 }
 0x139   :  { %v782_v25 = vmax.f32 %v766_v23, 0.0 }
 0x13b   :  { %v1002_v26 = vpack.c.bf16 %v782_v25, %v781_v24 }
 0x13d   :  { %1010 = vst [vmem:[%s1479_s3 + $0x38] sm:$0xff] %v1002_v26  }

// kernel: vae_forward.19
= control target key start
LH: loop header
LB: loop body
LE: loop exit
PB: predicated region body
PF: predicated region fallthrough
CT: control target
= control target key end

     0   :  { %s1144_s12 = smov 0   ;;  %s1146_s13 = smov 0   ;;  %s1264_s0 = inlined_call_operand.vmem [shape: bf16[32,1024], index: 0, kind: input, shape index: {}]   ;;  %s1265_s1 = inlined_call_operand.vmem [shape: bf16[1024,128], index: 1, kind: input, shape index: {}]   ;;  %s1266_s2 = inlined_call_operand.vmem [shape: f32[1,128], index: 2, kind: input, shape index: {}]   ;;  %s1267_s3 = inlined_call_operand.vmem [shape: bf16[32,128], index: 3, kind: output, shape index: {}]  }
   0x1   :  { %s1148_s14 = smov 0   ;;  %s1150_s15 = smov 0  }
   0x2   :  { %s1152_s16 = smov 0  }
   0x3 LB: > { %s25_s17 = sadd.s32 1, %s1117_s15  ;;  %p48_p1 = scmp.ne.s32.totalorder %s1109_s13, %s1105_s12  ;;  %s1121_s16 = sphi %s1152_s16, %s13_s16   ;;  %s1117_s15 = sphi %s1150_s15, %s1271_s15   ;;  %s1113_s14 = sphi %s1148_s14, %s1270_s14   ;;  %s1109_s13 = sphi %s1146_s13, %s1269_s13   ;;  %s1105_s12 = sphi %s1144_s12, %s1268_s12  }
   0x4   : > { %p26_p0 = scmp.ge.s32.totalorder %s25_s17, 2  ;;  %p49_p2 = scmp.eq.s32.totalorder %s1121_s16, 0 }
   0x5   : > { %s41_s19 = sadd.s32 1, %s1109_s13  ;;  %p867_p5 = scmp.ge.s32.totalorder %s1121_s16, 2 }
   0x6   : > { %s1273_s17 = smov (%p26_p0, %s25_s17), 0  ;;  %p50_p3 = por %p49_p2, %p48_p1 }
   0x7   : > { %s37_s18 = ssub.s32 %s1117_s15, %s1273_s17  ;;  %162 = sbr.rel (%p867_p5) target bundleno = 22 (0x16), region = 20 }
   0x8   : > { %p39_p4 = scmp.eq.s32.totalorder %s37_s18, 0 }
   0xa   : > { %s1179_s20 = scalar_select %p39_p4, %s1109_s13, %s41_s19  }
   0xe   : > { %165 = sbr.rel (!%p50_p3) target bundleno = 22 (0x16), region = 24  ;;  %s167_s21 = sand.u32 (%p50_p3), 1, %s1109_s13  }
   0xf   : > { %s926_s22 = sshll.u32 (%p50_p3), %s1117_s15, 4  ;;  %s868_s23 = sshll.u32 (%p50_p3), %s167_s21, 6 }
  0x10   : > { %s175_s26 = scalar_lea.vmem (%p50_p3), %s1264_s0, %s926_s22  ;;  %s169_s27 = scalar_lea.vmem (%p50_p3), [#allocation3], %s868_s23 }
  0x11   : > { %v188_v0 = vld [vmem:[%s175_s26] sm:$0xff] (%p50_p3)  ;;  %v190_v1 = vld [vmem:[%s175_s26 + $0x8] sm:$0xff] (%p50_p3) }
  0x12   : > { %v192_v2 = vld [vmem:[%s175_s26 + $0x20] sm:$0xff] (%p50_p3)  ;;  %189 = vst [vmem:[%s169_s27] sm:$0xff] (%p50_p3), %v188_v0  ;;  %191 = vst [vmem:[%s169_s27 + $0x8] sm:$0xff] (%p50_p3), %v190_v1  ;;  %v194_v3 = vld [vmem:[%s175_s26 + $0x28] sm:$0xff] (%p50_p3) }
  0x13   : > { %193 = vst [vmem:[%s169_s27 + $0x10] sm:$0xff] (%p50_p3), %v192_v2  ;;  %v196_v4 = vld [vmem:[%s175_s26 + $0x40] sm:$0xff] (%p50_p3)  ;;  %v198_v5 = vld [vmem:[%s175_s26 + $0x48] sm:$0xff] (%p50_p3)  ;;  %195 = vst [vmem:[%s169_s27 + $0x18] sm:$0xff] (%p50_p3), %v194_v3 }
  0x14   : > { %197 = vst [vmem:[%s169_s27 + $0x20] sm:$0xff] (%p50_p3), %v196_v4  ;;  %199 = vst [vmem:[%s169_s27 + $0x28] sm:$0xff] (%p50_p3), %v198_v5  ;;  %v200_v6 = vld [vmem:[%s175_s26 + $0x60] sm:$0xff] (%p50_p3)  ;;  %v202_v7 = vld [vmem:[%s175_s26 + $0x68] sm:$0xff] (%p50_p3) }
  0x15   : > { %201 = vst [vmem:[%s169_s27 + $0x30] sm:$0xff] %v200_v6  ;;  %203 = vst [vmem:[%s169_s27 + $0x38] sm:$0xff] %v202_v7 }
  0x16 PF: > { %p871_p6 = scmp.ge.s32.totalorder %s1121_s16, 1  ;;  %p220_p7 = scmp.lt.s32.totalorder %s1121_s16, 3 }
  0x18   : > { %p221_p8 = pnand %p871_p6, %p220_p7 }
  0x19   : > { %s227_s28 = sand.u32 (!%p221_p8), 1, %s1105_s12   ;;  %s873_s29 = sshll.u32 (!%p221_p8), %s1113_s14, 6 }
  0x1a   : > { %224 = sbr.rel (%p221_p8) target bundleno = 319 (0x13f), region = 51  ;;  %s872_s30 = sshll.u32 (!%p221_p8), %s227_s28, 6 }
  0x1b   : > { %p267_p9 = scmp.lt.s32.totalorder (!%p221_p8), %s873_s29, 127  ;;  %s1196_s8 = scalar_lea.vmem (!%p221_p8), [#allocation3], %s872_s30 }
  0x1c   : > { %p875_p10 = scmp.ne.s32.totalorder (!%p221_p8), %s1113_s14, 0 }
  0x21   : > { %s1275_s29 = smov (!%p267_p9, %s873_s29), 127  ;;  %291 = sbr.rel (%p875_p10) target bundleno = 40 (0x28), region = 59 }
  0x22   : > { %s874_s4 = sshll.u32 %s1275_s29, 2  ;;  %v1123_v8 = vmov (!%p875_p10), 0.0  }
  0x23   : > { %s1194_s7 = scalar_lea.vmem %s1265_s1, %s874_s4  ;;  %292 = vst [vmem:[#allocation2] sm:$0xff] (!%p875_p10), %v1123_v8  ;;  %293 = vst [vmem:[#allocation2 + $0x8] sm:$0xff] (!%p875_p10), %v1123_v8 }
  0x24   : > { %294 = vst [vmem:[#allocation2 + $0x10] sm:$0xff] (!%p875_p10), %v1123_v8  ;;  %295 = vst [vmem:[#allocation2 + $0x18] sm:$0xff] (!%p875_p10), %v1123_v8 }
  0x28 PF: > { %v1039_v9 = vld [vmem:[%s1194_s7 + $0x40] sm:$0xff]   ;;  %v1043_v13 = vld [vmem:[%s1194_s7 + $0x48] sm:$0xff]   ;;  %v1047_v17 = vld [vmem:[%s1194_s7 + $0x50] sm:$0xff]   ;;  %p916_p11 = scmp.ne.s32.totalorder %s1113_s14, 1 }
  0x29   : > { %v1040_v10 = vld [vmem:[%s1194_s7 + $0xc0] sm:$0xff]   ;;  %942 = vmatprep.subr.bf16.mxu0 %v1039_v9  ;;  %v1044_v14 = vld [vmem:[%s1194_s7 + $0xc8] sm:$0xff]   ;;  %v1048_v18 = vld [vmem:[%s1194_s7 + $0xd0] sm:$0xff]  }
  0x2a   : > { %v1041_v11 = vld [vmem:[%s1194_s7] sm:$0xff]   ;;  %970 = vmatprep.subr.bf16.mxu1 %v1040_v10  ;;  %v1045_v15 = vld [vmem:[%s1194_s7 + $0x8] sm:$0xff]   ;;  %v1049_v19 = vld [vmem:[%s1194_s7 + $0x10] sm:$0xff]  }
  0x2b   : > { %v1042_v12 = vld [vmem:[%s1194_s7 + $0x80] sm:$0xff]   ;;  %943 = vmatpush3.bf16.msra.mxu0 %v1041_v11  ;;  %v1046_v16 = vld [vmem:[%s1194_s7 + $0x88] sm:$0xff]   ;;  %v1050_v20 = vld [vmem:[%s1194_s7 + $0x90] sm:$0xff]  }
  0x2c   : > { %971 = vmatpush3.bf16.msra.mxu1 %v1042_v12  ;;  %944 = vmatprep.subr.bf16.mxu0 %v1043_v13  ;;  %v1051_v21 = vld [vmem:[%s1194_s7 + $0x58] sm:$0xff]   ;;  %v1055_v25 = vld [vmem:[%s1194_s7 + $0x60] sm:$0xff]   ;;  %v1059_v29 = vld [vmem:[%s1194_s7 + $0x68] sm:$0xff]  }
  0x2d   : > { %972 = vmatprep.subr.bf16.mxu1 %v1044_v14  ;;  %v1052_v22 = vld [vmem:[%s1194_s7 + $0xd8] sm:$0xff]   ;;  %v1056_v26 = vld [vmem:[%s1194_s7 + $0xe0] sm:$0xff]   ;;  %v1060_v30 = vld [vmem:[%s1194_s7 + $0xe8] sm:$0xff]  }
  0x2e   : > { %v1053_v23 = vld [vmem:[%s1194_s7 + $0x18] sm:$0xff]   ;;  %v1057_v27 = vld [vmem:[%s1194_s7 + $0x20] sm:$0xff]   ;;  %v1061_v31 = vld [vmem:[%s1194_s7 + $0x28] sm:$0xff]  }
  0x2f   : > { %945 = vmatpush3.bf16.msra.mxu0 %v1045_v15  ;;  %v1054_v24 = vld [vmem:[%s1194_s7 + $0x98] sm:$0xff]   ;;  %v1058_v28 = vld [vmem:[%s1194_s7 + $0xa0] sm:$0xff]   ;;  %v1062_v32 = vld [vmem:[%s1194_s7 + $0xa8] sm:$0xff]  }
  0x30   : > { %973 = vmatpush3.bf16.msra.mxu1 %v1046_v16  ;;  %946 = vmatprep.subr.bf16.mxu0 %v1047_v17  ;;  %v1063_v33 = vld [vmem:[%s1194_s7 + $0x70] sm:$0xff]   ;;  %v1067_v37 = vld [vmem:[%s1194_s7 + $0x78] sm:$0xff]   ;;  %v296_v58 = vld [vmem:[#allocation2] sm:$0xff] }
  0x31   : > { %974 = vmatprep.subr.bf16.mxu1 %v1048_v18  ;;  %v1064_v34 = vld [vmem:[%s1194_s7 + $0xf0] sm:$0xff]   ;;  %v1068_v38 = vld [vmem:[%s1194_s7 + $0xf8] sm:$0xff]   ;;  %v297_v63 = vld [vmem:[#allocation2 + $0x8] sm:$0xff] }
  0x32   : > { %v1065_v35 = vld [vmem:[%s1194_s7 + $0x30] sm:$0xff]   ;;  %v1069_v39 = vld [vmem:[%s1194_s7 + $0x38] sm:$0xff]  }
  0x33   : > { %947 = vmatpush3.bf16.msra.mxu0 %v1049_v19  ;;  %v1066_v36 = vld [vmem:[%s1194_s7 + $0xb0] sm:$0xff]   ;;  %v1070_v40 = vld [vmem:[%s1194_s7 + $0xb8] sm:$0xff]  }
  0x34   : > { %975 = vmatpush3.bf16.msra.mxu1 %v1050_v20  ;;  %948 = vmatprep.subr.bf16.mxu0 %v1051_v21  ;;  %v1071_v41 = vld [vmem:[%s1196_s8] ss:$16 sps:$4 sm:$0xff]   ;;  %v1073_v42 = vld [vmem:[%s1196_s8 + $0x4] ss:$16 sps:$4 sm:$0xff]   ;;  %v1074_v43 = vld [vmem:[%s1196_s8 + $0x8] ss:$16 sps:$4 sm:$0xff]  }
  0x35   : > { %976 = vmatprep.subr.bf16.mxu1 %v1052_v22  ;;  %v1076_v44 = vld [vmem:[%s1196_s8 + $0xc] ss:$16 sps:$4 sm:$0xff]   ;;  %636 = vmatprep.mubr.bf16.mxu0 %v1073_v42  ;;  %v1077_v45 = vld [vmem:[%s1196_s8 + $0x24] ss:$16 sps:$4 sm:$0xff]   ;;  %v1081_v47 = vld [vmem:[%s1196_s8 + $0x20] ss:$16 sps:$4 sm:$0xff]  }
  0x36   : > { %685 = vmatprep.mubr.bf16.mxu1 %v1076_v44  ;;  %v1079_v46 = vld [vmem:[%s1196_s8 + $0x2c] ss:$16 sps:$4 sm:$0xff]   ;;  %v1082_v48 = vld [vmem:[%s1196_s8 + $0x28] ss:$16 sps:$4 sm:$0xff]   ;;  %v298_v12 = vld [vmem:[#allocation2 + $0x10] sm:$0xff] }
  0x37   : > { %949 = vmatpush3.bf16.msra.mxu0 %v1053_v23  ;;  %v299_v17 = vld [vmem:[#allocation2 + $0x18] sm:$0xff]  ;;  %v917_v23 = vld [vmem:[%s1266_s2] ss:$0 sm:$0xff] (!%p916_p11) }
  0x38   : > { %977 = vmatpush3.bf16.msra.mxu1 %v1054_v24  ;;  %950 = vmatprep.subr.bf16.mxu0 %v1055_v25 }
  0x39   : > { %978 = vmatprep.subr.bf16.mxu1 %v1056_v26 }
  0x3b   : > { %951 = vmatpush3.bf16.msra.mxu0 %v1057_v27 }
  0x3c   : > { %979 = vmatpush3.bf16.msra.mxu1 %v1058_v28  ;;  %952 = vmatprep.subr.bf16.mxu0 %v1059_v29 }
  0x3d   : > { %980 = vmatprep.subr.bf16.mxu1 %v1060_v30 }
  0x3f   : > { %953 = vmatpush3.bf16.msra.mxu0 %v1061_v31 }
  0x40   : > { %981 = vmatpush3.bf16.msra.mxu1 %v1062_v32  ;;  %954 = vmatprep.subr.bf16.mxu0 %v1063_v33 }
  0x41   : > { %982 = vmatprep.subr.bf16.mxu1 %v1064_v34 }
  0x43   : > { %955 = vmatpush3.bf16.msra.mxu0 %v1065_v35 }
  0x44   : > { %983 = vmatpush3.bf16.msra.mxu1 %v1066_v36  ;;  %956 = vmatprep.subr.bf16.mxu0 %v1067_v37 }
  0x45   : > { %984 = vmatprep.subr.bf16.mxu1 %v1068_v38 }
  0x47   : > { %957 = vmatpush3.bf16.msra.mxu0 %v1069_v39 }
  0x48   : > { %985 = vmatpush3.bf16.msra.mxu1 %v1070_v40 }
  0x4a   : > { %637 = vmatmul.mubr.bf16.vlgmr.msra.gmra.mrb[0].mxu0 %v1071_v41 }
  0x4b   : > { %686 = vmatmul.mubr.bf16.vlgmr.msra.gmra.mrb[0].mxu1 %v1074_v43  ;;  %644 = vmatprep.mubr.bf16.mxu0 %v1077_v45 }
  0x4c   : > { %693 = vmatprep.mubr.bf16.mxu1 %v1079_v46 }
  0x52   : > { %645 = vmatmul.mubr.bf16.gmra.mrb[4].mxu0 %v1081_v47 }
  0x53   : > { %694 = vmatmul.mubr.bf16.gmra.mrb[4].mxu1 %v1082_v48 }
 0x11d   : > { %v958_v49 = vpop.f32.mrb[0].mxu0 }
 0x11e   : > { %v986_v50 = vpop.f32.mrb[0].mxu1  ;;  %v959_v51 = vpop.f32.mrb[1].mxu0 }
 0x11f   : > { %v960_v52 = vadd.f32 %v959_v51, %v958_v49  ;;  %v987_v53 = vpop.f32.mrb[1].mxu1  ;;  %v961_v54 = vpop.f32.mrb[2].mxu0 }
 0x120   : > { %v988_v55 = vadd.f32 %v987_v53, %v986_v50  ;;  %v989_v56 = vpop.f32.mrb[2].mxu1  ;;  %v962_v57 = vpop.f32.mrb[3].mxu0 }
 0x121   : > { %v963_v59 = vadd.f32 %v962_v57, %v961_v54  ;;  %v990_v60 = vpop.f32.mrb[3].mxu1 }
 0x122   : > { %v688_v61 = vadd.f32 %v988_v55, %v960_v52  ;;  %v991_v62 = vadd.f32 %v990_v60, %v989_v56 }
 0x124   : > { %v702_v0 = vadd.f32 %v688_v61, %v296_v58  ;;  %v691_v1 = vadd.f32 %v991_v62, %v963_v59 }
 0x125   : > { %v964_v2 = vpop.f32.mrb[4].mxu0 }
 0x126   : > { %706 = vst [vmem:[#allocation2] sm:$0xff] %v702_v0  ;;  %v703_v3 = vadd.f32 %v691_v1, %v297_v63  ;;  %v992_v4 = vpop.f32.mrb[4].mxu1  ;;  %v965_v5 = vpop.f32.mrb[5].mxu0 }
 0x127   : > { %v966_v6 = vadd.f32 %v965_v5, %v964_v2  ;;  %v993_v7 = vpop.f32.mrb[5].mxu1  ;;  %v967_v8 = vpop.f32.mrb[6].mxu0 }
 0x128   : > { %707 = vst [vmem:[#allocation2 + $0x8] sm:$0xff] %v703_v3  ;;  %v994_v9 = vadd.f32 %v993_v7, %v992_v4  ;;  %v995_v10 = vpop.f32.mrb[6].mxu1  ;;  %v968_v11 = vpop.f32.mrb[7].mxu0 }
 0x129   : > { %v969_v13 = vadd.f32 %v968_v11, %v967_v8  ;;  %v996_v14 = vpop.f32.mrb[7].mxu1 }
 0x12a   : > { %v696_v15 = vadd.f32 %v994_v9, %v966_v6  ;;  %v997_v16 = vadd.f32 %v996_v14, %v995_v10  ;;  %713 = sbr.rel (%p916_p11) target bundleno = 319 (0x13f), region = 63 }
 0x12c   : > { %v704_v18 = vadd.f32 %v696_v15, %v298_v12  ;;  %v699_v19 = vadd.f32 %v997_v16, %v969_v13 }
 0x12d   : > { %v714_v21 = vld [vmem:[#allocation2] sm:$0xff] (!%p916_p11) }
 0x12e   : > { %708 = vst [vmem:[#allocation2 + $0x10] sm:$0xff] %v704_v18  ;;  %v705_v20 = vadd.f32 %v699_v19, %v299_v17  ;;  %v725_v24 = vadd.f32 (!%p916_p11), %v917_v23, %v714_v21 }
 0x12f   : > { %v715_v22 = vld [vmem:[#allocation2 + $0x8] sm:$0xff] (!%p916_p11) }
 0x130   : > { %709 = vst [vmem:[#allocation2 + $0x18] sm:$0xff] %v705_v20  ;;  %v726_v25 = vadd.f32 (!%p916_p11), %v917_v23, %v715_v22  ;;  %v729_v30 = vmax.f32 (!%p916_p11), %v725_v24, 0.0 }
 0x132   : > { %v730_v31 = vmax.f32 %v726_v25, 0.0 }
 0x134   : > { %v934_v34 = vpack.c.bf16 %v730_v31, %v729_v30 }
 0x135   : > { %v716_v26 = vld [vmem:[#allocation2 + $0x10] sm:$0xff] }
 0x136   : > { %v727_v28 = vadd.f32 %v917_v23, %v716_v26  ;;  %935 = vst [vmem:[%s1267_s3] sm:$0xff] %v934_v34  }
 0x137   : > { %v717_v27 = vld [vmem:[#allocation2 + $0x18] sm:$0xff] }
 0x138   : > { %v728_v29 = vadd.f32 %v917_v23, %v717_v27  ;;  %v731_v32 = vmax.f32 %v727_v28, 0.0 }
 0x13a   : > { %v732_v33 = vmax.f32 %v728_v29, 0.0 }
 0x13c   : > { %v939_v35 = vpack.c.bf16 %v732_v33, %v731_v32 }
 0x13e   : > { %941 = vst [vmem:[%s1267_s3 + $0x8] sm:$0xff] %v939_v35  }
 0x13f PF: > { %s13_s16 = sadd.s32 1, %s1121_s16   ;;  %s1268_s12 = smov %s1109_s13 }
 0x140   : > { %p10_p12 = scmp.ge.s32.totalorder %s13_s16, 4   ;;  %s1269_s13 = smov %s1179_s20 }
 0x141   : > { %s1270_s14 = smov %s1117_s15  ;;  %s1271_s15 = smov %s1273_s17 }
 0x142   :  { %12 = sbr.rel (!%p10_p12) target bundleno = 3 (0x3), region = 104 }

// kernel: vae_forward.20
= control target key start
LH: loop header
LB: loop body
LE: loop exit
PB: predicated region body
PF: predicated region fallthrough
CT: control target
= control target key end

     0   :  { %s1056_s18 = smov 0   ;;  %s1171_s0 = inlined_call_operand.vmem [shape: bf16[2,2048], index: 0, kind: input, shape index: {}]   ;;  %s1172_s1 = inlined_call_operand.vmem [shape: bf16[2048,256], index: 1, kind: input, shape index: {}]   ;;  %s1173_s2 = inlined_call_operand.vmem [shape: f32[1,256], index: 2, kind: input, shape index: {}]   ;;  %s1174_s3 = inlined_call_operand.vmem [shape: f32[2,128], index: 3, kind: input, shape index: {}]   ;;  %s1175_s4 = inlined_call_operand.vmem [shape: f32[2,256], index: 4, kind: output, shape index: {0}]   ;;  %s1176_s5 = inlined_call_operand.vmem [shape: f32[2,128], index: 5, kind: output, shape index: {1}]  }
   0x1 LB: > { %s1062_s19 = sadd.s32 4294967295, %s1021_s18   ;;  %p829_p0 = scmp.ge.s32.totalorder %s1021_s18, 1  ;;  %s1021_s18 = sphi %s1056_s18, %s16_s18  }
   0x2   : > { %p192_p1 = scmp.lt.s32.totalorder %s1021_s18, 5 }
   0x4   : > { %p193_p2 = pnand %p829_p0, %p192_p1 }
   0x5   : > { %s830_s20 = sshll.u32 (!%p193_p2), %s1062_s19, 2  ;;  %s831_s21 = sshll.u32 (!%p193_p2), %s1062_s19, 6 }
   0x6   : > { %196 = sbr.rel (%p193_p2) target bundleno = 341 (0x155), region = 36  ;;  %p221_p3 = scmp.lt.s32.totalorder (!%p193_p2), %s830_s20, 15 }
   0x7   : > { %p226_p4 = scmp.lt.s32.totalorder (!%p193_p2), %s831_s21, 255  ;;  %p834_p5 = scmp.ne.s32.totalorder (!%p193_p2), %s1062_s19, 0 }
   0xd   : > { %s1178_s20 = smov (!%p221_p3, %s830_s20), 15  ;;  %s1180_s21 = smov (!%p226_p4, %s831_s21), 255 }
   0xe   : > { %s223_s24 = scalar_lea.vmem %s1171_s0, %s1178_s20  ;;  %s903_s25 = sshll.u32 %s1180_s21, 3  ;;  %v1023_v0 = vmov (!%p834_p5), 0.0  }
   0xf   : > { %s1077_s28 = scalar_lea.vmem %s1172_s1, %s903_s25  ;;  %235 = sbr.rel (%p834_p5) target bundleno = 22 (0x16), region = 40  ;;  %236 = vst [vmem:[#allocation2] sm:$0xf] (!%p834_p5), %v1023_v0 }
  0x16 PF: > { %v917_v1 = vld [vmem:[%s1077_s28 + $0x4] ss:$8 sps:$4 sm:$0xff]   ;;  %v921_v3 = vld [vmem:[%s1077_s28] ss:$8 sps:$4 sm:$0xff]   ;;  %v923_v5 = vld [vmem:[%s1077_s28 + $0x14] ss:$8 sps:$4 sm:$0xff]   ;;  %v315_v41 = vlaneseq }
  0x17   : > { %v919_v2 = vld [vmem:[%s1077_s28 + $0x104] ss:$8 sps:$4 sm:$0xff]   ;;  %652 = vmatprep.subr.bf16.mxu1 %v917_v1  ;;  %v922_v4 = vld [vmem:[%s1077_s28 + $0x100] ss:$8 sps:$4 sm:$0xff]   ;;  %v925_v6 = vld [vmem:[%s1077_s28 + $0x114] ss:$8 sps:$4 sm:$0xff]  }
  0x18   : > { %693 = vmatprep.subr.bf16.mxu0 %v919_v2  ;;  %653 = vmatpush1.bf16.msra.mxu1 %v921_v3  ;;  %v927_v7 = vld [vmem:[%s1077_s28 + $0x10] ss:$8 sps:$4 sm:$0xff]   ;;  %v929_v9 = vld [vmem:[%s1077_s28 + $0x24] ss:$8 sps:$4 sm:$0xff]   ;;  %v933_v11 = vld [vmem:[%s1077_s28 + $0x20] ss:$8 sps:$4 sm:$0xff]  }
  0x19   : > { %694 = vmatpush1.bf16.msra.mxu0 %v922_v4  ;;  %654 = vmatprep.subr.bf16.mxu1 %v923_v5  ;;  %v928_v8 = vld [vmem:[%s1077_s28 + $0x110] ss:$8 sps:$4 sm:$0xff]   ;;  %v931_v10 = vld [vmem:[%s1077_s28 + $0x124] ss:$8 sps:$4 sm:$0xff]   ;;  %v934_v12 = vld [vmem:[%s1077_s28 + $0x120] ss:$8 sps:$4 sm:$0xff]  }
  0x1a   : > { %695 = vmatprep.subr.bf16.mxu0 %v925_v6  ;;  %v935_v13 = vld [vmem:[%s1077_s28 + $0x34] ss:$8 sps:$4 sm:$0xff]   ;;  %v939_v15 = vld [vmem:[%s1077_s28 + $0x30] ss:$8 sps:$4 sm:$0xff]   ;;  %v941_v17 = vld [vmem:[%s1077_s28 + $0x44] ss:$8 sps:$4 sm:$0xff]  }
  0x1b   : > { %v937_v14 = vld [vmem:[%s1077_s28 + $0x134] ss:$8 sps:$4 sm:$0xff]   ;;  %v940_v16 = vld [vmem:[%s1077_s28 + $0x130] ss:$8 sps:$4 sm:$0xff]   ;;  %v943_v18 = vld [vmem:[%s1077_s28 + $0x144] ss:$8 sps:$4 sm:$0xff]  }
  0x1c   : > { %655 = vmatpush1.bf16.msra.mxu1 %v927_v7  ;;  %v945_v19 = vld [vmem:[%s1077_s28 + $0x40] ss:$8 sps:$4 sm:$0xff]   ;;  %v947_v21 = vld [vmem:[%s1077_s28 + $0x54] ss:$8 sps:$4 sm:$0xff]   ;;  %v951_v23 = vld [vmem:[%s1077_s28 + $0x50] ss:$8 sps:$4 sm:$0xff]  }
  0x1d   : > { %696 = vmatpush1.bf16.msra.mxu0 %v928_v8  ;;  %656 = vmatprep.subr.bf16.mxu1 %v929_v9  ;;  %v946_v20 = vld [vmem:[%s1077_s28 + $0x140] ss:$8 sps:$4 sm:$0xff]   ;;  %v949_v22 = vld [vmem:[%s1077_s28 + $0x154] ss:$8 sps:$4 sm:$0xff]   ;;  %v952_v24 = vld [vmem:[%s1077_s28 + $0x150] ss:$8 sps:$4 sm:$0xff]  }
  0x1e   : > { %697 = vmatprep.subr.bf16.mxu0 %v931_v10  ;;  %v953_v25 = vld [vmem:[%s1077_s28 + $0x64] ss:$8 sps:$4 sm:$0xff]   ;;  %v957_v27 = vld [vmem:[%s1077_s28 + $0x60] ss:$8 sps:$4 sm:$0xff]   ;;  %v959_v29 = vld [vmem:[%s1077_s28 + $0x74] ss:$8 sps:$4 sm:$0xff]  }
  0x1f   : > { %v955_v26 = vld [vmem:[%s1077_s28 + $0x164] ss:$8 sps:$4 sm:$0xff]   ;;  %v958_v28 = vld [vmem:[%s1077_s28 + $0x160] ss:$8 sps:$4 sm:$0xff]   ;;  %v961_v30 = vld [vmem:[%s1077_s28 + $0x174] ss:$8 sps:$4 sm:$0xff]  }
  0x20   : > { %657 = vmatpush1.bf16.msra.mxu1 %v933_v11  ;;  %v963_v31 = vld [vmem:[%s1077_s28 + $0x70] ss:$8 sps:$4 sm:$0xff]   ;;  %v965_v33 = vld [vmem:[%s1077_s28 + $0x84] ss:$8 sps:$4 sm:$0xff]   ;;  %v969_v35 = vld [vmem:[%s1077_s28 + $0x80] ss:$8 sps:$4 sm:$0xff]  }
  0x21   : > { %698 = vmatpush1.bf16.msra.mxu0 %v934_v12  ;;  %658 = vmatprep.subr.bf16.mxu1 %v935_v13  ;;  %v964_v32 = vld [vmem:[%s1077_s28 + $0x170] ss:$8 sps:$4 sm:$0xff]   ;;  %v967_v34 = vld [vmem:[%s1077_s28 + $0x184] ss:$8 sps:$4 sm:$0xff]   ;;  %v970_v36 = vld [vmem:[%s1077_s28 + $0x180] ss:$8 sps:$4 sm:$0xff]  }
  0x22   : > { %699 = vmatprep.subr.bf16.mxu0 %v937_v14  ;;  %v971_v37 = vld [vmem:[%s1077_s28 + $0x94] ss:$8 sps:$4 sm:$0xff]   ;;  %v1024_v39 = vmov 1966171168   ;;  %v975_v42 = vld [vmem:[%s1077_s28 + $0x90] ss:$8 sps:$4 sm:$0xff]  }
  0x23   : > { %v973_v38 = vld [vmem:[%s1077_s28 + $0x194] ss:$8 sps:$4 sm:$0xff]   ;;  %v313_v40 = vunpack.c.l.s4 %v1024_v39  ;;  %v976_v43 = vld [vmem:[%s1077_s28 + $0x190] ss:$8 sps:$4 sm:$0xff]   ;;  %v977_v44 = vld [vmem:[%s1077_s28 + $0xa4] ss:$8 sps:$4 sm:$0xff]  }
  0x24   : > { %659 = vmatpush1.bf16.msra.mxu1 %v939_v15  ;;  %v979_v45 = vld [vmem:[%s1077_s28 + $0x1a4] ss:$8 sps:$4 sm:$0xff]   ;;  %v1122_v47 = vshrl.u32 %v315_v41, 7  ;;  %v981_v48 = vld [vmem:[%s1077_s28 + $0xa0] ss:$8 sps:$4 sm:$0xff]   ;;  %p900_p6 = scmp.ne.s32.totalorder %s1062_s19, 3 }
  0x25   : > { %700 = vmatpush1.bf16.msra.mxu0 %v940_v16  ;;  %660 = vmatprep.subr.bf16.mxu1 %v941_v17  ;;  %v314_v46 = vunpack.c.0.s8 %v313_v40  ;;  %v982_v49 = vld [vmem:[%s1077_s28 + $0x1a0] ss:$8 sps:$4 sm:$0xff]   ;;  %v983_v50 = vld [vmem:[%s1077_s28 + $0xb4] ss:$8 sps:$4 sm:$0xff]   ;;  %v987_v54 = vld [vmem:[%s1077_s28 + $0xb0] ss:$8 sps:$4 sm:$0xff]  }
  0x26   : > { %701 = vmatprep.subr.bf16.mxu0 %v943_v18  ;;  %v985_v51 = vld [vmem:[%s1077_s28 + $0x1b4] ss:$8 sps:$4 sm:$0xff]   ;;  %v835_v53 = vld.sshfl [vmem:[%s223_s24] sm:$0x33 pattern:$0x75316420] }
  0x27   : > { %v317_v52 = vsub.s32 %v314_v46, %v1122_v47  ;;  %v988_v55 = vld [vmem:[%s1077_s28 + $0x1b0] ss:$8 sps:$4 sm:$0xff]   ;;  %v311_v56 = vcombine.high %v835_v53, %v835_v53  ;;  %v989_v57 = vld [vmem:[%s1077_s28 + $0xc4] ss:$8 sps:$4 sm:$0xff]   ;;  %v993_v60 = vld [vmem:[%s1077_s28 + $0xc0] ss:$8 sps:$4 sm:$0xff]  }
  0x28   : > { %661 = vmatpush1.bf16.msra.mxu1 %v945_v19  ;;  %v991_v58 = vld [vmem:[%s1077_s28 + $0x1c4] ss:$8 sps:$4 sm:$0xff]   ;;  %v994_v61 = vld [vmem:[%s1077_s28 + $0x1c0] ss:$8 sps:$4 sm:$0xff]   ;;  %v995_v63 = vld [vmem:[%s1077_s28 + $0xd4] ss:$8 sps:$4 sm:$0xff]  }
  0x29   : > { %702 = vmatpush1.bf16.msra.mxu0 %v946_v20  ;;  %662 = vmatprep.subr.bf16.mxu1 %v947_v21  ;;  %v325_v59 = vrot.slane %v311_v56, %v317_v52  ;;  %v997_v0 = vld [vmem:[%s1077_s28 + $0x1d4] ss:$8 sps:$4 sm:$0xff]   ;;  %v999_v1 = vld [vmem:[%s1077_s28 + $0xd0] ss:$8 sps:$4 sm:$0xff]   ;;  %v1001_v3 = vld [vmem:[%s1077_s28 + $0xe4] ss:$8 sps:$4 sm:$0xff]   ;;  %v318_v9 = vrot.slane %v835_v53, %v317_v52 }
  0x2a   : > { %703 = vmatprep.subr.bf16.mxu0 %v949_v22  ;;  %v1000_v2 = vld [vmem:[%s1077_s28 + $0x1d0] ss:$8 sps:$4 sm:$0xff]   ;;  %v1003_v4 = vld [vmem:[%s1077_s28 + $0x1e4] ss:$8 sps:$4 sm:$0xff]   ;;  %v1005_v5 = vld [vmem:[%s1077_s28 + $0xe0] ss:$8 sps:$4 sm:$0xff]  }
  0x2b   : > { %v327_v62 = vcombine.high %v325_v59, %v325_v59  ;;  %684 = vmatprep.mubr.bf16.mxu1 %v325_v59  ;;  %v1006_v6 = vld [vmem:[%s1077_s28 + $0x1e0] ss:$8 sps:$4 sm:$0xff]   ;;  %v1007_v7 = vld [vmem:[%s1077_s28 + $0xf4] ss:$8 sps:$4 sm:$0xff]   ;;  %v1011_v10 = vld [vmem:[%s1077_s28 + $0xf0] ss:$8 sps:$4 sm:$0xff]   ;;  %v326_v12 = vcombine.high %v318_v9, %v318_v9 }
  0x2c   : > { %663 = vmatpush1.bf16.msra.mxu1 %v951_v23  ;;  %v1009_v8 = vld [vmem:[%s1077_s28 + $0x1f4] ss:$8 sps:$4 sm:$0xff]   ;;  %v1012_v11 = vld [vmem:[%s1077_s28 + $0x1f0] ss:$8 sps:$4 sm:$0xff]   ;;  %v1025_v13 = vmov 1983009808  }
  0x2d   : > { %704 = vmatpush1.bf16.msra.mxu0 %v952_v24  ;;  %664 = vmatprep.subr.bf16.mxu1 %v953_v25  ;;  %v738_v14 = vunpack.c.l.s4 %v1025_v13 }
  0x2e   : > { %705 = vmatprep.subr.bf16.mxu0 %v955_v26  ;;  %725 = vmatprep.mubr.bf16.mxu0 %v327_v62 }
  0x2f   : > { %v739_v15 = vunpack.c.0.s8 %v738_v14 }
  0x30   : > { %665 = vmatpush1.bf16.msra.mxu1 %v957_v27 }
  0x31   : > { %706 = vmatpush1.bf16.msra.mxu0 %v958_v28  ;;  %666 = vmatprep.subr.bf16.mxu1 %v959_v29  ;;  %v742_v22 = vsub.s32 %v739_v15, %v1122_v47  ;;  %v237_v28 = vld [vmem:[#allocation2] sm:$0xf] }
  0x32   : > { %707 = vmatprep.subr.bf16.mxu0 %v961_v30 }
  0x34   : > { %667 = vmatpush1.bf16.msra.mxu1 %v963_v31  ;;  %v752_v31 = vld [vmem:[%s1173_s2] sm:$0x3] (!%p900_p6) }
  0x35   : > { %708 = vmatpush1.bf16.msra.mxu0 %v964_v32  ;;  %668 = vmatprep.subr.bf16.mxu1 %v965_v33  ;;  %v756_v32 = vsub.s32 (!%p900_p6), 0, %v1122_v47  ;;  %v760_v33 = vsub.s32 (!%p900_p6), 1, %v1122_v47 }
  0x36   : > { %709 = vmatprep.subr.bf16.mxu0 %v967_v34 }
  0x37   : > { %v757_v34 = vrot.slane (!%p900_p6), %v752_v31, %v756_v32 }
  0x38   : > { %669 = vmatpush1.bf16.msra.mxu1 %v969_v35  ;;  %v761_v35 = vrot.slane (!%p900_p6), %v752_v31, %v760_v33 }
  0x39   : > { %710 = vmatpush1.bf16.msra.mxu0 %v970_v36  ;;  %670 = vmatprep.subr.bf16.mxu1 %v971_v37 }
  0x3a   : > { %711 = vmatprep.subr.bf16.mxu0 %v973_v38  ;;  %v762_v36 = vcombine.low (!%p900_p6), %v757_v34, %v761_v35 }
  0x3c   : > { %671 = vmatpush1.bf16.msra.mxu1 %v975_v42  ;;  %v769_v38 = vrot.slane (!%p900_p6), %v762_v36, %v742_v22 }
  0x3d   : > { %712 = vmatpush1.bf16.msra.mxu0 %v976_v43  ;;  %672 = vmatprep.subr.bf16.mxu1 %v977_v44  ;;  %v773_v43 = vld [vmem:[%s1174_s3] sm:$0x3] (!%p900_p6) }
  0x3e   : > { %713 = vmatprep.subr.bf16.mxu0 %v979_v45 }
  0x40   : > { %673 = vmatpush1.bf16.msra.mxu1 %v981_v48 }
  0x41   : > { %714 = vmatpush1.bf16.msra.mxu0 %v982_v49  ;;  %674 = vmatprep.subr.bf16.mxu1 %v983_v50 }
  0x42   : > { %715 = vmatprep.subr.bf16.mxu0 %v985_v51 }
  0x44   : > { %675 = vmatpush1.bf16.msra.mxu1 %v987_v54 }
  0x45   : > { %716 = vmatpush1.bf16.msra.mxu0 %v988_v55  ;;  %676 = vmatprep.subr.bf16.mxu1 %v989_v57 }
  0x46   : > { %717 = vmatprep.subr.bf16.mxu0 %v991_v58 }
  0x48   : > { %677 = vmatpush1.bf16.msra.mxu1 %v993_v60 }
  0x49   : > { %718 = vmatpush1.bf16.msra.mxu0 %v994_v61  ;;  %678 = vmatprep.subr.bf16.mxu1 %v995_v63 }
  0x4a   : > { %719 = vmatprep.subr.bf16.mxu0 %v997_v0 }
  0x4c   : > { %679 = vmatpush1.bf16.msra.mxu1 %v999_v1 }
  0x4d   : > { %720 = vmatpush1.bf16.msra.mxu0 %v1000_v2  ;;  %680 = vmatprep.subr.bf16.mxu1 %v1001_v3 }
  0x4e   : > { %721 = vmatprep.subr.bf16.mxu0 %v1003_v4 }
  0x50   : > { %681 = vmatpush1.bf16.msra.mxu1 %v1005_v5 }
  0x51   : > { %722 = vmatpush1.bf16.msra.mxu0 %v1006_v6  ;;  %682 = vmatprep.subr.bf16.mxu1 %v1007_v7 }
  0x52   : > { %723 = vmatprep.subr.bf16.mxu0 %v1009_v8 }
  0x54   : > { %683 = vmatpush1.bf16.msra.mxu1 %v1011_v10 }
  0x55   : > { %724 = vmatpush1.bf16.msra.mxu0 %v1012_v11 }
  0x57   : > { %685 = vmatmul.mubr.bf16.vlgmr.msra.gmra.mrb[0].mxu1 %v318_v9 }
  0x58   : > { %726 = vmatmul.mubr.bf16.vlgmr.msra.gmra.mrb[0].mxu0 %v326_v12 }
 0x12a   : > { %v686_v16 = vpop.f32.mrb[0].mxu1 }
 0x12b   : > { %v727_v17 = vpop.f32.mrb[0].mxu0  ;;  %v688_v19 = vpop.f32.mrb[1].mxu1 }
 0x12c   : > { %v728_v18 = vadd.f32 %v727_v17, %v686_v16  ;;  %v729_v20 = vpop.f32.mrb[1].mxu0  ;;  %v690_v23 = vpop.f32.mrb[2].mxu1 }
 0x12d   : > { %v730_v21 = vadd.f32 %v729_v20, %v688_v19  ;;  %v731_v24 = vpop.f32.mrb[2].mxu0  ;;  %v691_v25 = vpop.f32.mrb[3].mxu1 }
 0x12e   : > { %v732_v26 = vpop.f32.mrb[3].mxu0 }
 0x12f   : > { %v736_v27 = vcombine.low %v728_v18, %v730_v21  ;;  %750 = sbr.rel (%p900_p6) target bundleno = 341 (0x155), region = 44 }
 0x131   : > { %v743_v29 = vrot.slane %v736_v27, %v742_v22 }
 0x133   : > { %v745_v30 = vadd.f32 %v743_v29, %v237_v28 }
 0x135   : > { %746 = vst [vmem:[#allocation2] sm:$0xf] %v745_v30 }
 0x13c   : > { %v751_v37 = vld [vmem:[#allocation2] sm:$0xf] }
 0x13d   : > { %v771_v39 = vadd.f32 %v769_v38, %v751_v37 }
 0x13f   : > { %772 = vst [vmem:[%s1175_s4] sm:$0xf] %v771_v39  ;;  %v775_v40 = vrot.slane %v771_v39, 2 }
 0x141   : > { %v777_v41 = vmul.f32 0.5, %v775_v40 }
 0x143   : > { %v778_v42 = vmul.f32 1.442695, %v777_v41 }
 0x145   : > { %1013 = vpow2.f32 %v778_v42 }
 0x14f   : > { %v1014_v44 = vpop.eup %1013 }
 0x150   : > { %v780_v45 = vmul.f32 %v1014_v44, %v773_v43 }
 0x152   : > { %v781_v46 = vadd.f32 %v780_v45, %v771_v39 }
 0x154   : > { %782 = vst [vmem:[%s1176_s5] sm:$0x3] %v781_v46 }
 0x155 PF: > { %s16_s18 = sadd.s32 1, %s1021_s18  }
 0x156   : > { %p13_p7 = scmp.ge.s32.totalorder %s16_s18, 6  }
 0x158   :  { %15 = sbr.rel (!%p13_p7) target bundleno = 1 (0x1), region = 81 }

// kernel: vae_forward.21
= control target key start
LH: loop header
LB: loop body
LE: loop exit
PB: predicated region body
PF: predicated region fallthrough
CT: control target
= control target key end

     0   :  { %s1050_s12 = smov 0   ;;  %s1052_s13 = smov 0   ;;  %s1227_s0 = inlined_call_operand.vmem [shape: bf16[2,128], index: 0, kind: input, shape index: {}]   ;;  %s1228_s1 = inlined_call_operand.vmem [shape: bf16[128,2048], index: 1, kind: input, shape index: {}]   ;;  %s1229_s2 = inlined_call_operand.vmem [shape: f32[1,2048], index: 2, kind: input, shape index: {}]   ;;  %s1230_s3 = inlined_call_operand.vmem [shape: bf16[2,2048], index: 3, kind: output, shape index: {}]  }
   0x1   :  { %s1054_s14 = smov 0   ;;  %s1056_s15 = smov 0  }
   0x2   :  { %s1058_s16 = smov 0  }
   0x3 LB: > { %s28_s17 = sadd.s32 1, %s1021_s15  ;;  %p76_p1 = scmp.ne.s32.totalorder %s1013_s13, %s1009_s12  ;;  %s1025_s16 = sphi %s1058_s16, %s13_s16   ;;  %s1021_s15 = sphi %s1056_s15, %s1234_s15   ;;  %s1017_s14 = sphi %s1054_s14, %s1233_s14   ;;  %s1013_s13 = sphi %s1052_s13, %s1232_s13   ;;  %s1009_s12 = sphi %s1050_s12, %s1231_s12  }
   0x4   : > { %p30_p0 = scmp.ge.s32.totalorder %s28_s17, 4  ;;  %p77_p2 = scmp.eq.s32.totalorder %s1025_s16, 0 }
   0x5   : > { %s69_s19 = sadd.s32 1, %s1013_s13  ;;  %p850_p5 = scmp.ge.s32.totalorder %s1025_s16, 4 }
   0x6   : > { %s1236_s17 = smov (%p30_p0, %s28_s17), 0  ;;  %p78_p3 = por %p77_p2, %p76_p1 }
   0x7   : > { %s65_s18 = ssub.s32 %s1021_s15, %s1236_s17  ;;  %165 = sbr.rel (%p850_p5) target bundleno = 34 (0x22), region = 20 }
   0x8   : > { %p67_p4 = scmp.eq.s32.totalorder %s65_s18, 0 }
   0xa   : > { %s1085_s20 = scalar_select %p67_p4, %s1013_s13, %s69_s19  }
   0xe   : > { %168 = sbr.rel (!%p78_p3) target bundleno = 34 (0x22), region = 24  ;;  %s170_s21 = sand.u32 (%p78_p3), 1, %s1013_s13  }
   0xf   : > { %s895_s22 = sshll.u32 (%p78_p3), %s1021_s15, 4  ;;  %s851_s23 = sshll.u32 (%p78_p3), %s170_s21, 8 }
  0x10   : > { %s1093_s26 = scalar_lea.vmem (%p78_p3), %s1228_s1, %s895_s22  ;;  %s1098_s27 = scalar_lea.vmem (%p78_p3), [#allocation3], %s851_s23 }
  0x11   : > { %v191_v0 = vld [vmem:[%s1093_s26] sm:$0xff] (%p78_p3)  ;;  %v193_v1 = vld [vmem:[%s1093_s26 + $0x8] sm:$0xff] (%p78_p3) }
  0x12   : > { %v195_v2 = vld [vmem:[%s1093_s26 + $0x40] sm:$0xff] (%p78_p3)  ;;  %192 = vst [vmem:[%s1098_s27] sm:$0xff] (%p78_p3), %v191_v0  ;;  %194 = vst [vmem:[%s1098_s27 + $0x8] sm:$0xff] (%p78_p3), %v193_v1  ;;  %v197_v3 = vld [vmem:[%s1093_s26 + $0x48] sm:$0xff] (%p78_p3) }
  0x13   : > { %196 = vst [vmem:[%s1098_s27 + $0x10] sm:$0xff] (%p78_p3), %v195_v2  ;;  %v199_v4 = vld [vmem:[%s1093_s26 + $0x80] sm:$0xff] (%p78_p3)  ;;  %v201_v5 = vld [vmem:[%s1093_s26 + $0x88] sm:$0xff] (%p78_p3)  ;;  %198 = vst [vmem:[%s1098_s27 + $0x18] sm:$0xff] (%p78_p3), %v197_v3 }
  0x14   : > { %200 = vst [vmem:[%s1098_s27 + $0x20] sm:$0xff] (%p78_p3), %v199_v4  ;;  %202 = vst [vmem:[%s1098_s27 + $0x28] sm:$0xff] (%p78_p3), %v201_v5  ;;  %v203_v6 = vld [vmem:[%s1093_s26 + $0xc0] sm:$0xff] (%p78_p3)  ;;  %v205_v7 = vld [vmem:[%s1093_s26 + $0xc8] sm:$0xff] (%p78_p3) }
  0x15   : > { %v207_v8 = vld [vmem:[%s1093_s26 + $0x100] sm:$0xff]  ;;  %204 = vst [vmem:[%s1098_s27 + $0x30] sm:$0xff] %v203_v6  ;;  %206 = vst [vmem:[%s1098_s27 + $0x38] sm:$0xff] %v205_v7  ;;  %v209_v9 = vld [vmem:[%s1093_s26 + $0x108] sm:$0xff] }
  0x16   : > { %208 = vst [vmem:[%s1098_s27 + $0x40] sm:$0xff] %v207_v8  ;;  %v211_v10 = vld [vmem:[%s1093_s26 + $0x140] sm:$0xff]  ;;  %v213_v11 = vld [vmem:[%s1093_s26 + $0x148] sm:$0xff]  ;;  %210 = vst [vmem:[%s1098_s27 + $0x48] sm:$0xff] %v209_v9 }
  0x17   : > { %212 = vst [vmem:[%s1098_s27 + $0x50] sm:$0xff] %v211_v10  ;;  %214 = vst [vmem:[%s1098_s27 + $0x58] sm:$0xff] %v213_v11  ;;  %v215_v12 = vld [vmem:[%s1093_s26 + $0x180] sm:$0xff]  ;;  %v217_v13 = vld [vmem:[%s1093_s26 + $0x188] sm:$0xff] }
  0x18   : > { %v219_v14 = vld [vmem:[%s1093_s26 + $0x1c0] sm:$0xff]  ;;  %216 = vst [vmem:[%s1098_s27 + $0x60] sm:$0xff] %v215_v12  ;;  %218 = vst [vmem:[%s1098_s27 + $0x68] sm:$0xff] %v217_v13  ;;  %v221_v15 = vld [vmem:[%s1093_s26 + $0x1c8] sm:$0xff] }
  0x19   : > { %220 = vst [vmem:[%s1098_s27 + $0x70] sm:$0xff] %v219_v14  ;;  %v223_v16 = vld [vmem:[%s1093_s26 + $0x200] sm:$0xff]  ;;  %v225_v17 = vld [vmem:[%s1093_s26 + $0x208] sm:$0xff]  ;;  %222 = vst [vmem:[%s1098_s27 + $0x78] sm:$0xff] %v221_v15 }
  0x1a   : > { %224 = vst [vmem:[%s1098_s27 + $0x80] sm:$0xff] %v223_v16  ;;  %226 = vst [vmem:[%s1098_s27 + $0x88] sm:$0xff] %v225_v17  ;;  %v227_v18 = vld [vmem:[%s1093_s26 + $0x240] sm:$0xff]  ;;  %v229_v19 = vld [vmem:[%s1093_s26 + $0x248] sm:$0xff] }
  0x1b   : > { %v231_v20 = vld [vmem:[%s1093_s26 + $0x280] sm:$0xff]  ;;  %228 = vst [vmem:[%s1098_s27 + $0x90] sm:$0xff] %v227_v18  ;;  %230 = vst [vmem:[%s1098_s27 + $0x98] sm:$0xff] %v229_v19  ;;  %v233_v21 = vld [vmem:[%s1093_s26 + $0x288] sm:$0xff] }
  0x1c   : > { %232 = vst [vmem:[%s1098_s27 + $0xa0] sm:$0xff] %v231_v20  ;;  %v235_v22 = vld [vmem:[%s1093_s26 + $0x2c0] sm:$0xff]  ;;  %v237_v23 = vld [vmem:[%s1093_s26 + $0x2c8] sm:$0xff]  ;;  %234 = vst [vmem:[%s1098_s27 + $0xa8] sm:$0xff] %v233_v21 }
  0x1d   : > { %236 = vst [vmem:[%s1098_s27 + $0xb0] sm:$0xff] %v235_v22  ;;  %238 = vst [vmem:[%s1098_s27 + $0xb8] sm:$0xff] %v237_v23  ;;  %v239_v24 = vld [vmem:[%s1093_s26 + $0x300] sm:$0xff]  ;;  %v241_v25 = vld [vmem:[%s1093_s26 + $0x308] sm:$0xff] }
  0x1e   : > { %v243_v26 = vld [vmem:[%s1093_s26 + $0x340] sm:$0xff]  ;;  %240 = vst [vmem:[%s1098_s27 + $0xc0] sm:$0xff] %v239_v24  ;;  %242 = vst [vmem:[%s1098_s27 + $0xc8] sm:$0xff] %v241_v25  ;;  %v245_v27 = vld [vmem:[%s1093_s26 + $0x348] sm:$0xff] }
  0x1f   : > { %244 = vst [vmem:[%s1098_s27 + $0xd0] sm:$0xff] %v243_v26  ;;  %v247_v28 = vld [vmem:[%s1093_s26 + $0x380] sm:$0xff]  ;;  %v249_v29 = vld [vmem:[%s1093_s26 + $0x388] sm:$0xff]  ;;  %246 = vst [vmem:[%s1098_s27 + $0xd8] sm:$0xff] %v245_v27 }
  0x20   : > { %248 = vst [vmem:[%s1098_s27 + $0xe0] sm:$0xff] %v247_v28  ;;  %250 = vst [vmem:[%s1098_s27 + $0xe8] sm:$0xff] %v249_v29  ;;  %v251_v30 = vld [vmem:[%s1093_s26 + $0x3c0] sm:$0xff]  ;;  %v253_v31 = vld [vmem:[%s1093_s26 + $0x3c8] sm:$0xff] }
  0x21   : > { %252 = vst [vmem:[%s1098_s27 + $0xf0] sm:$0xff] %v251_v30  ;;  %254 = vst [vmem:[%s1098_s27 + $0xf8] sm:$0xff] %v253_v31 }
  0x22 PF: > { %p854_p6 = scmp.ge.s32.totalorder %s1025_s16, 1  ;;  %p267_p7 = scmp.lt.s32.totalorder %s1025_s16, 5 }
  0x24   : > { %p268_p8 = pnand %p854_p6, %p267_p7 }
  0x25   : > { %s274_s28 = sand.u32 (!%p268_p8), 1, %s1009_s12   ;;  %v1027_v32 = vmov (!%p268_p8), 0   ;;  %v339_v1 = vld [vmem:[%s1227_s0] sm:$0x1] (!%p268_p8)  ;;  %s856_s6 = sshll.u32 (!%p268_p8), %s1017_s14, 2  ;;  %v623_v2 = vlaneseq (!%p268_p8) }
  0x26   : > { %271 = sbr.rel (%p268_p8) target bundleno = 307 (0x133), region = 51  ;;  %s855_s29 = sshll.u32 (!%p268_p8), %s274_s28, 8  ;;  %564 = vmatprep.mubr.bf16.mxu0 (!%p268_p8), %v1027_v32  ;;  %605 = vmatprep.mubr.bf16.mxu1 (!%p268_p8), %v1027_v32  ;;  %v1028_v4 = vmov (!%p268_p8), 1983009808  }
  0x27   : > { %s1164_s30 = scalar_lea.vmem (!%p268_p8), [#allocation3], %s855_s29  ;;  %p319_p9 = scmp.lt.s32.totalorder (!%p268_p8), %s856_s6, 15  ;;  %v624_v3 = vshrl.u32 (!%p268_p8), %v623_v2, 7  ;;  %v621_v5 = vunpack.c.l.s4 (!%p268_p8), %v1028_v4 }
  0x28   : > { %v939_v33 = vld [vmem:[%s1164_s30 + $0x4] ss:$16 sps:$4 sm:$0xff] (!%p268_p8)   ;;  %v941_v34 = vld [vmem:[%s1164_s30 + $0xc] ss:$16 sps:$4 sm:$0xff] (!%p268_p8)   ;;  %v943_v35 = vld [vmem:[%s1164_s30] ss:$16 sps:$4 sm:$0xff] (!%p268_p8)  }
  0x29   : > { %532 = vmatprep.subr.bf16.mxu0 (!%p268_p8), %v939_v33  ;;  %v944_v36 = vld [vmem:[%s1164_s30 + $0x8] ss:$16 sps:$4 sm:$0xff] (!%p268_p8)   ;;  %573 = vmatprep.subr.bf16.mxu1 (!%p268_p8), %v941_v34  ;;  %v945_v37 = vld [vmem:[%s1164_s30 + $0x24] ss:$16 sps:$4 sm:$0xff] (!%p268_p8)   ;;  %v947_v38 = vld [vmem:[%s1164_s30 + $0x2c] ss:$16 sps:$4 sm:$0xff] (!%p268_p8)   ;;  %v622_v11 = vunpack.c.0.s8 (!%p268_p8), %v621_v5 }
  0x2a   : > { %533 = vmatpush1.bf16.msra.mxu0 (!%p268_p8), %v943_v35  ;;  %574 = vmatpush1.bf16.msra.mxu1 (!%p268_p8), %v944_v36  ;;  %v949_v39 = vld [vmem:[%s1164_s30 + $0x20] ss:$16 sps:$4 sm:$0xff] (!%p268_p8)   ;;  %v950_v40 = vld [vmem:[%s1164_s30 + $0x28] ss:$16 sps:$4 sm:$0xff] (!%p268_p8)   ;;  %v951_v41 = vld [vmem:[%s1164_s30 + $0x44] ss:$16 sps:$4 sm:$0xff] (!%p268_p8)  }
  0x2b   : > { %534 = vmatprep.subr.bf16.mxu0 (!%p268_p8), %v945_v37  ;;  %575 = vmatprep.subr.bf16.mxu1 (!%p268_p8), %v947_v38  ;;  %v953_v42 = vld [vmem:[%s1164_s30 + $0x4c] ss:$16 sps:$4 sm:$0xff] (!%p268_p8)   ;;  %v955_v43 = vld [vmem:[%s1164_s30 + $0x40] ss:$16 sps:$4 sm:$0xff] (!%p268_p8)   ;;  %v956_v44 = vld [vmem:[%s1164_s30 + $0x48] ss:$16 sps:$4 sm:$0xff] (!%p268_p8)   ;;  %v625_v16 = vsub.s32 (!%p268_p8), %v622_v11, %v624_v3 }
  0x2c   : > { %v957_v45 = vld [vmem:[%s1164_s30 + $0x64] ss:$16 sps:$4 sm:$0xff] (!%p268_p8)   ;;  %v959_v46 = vld [vmem:[%s1164_s30 + $0x6c] ss:$16 sps:$4 sm:$0xff] (!%p268_p8)   ;;  %v961_v47 = vld [vmem:[%s1164_s30 + $0x60] ss:$16 sps:$4 sm:$0xff] (!%p268_p8)  }
  0x2d   : > { %v962_v48 = vld [vmem:[%s1164_s30 + $0x68] ss:$16 sps:$4 sm:$0xff]   ;;  %v963_v49 = vld [vmem:[%s1164_s30 + $0x84] ss:$16 sps:$4 sm:$0xff]   ;;  %v965_v50 = vld [vmem:[%s1164_s30 + $0x8c] ss:$16 sps:$4 sm:$0xff]  }
  0x2e   : > { %535 = vmatpush1.bf16.msra.mxu0 %v949_v39  ;;  %576 = vmatpush1.bf16.msra.mxu1 %v950_v40  ;;  %v967_v51 = vld [vmem:[%s1164_s30 + $0x80] ss:$16 sps:$4 sm:$0xff]   ;;  %v968_v52 = vld [vmem:[%s1164_s30 + $0x88] ss:$16 sps:$4 sm:$0xff]   ;;  %v969_v53 = vld [vmem:[%s1164_s30 + $0xa4] ss:$16 sps:$4 sm:$0xff]  }
  0x2f   : > { %536 = vmatprep.subr.bf16.mxu0 %v951_v41  ;;  %577 = vmatprep.subr.bf16.mxu1 %v953_v42  ;;  %v971_v54 = vld [vmem:[%s1164_s30 + $0xac] ss:$16 sps:$4 sm:$0xff]   ;;  %v973_v55 = vld [vmem:[%s1164_s30 + $0xa0] ss:$16 sps:$4 sm:$0xff]   ;;  %v974_v56 = vld [vmem:[%s1164_s30 + $0xa8] ss:$16 sps:$4 sm:$0xff]  }
  0x30   : > { %v975_v57 = vld [vmem:[%s1164_s30 + $0xc4] ss:$16 sps:$4 sm:$0xff]   ;;  %v977_v58 = vld [vmem:[%s1164_s30 + $0xcc] ss:$16 sps:$4 sm:$0xff]   ;;  %v979_v59 = vld [vmem:[%s1164_s30 + $0xc0] ss:$16 sps:$4 sm:$0xff]  }
  0x31   : > { %v980_v60 = vld [vmem:[%s1164_s30 + $0xc8] ss:$16 sps:$4 sm:$0xff]   ;;  %v981_v61 = vld [vmem:[%s1164_s30 + $0xe4] ss:$16 sps:$4 sm:$0xff]   ;;  %v983_v62 = vld [vmem:[%s1164_s30 + $0xec] ss:$16 sps:$4 sm:$0xff]  }
  0x32   : > { %537 = vmatpush1.bf16.msra.mxu0 %v955_v43  ;;  %578 = vmatpush1.bf16.msra.mxu1 %v956_v44  ;;  %v985_v63 = vld [vmem:[%s1164_s30 + $0xe0] ss:$16 sps:$4 sm:$0xff]   ;;  %v986_v0 = vld [vmem:[%s1164_s30 + $0xe8] ss:$16 sps:$4 sm:$0xff]   ;;  %s1238_s6 = smov (!%p319_p9, %s856_s6), 15  ;;  %v646_v6 = vsub.s32 0, %v624_v3 }
  0x33   : > { %538 = vmatprep.subr.bf16.mxu0 %v957_v45  ;;  %579 = vmatprep.subr.bf16.mxu1 %v959_v46  ;;  %s321_s9 = scalar_lea.vmem %s1229_s2, %s1238_s6  ;;  %v650_v7 = vsub.s32 1, %v624_v3  ;;  %v654_v8 = vsub.s32 2, %v624_v3  ;;  %v658_v9 = vsub.s32 3, %v624_v3  ;;  %v1029_v35 = vmov 1966171168   ;;  %s330_s12 = scalar_lea.vmem %s1230_s3, %s1238_s6 }
  0x34   : > { %v642_v10 = vld [vmem:[%s321_s9] sm:$0xf]  ;;  %v712_v36 = vunpack.c.l.s4 %v1029_v35 }
  0x35   : > { %v647_v12 = vrot.slane %v642_v10, %v646_v6  ;;  %v651_v13 = vrot.slane %v642_v10, %v650_v7  ;;  %v655_v14 = vrot.slane %v642_v10, %v654_v8  ;;  %v659_v15 = vrot.slane %v642_v10, %v658_v9 }
  0x36   : > { %539 = vmatpush1.bf16.msra.mxu0 %v961_v47  ;;  %580 = vmatpush1.bf16.msra.mxu1 %v962_v48  ;;  %v713_v40 = vunpack.c.0.s8 %v712_v36 }
  0x37   : > { %540 = vmatprep.subr.bf16.mxu0 %v963_v49  ;;  %581 = vmatprep.subr.bf16.mxu1 %v965_v50  ;;  %v660_v17 = vcombine.low %v647_v12, %v651_v13  ;;  %v661_v18 = vcombine.low %v655_v14, %v659_v15 }
  0x38   : > { %v716_v45 = vsub.s32 %v713_v40, %v624_v3 }
  0x39   : > { %v668_v21 = vrot.slane %v660_v17, %v625_v16  ;;  %v675_v22 = vrot.slane %v661_v18, %v625_v16 }
  0x3a   : > { %541 = vmatpush1.bf16.msra.mxu0 %v967_v51  ;;  %582 = vmatpush1.bf16.msra.mxu1 %v968_v52 }
  0x3b   : > { %542 = vmatprep.subr.bf16.mxu0 %v969_v53  ;;  %583 = vmatprep.subr.bf16.mxu1 %v971_v54  ;;  %v676_v33 = vcombine.low %v668_v21, %v675_v22 }
  0x3e   : > { %543 = vmatpush1.bf16.msra.mxu0 %v973_v55  ;;  %584 = vmatpush1.bf16.msra.mxu1 %v974_v56 }
  0x3f   : > { %544 = vmatprep.subr.bf16.mxu0 %v975_v57  ;;  %585 = vmatprep.subr.bf16.mxu1 %v977_v58 }
  0x42   : > { %545 = vmatpush1.bf16.msra.mxu0 %v979_v59  ;;  %586 = vmatpush1.bf16.msra.mxu1 %v980_v60 }
  0x43   : > { %546 = vmatprep.subr.bf16.mxu0 %v981_v61  ;;  %587 = vmatprep.subr.bf16.mxu1 %v983_v62 }
  0x46   : > { %547 = vmatpush1.bf16.msra.mxu0 %v985_v63  ;;  %588 = vmatpush1.bf16.msra.mxu1 %v986_v0 }
  0x49   : > { %565 = vmatmul.mubr.bf16.vlgmr.msra.gmra.mrb[0].mxu0 %v339_v1  ;;  %606 = vmatmul.mubr.bf16.vlgmr.msra.gmra.mrb[0].mxu1 %v339_v1 }
 0x11c   : > { %v566_v19 = vpop.f32.mrb[0].mxu0  ;;  %v607_v20 = vpop.f32.mrb[0].mxu1 }
 0x11d   : > { %v568_v23 = vpop.f32.mrb[1].mxu0  ;;  %v609_v24 = vpop.f32.mrb[1].mxu1 }
 0x11e   : > { %v618_v25 = vcombine.low %v566_v19, %v568_v23  ;;  %v619_v26 = vcombine.low %v607_v20, %v609_v24  ;;  %v570_v27 = vpop.f32.mrb[2].mxu0  ;;  %v611_v28 = vpop.f32.mrb[2].mxu1 }
 0x11f   : > { %v571_v29 = vpop.f32.mrb[3].mxu0  ;;  %v612_v30 = vpop.f32.mrb[3].mxu1 }
 0x120   : > { %v626_v31 = vrot.slane %v618_v25, %v625_v16  ;;  %v633_v32 = vrot.slane %v619_v26, %v625_v16 }
 0x122   : > { %v634_v34 = vcombine.low %v626_v31, %v633_v32 }
 0x124   : > { %v678_v37 = vadd.f32 %v676_v33, %v634_v34 }
 0x126   : > { %v680_v38 = vcombine.high %v678_v37, %v678_v37  ;;  %v687_v39 = vrot.slane %v678_v37, %v625_v16 }
 0x128   : > { %v694_v41 = vrot.slane %v680_v38, %v625_v16  ;;  %v695_v42 = vcombine.high %v687_v39, %v687_v39 }
 0x12a   : > { %v696_v43 = vcombine.high %v694_v41, %v694_v41  ;;  %v890_v44 = vpack.c.bf16 %v695_v42, %v687_v39 }
 0x12c   : > { %v891_v46 = vpack.c.bf16 %v696_v43, %v694_v41  ;;  %v717_v47 = vrot.slane %v890_v44, %v716_v45 }
 0x12e   : > { %v724_v48 = vrot.slane %v891_v46, %v716_v45 }
 0x130   : > { %v725_v49 = vcombine.low %v717_v47, %v724_v48 }
 0x132   : > { %892 = vst.sshfl [vmem:[%s330_s12] sm:$0x55 pattern:$0x73625140] %v725_v49 }
 0x133 PF: > { %s13_s16 = sadd.s32 1, %s1025_s16   ;;  %s1231_s12 = smov %s1013_s13 }
 0x134   : > { %p10_p10 = scmp.ge.s32.totalorder %s13_s16, 6   ;;  %s1232_s13 = smov %s1085_s20 }
 0x135   : > { %s1233_s14 = smov %s1021_s15  ;;  %s1234_s15 = smov %s1236_s17 }
 0x136   :  { %12 = sbr.rel (!%p10_p10) target bundleno = 3 (0x3), region = 104 }

// kernel: vae_forward.22
= control target key start
LH: loop header
LB: loop body
LE: loop exit
PB: predicated region body
PF: predicated region fallthrough
CT: control target
= control target key end

     0   :  { %s792_s1 = inlined_call_operand.vmem [shape: bf16[512,128], index: 1, kind: input, shape index: {}]   ;;  %s793_s0 = inlined_call_operand.vmem [shape: bf16[32,512], index: 0, kind: input, shape index: {}]   ;;  %s794_s2 = inlined_call_operand.vmem [shape: f32[1,128], index: 2, kind: input, shape index: {}]   ;;  %s795_s3 = inlined_call_operand.vmem [shape: bf16[32,128], index: 3, kind: output, shape index: {}]  }
   0x1   :  { %v599_v0 = vld [vmem:[%s792_s1 + $0x40] sm:$0xff]   ;;  %v603_v4 = vld [vmem:[%s792_s1 + $0x48] sm:$0xff]   ;;  %v607_v8 = vld [vmem:[%s792_s1 + $0x50] sm:$0xff]  }
   0x2   :  { %v600_v1 = vld [vmem:[%s792_s1 + $0xc0] sm:$0xff]   ;;  %543 = vmatprep.subr.bf16.mxu0 %v599_v0  ;;  %v604_v5 = vld [vmem:[%s792_s1 + $0xc8] sm:$0xff]   ;;  %v608_v9 = vld [vmem:[%s792_s1 + $0xd0] sm:$0xff]  }
   0x3   :  { %v601_v2 = vld [vmem:[%s792_s1] sm:$0xff]   ;;  %571 = vmatprep.subr.bf16.mxu1 %v600_v1  ;;  %v605_v6 = vld [vmem:[%s792_s1 + $0x8] sm:$0xff]   ;;  %v609_v10 = vld [vmem:[%s792_s1 + $0x10] sm:$0xff]  }
   0x4   :  { %v602_v3 = vld [vmem:[%s792_s1 + $0x80] sm:$0xff]   ;;  %544 = vmatpush3.bf16.msra.mxu0 %v601_v2  ;;  %v606_v7 = vld [vmem:[%s792_s1 + $0x88] sm:$0xff]   ;;  %v610_v11 = vld [vmem:[%s792_s1 + $0x90] sm:$0xff]  }
   0x5   :  { %572 = vmatpush3.bf16.msra.mxu1 %v602_v3  ;;  %545 = vmatprep.subr.bf16.mxu0 %v603_v4  ;;  %v611_v12 = vld [vmem:[%s792_s1 + $0x58] sm:$0xff]   ;;  %v615_v16 = vld [vmem:[%s792_s1 + $0x60] sm:$0xff]   ;;  %v619_v20 = vld [vmem:[%s792_s1 + $0x68] sm:$0xff]  }
   0x6   :  { %573 = vmatprep.subr.bf16.mxu1 %v604_v5  ;;  %v612_v13 = vld [vmem:[%s792_s1 + $0xd8] sm:$0xff]   ;;  %v616_v17 = vld [vmem:[%s792_s1 + $0xe0] sm:$0xff]   ;;  %v620_v21 = vld [vmem:[%s792_s1 + $0xe8] sm:$0xff]  }
   0x7   :  { %v613_v14 = vld [vmem:[%s792_s1 + $0x18] sm:$0xff]   ;;  %v617_v18 = vld [vmem:[%s792_s1 + $0x20] sm:$0xff]   ;;  %v621_v22 = vld [vmem:[%s792_s1 + $0x28] sm:$0xff]  }
   0x8   :  { %546 = vmatpush3.bf16.msra.mxu0 %v605_v6  ;;  %v614_v15 = vld [vmem:[%s792_s1 + $0x98] sm:$0xff]   ;;  %v618_v19 = vld [vmem:[%s792_s1 + $0xa0] sm:$0xff]   ;;  %v622_v23 = vld [vmem:[%s792_s1 + $0xa8] sm:$0xff]  }
   0x9   :  { %574 = vmatpush3.bf16.msra.mxu1 %v606_v7  ;;  %547 = vmatprep.subr.bf16.mxu0 %v607_v8  ;;  %v623_v24 = vld [vmem:[%s792_s1 + $0x70] sm:$0xff]   ;;  %v627_v28 = vld [vmem:[%s792_s1 + $0x78] sm:$0xff]   ;;  %v523_v49 = vld [vmem:[%s794_s2] ss:$0 sm:$0xff] }
   0xa   :  { %575 = vmatprep.subr.bf16.mxu1 %v608_v9  ;;  %v624_v25 = vld [vmem:[%s792_s1 + $0xf0] sm:$0xff]   ;;  %v628_v29 = vld [vmem:[%s792_s1 + $0xf8] sm:$0xff]  }
   0xb   :  { %v625_v26 = vld [vmem:[%s792_s1 + $0x30] sm:$0xff]   ;;  %v629_v30 = vld [vmem:[%s792_s1 + $0x38] sm:$0xff]  }
   0xc   :  { %548 = vmatpush3.bf16.msra.mxu0 %v609_v10  ;;  %v626_v27 = vld [vmem:[%s792_s1 + $0xb0] sm:$0xff]   ;;  %v630_v31 = vld [vmem:[%s792_s1 + $0xb8] sm:$0xff]  }
   0xd   :  { %576 = vmatpush3.bf16.msra.mxu1 %v610_v11  ;;  %549 = vmatprep.subr.bf16.mxu0 %v611_v12  ;;  %v631_v32 = vld [vmem:[%s793_s0] ss:$16 sps:$4 sm:$0xff]   ;;  %v633_v33 = vld [vmem:[%s793_s0 + $0x4] ss:$16 sps:$4 sm:$0xff]   ;;  %v634_v34 = vld [vmem:[%s793_s0 + $0x8] ss:$16 sps:$4 sm:$0xff]  }
   0xe   :  { %577 = vmatprep.subr.bf16.mxu1 %v612_v13  ;;  %v636_v35 = vld [vmem:[%s793_s0 + $0xc] ss:$16 sps:$4 sm:$0xff]   ;;  %363 = vmatprep.mubr.bf16.mxu0 %v633_v33  ;;  %v637_v36 = vld [vmem:[%s793_s0 + $0x24] ss:$16 sps:$4 sm:$0xff]   ;;  %v641_v38 = vld [vmem:[%s793_s0 + $0x20] ss:$16 sps:$4 sm:$0xff]  }
   0xf   :  { %412 = vmatprep.mubr.bf16.mxu1 %v636_v35  ;;  %v639_v37 = vld [vmem:[%s793_s0 + $0x2c] ss:$16 sps:$4 sm:$0xff]   ;;  %v642_v39 = vld [vmem:[%s793_s0 + $0x28] ss:$16 sps:$4 sm:$0xff]  }
  0x10   :  { %550 = vmatpush3.bf16.msra.mxu0 %v613_v14 }
  0x11   :  { %578 = vmatpush3.bf16.msra.mxu1 %v614_v15  ;;  %551 = vmatprep.subr.bf16.mxu0 %v615_v16 }
  0x12   :  { %579 = vmatprep.subr.bf16.mxu1 %v616_v17 }
  0x14   :  { %552 = vmatpush3.bf16.msra.mxu0 %v617_v18 }
  0x15   :  { %580 = vmatpush3.bf16.msra.mxu1 %v618_v19  ;;  %553 = vmatprep.subr.bf16.mxu0 %v619_v20 }
  0x16   :  { %581 = vmatprep.subr.bf16.mxu1 %v620_v21 }
  0x18   :  { %554 = vmatpush3.bf16.msra.mxu0 %v621_v22 }
  0x19   :  { %582 = vmatpush3.bf16.msra.mxu1 %v622_v23  ;;  %555 = vmatprep.subr.bf16.mxu0 %v623_v24 }
  0x1a   :  { %583 = vmatprep.subr.bf16.mxu1 %v624_v25 }
  0x1c   :  { %556 = vmatpush3.bf16.msra.mxu0 %v625_v26 }
  0x1d   :  { %584 = vmatpush3.bf16.msra.mxu1 %v626_v27  ;;  %557 = vmatprep.subr.bf16.mxu0 %v627_v28 }
  0x1e   :  { %585 = vmatprep.subr.bf16.mxu1 %v628_v29 }
  0x20   :  { %558 = vmatpush3.bf16.msra.mxu0 %v629_v30 }
  0x21   :  { %586 = vmatpush3.bf16.msra.mxu1 %v630_v31 }
  0x23   :  { %364 = vmatmul.mubr.bf16.vlgmr.msra.gmra.mrb[0].mxu0 %v631_v32 }
  0x24   :  { %413 = vmatmul.mubr.bf16.vlgmr.msra.gmra.mrb[0].mxu1 %v634_v34  ;;  %371 = vmatprep.mubr.bf16.mxu0 %v637_v36 }
  0x25   :  { %420 = vmatprep.mubr.bf16.mxu1 %v639_v37 }
  0x2b   :  { %372 = vmatmul.mubr.bf16.gmra.mrb[4].mxu0 %v641_v38 }
  0x2c   :  { %421 = vmatmul.mubr.bf16.gmra.mrb[4].mxu1 %v642_v39 }
  0xf6   :  { %v559_v40 = vpop.f32.mrb[0].mxu0 }
  0xf7   :  { %v587_v41 = vpop.f32.mrb[0].mxu1  ;;  %v560_v42 = vpop.f32.mrb[1].mxu0 }
  0xf8   :  { %v561_v43 = vadd.f32 %v560_v42, %v559_v40  ;;  %v588_v44 = vpop.f32.mrb[1].mxu1  ;;  %v562_v45 = vpop.f32.mrb[2].mxu0 }
  0xf9   :  { %v589_v46 = vadd.f32 %v588_v44, %v587_v41  ;;  %v590_v47 = vpop.f32.mrb[2].mxu1  ;;  %v563_v48 = vpop.f32.mrb[3].mxu0 }
  0xfa   :  { %v564_v50 = vadd.f32 %v563_v48, %v562_v45  ;;  %v591_v51 = vpop.f32.mrb[3].mxu1 }
  0xfb   :  { %v415_v52 = vadd.f32 %v589_v46, %v561_v43  ;;  %v592_v53 = vadd.f32 %v591_v51, %v590_v47 }
  0xfd   :  { %v451_v54 = vadd.f32 %v523_v49, %v415_v52  ;;  %v418_v55 = vadd.f32 %v592_v53, %v564_v50 }
  0xfe   :  { %v565_v56 = vpop.f32.mrb[4].mxu0 }
  0xff   :  { %v452_v57 = vadd.f32 %v523_v49, %v418_v55  ;;  %v593_v58 = vpop.f32.mrb[4].mxu1  ;;  %v566_v59 = vpop.f32.mrb[5].mxu0  ;;  %v455_v63 = vmax.f32 %v451_v54, 0.0 }
 0x100   :  { %v567_v60 = vadd.f32 %v566_v59, %v565_v56  ;;  %v594_v61 = vpop.f32.mrb[5].mxu1  ;;  %v568_v62 = vpop.f32.mrb[6].mxu0 }
 0x101   :  { %v456_v0 = vmax.f32 %v452_v57, 0.0  ;;  %v595_v1 = vadd.f32 %v594_v61, %v593_v58  ;;  %v596_v2 = vpop.f32.mrb[6].mxu1  ;;  %v569_v3 = vpop.f32.mrb[7].mxu0 }
 0x102   :  { %v570_v4 = vadd.f32 %v569_v3, %v568_v62  ;;  %v597_v5 = vpop.f32.mrb[7].mxu1 }
 0x103   :  { %v535_v6 = vpack.c.bf16 %v456_v0, %v455_v63  ;;  %v423_v7 = vadd.f32 %v595_v1, %v567_v60  ;;  %v598_v8 = vadd.f32 %v597_v5, %v596_v2 }
 0x105   :  { %536 = vst [vmem:[%s795_s3] sm:$0xff] %v535_v6   ;;  %v453_v9 = vadd.f32 %v523_v49, %v423_v7  ;;  %v426_v10 = vadd.f32 %v598_v8, %v570_v4 }
 0x107   :  { %v454_v11 = vadd.f32 %v523_v49, %v426_v10  ;;  %v457_v12 = vmax.f32 %v453_v9, 0.0 }
 0x109   :  { %v458_v13 = vmax.f32 %v454_v11, 0.0 }
 0x10b   :  { %v540_v14 = vpack.c.bf16 %v458_v13, %v457_v12 }
 0x10d   :  { %542 = vst [vmem:[%s795_s3 + $0x8] sm:$0xff] %v540_v14  }

// kernel: vae_forward.26
= control target key start
LH: loop header
LB: loop body
LE: loop exit
PB: predicated region body
PF: predicated region fallthrough
CT: control target
= control target key end

     0   :  { %s939_s1 = inlined_call_operand.vmem [shape: bf16[256,128], index: 1, kind: input, shape index: {}]   ;;  %s940_s0 = inlined_call_operand.vmem [shape: bf16[128,256], index: 0, kind: input, shape index: {}]   ;;  %s941_s2 = inlined_call_operand.vmem [shape: f32[1,128], index: 2, kind: input, shape index: {}]   ;;  %s942_s3 = inlined_call_operand.vmem [shape: bf16[128,128], index: 3, kind: output, shape index: {}]  }
   0x1   :  { %v738_v0 = vld [vmem:[%s939_s1 + $0x40] sm:$0xff]   ;;  %v740_v2 = vld [vmem:[%s939_s1 + $0x48] sm:$0xff]   ;;  %v742_v4 = vld [vmem:[%s939_s1 + $0x50] sm:$0xff]  }
   0x2   :  { %v739_v1 = vld [vmem:[%s939_s1] sm:$0xff]   ;;  %658 = vmatprep.subr.bf16.mxu0 %v738_v0  ;;  %722 = vmatprep.subr.bf16.mxu1 %v738_v0  ;;  %v741_v3 = vld [vmem:[%s939_s1 + $0x8] sm:$0xff]   ;;  %v743_v5 = vld [vmem:[%s939_s1 + $0x10] sm:$0xff]  }
   0x3   :  { %659 = vmatpush3.bf16.msra.mxu0 %v739_v1  ;;  %730 = vmatpush3.bf16.msra.mxu1 %v739_v1  ;;  %v744_v6 = vld [vmem:[%s939_s1 + $0x58] sm:$0xff]   ;;  %v746_v8 = vld [vmem:[%s939_s1 + $0x60] sm:$0xff]   ;;  %v748_v10 = vld [vmem:[%s939_s1 + $0x68] sm:$0xff]  }
   0x4   :  { %660 = vmatprep.subr.bf16.mxu0 %v740_v2  ;;  %723 = vmatprep.subr.bf16.mxu1 %v740_v2  ;;  %v745_v7 = vld [vmem:[%s939_s1 + $0x18] sm:$0xff]   ;;  %v747_v9 = vld [vmem:[%s939_s1 + $0x20] sm:$0xff]   ;;  %v749_v13 = vld [vmem:[%s939_s1 + $0x28] sm:$0xff]  }
   0x5   :  { %v756_v11 = vld [vmem:[%s940_s0 + $0x4] ss:$8 sps:$4 sm:$0xff]   ;;  %v750_v14 = vld [vmem:[%s939_s1 + $0x70] sm:$0xff]   ;;  %v752_v16 = vld [vmem:[%s939_s1 + $0x78] sm:$0xff]  }
   0x6   :  { %v759_v12 = vld [vmem:[%s940_s0 + $0x44] ss:$8 sps:$4 sm:$0xff]   ;;  %307 = vmatprep.mubr.bf16.mxu0 %v756_v11  ;;  %v751_v15 = vld [vmem:[%s939_s1 + $0x30] sm:$0xff]   ;;  %v753_v17 = vld [vmem:[%s939_s1 + $0x38] sm:$0xff]  }
   0x7   :  { %661 = vmatpush3.bf16.msra.mxu0 %v741_v3  ;;  %731 = vmatpush3.bf16.msra.mxu1 %v741_v3  ;;  %v754_v18 = vld [vmem:[%s940_s0] ss:$8 sps:$4 sm:$0xff]   ;;  %v760_v20 = vld [vmem:[%s940_s0 + $0x14] ss:$8 sps:$4 sm:$0xff]   ;;  %v764_v22 = vld [vmem:[%s940_s0 + $0x10] ss:$8 sps:$4 sm:$0xff]  }
   0x8   :  { %662 = vmatprep.subr.bf16.mxu0 %v742_v4  ;;  %724 = vmatprep.subr.bf16.mxu1 %v742_v4  ;;  %v757_v19 = vld [vmem:[%s940_s0 + $0x40] ss:$8 sps:$4 sm:$0xff]   ;;  %v762_v21 = vld [vmem:[%s940_s0 + $0x54] ss:$8 sps:$4 sm:$0xff]   ;;  %v765_v23 = vld [vmem:[%s940_s0 + $0x50] ss:$8 sps:$4 sm:$0xff]  }
   0x9   :  { %339 = vmatprep.mubr.bf16.mxu1 %v759_v12  ;;  %v766_v24 = vld [vmem:[%s940_s0 + $0x24] ss:$8 sps:$4 sm:$0xff]   ;;  %v770_v26 = vld [vmem:[%s940_s0 + $0x20] ss:$8 sps:$4 sm:$0xff]   ;;  %v772_v28 = vld [vmem:[%s940_s0 + $0x34] ss:$8 sps:$4 sm:$0xff]  }
   0xa   :  { %v768_v25 = vld [vmem:[%s940_s0 + $0x64] ss:$8 sps:$4 sm:$0xff]   ;;  %v771_v27 = vld [vmem:[%s940_s0 + $0x60] ss:$8 sps:$4 sm:$0xff]   ;;  %v774_v29 = vld [vmem:[%s940_s0 + $0x74] ss:$8 sps:$4 sm:$0xff]  }
   0xb   :  { %663 = vmatpush3.bf16.msra.mxu0 %v743_v5  ;;  %732 = vmatpush3.bf16.msra.mxu1 %v743_v5  ;;  %v776_v30 = vld [vmem:[%s940_s0 + $0x30] ss:$8 sps:$4 sm:$0xff]   ;;  %v897_v35 = vld [vmem:[%s941_s2] ss:$0 sm:$0xff] }
   0xc   :  { %664 = vmatprep.subr.bf16.mxu0 %v744_v6  ;;  %725 = vmatprep.subr.bf16.mxu1 %v744_v6  ;;  %v777_v31 = vld [vmem:[%s940_s0 + $0x70] ss:$8 sps:$4 sm:$0xff]  }
   0xf   :  { %665 = vmatpush3.bf16.msra.mxu0 %v745_v7  ;;  %733 = vmatpush3.bf16.msra.mxu1 %v745_v7 }
  0x10   :  { %666 = vmatprep.subr.bf16.mxu0 %v746_v8  ;;  %726 = vmatprep.subr.bf16.mxu1 %v746_v8 }
  0x13   :  { %667 = vmatpush3.bf16.msra.mxu0 %v747_v9  ;;  %734 = vmatpush3.bf16.msra.mxu1 %v747_v9 }
  0x14   :  { %668 = vmatprep.subr.bf16.mxu0 %v748_v10  ;;  %727 = vmatprep.subr.bf16.mxu1 %v748_v10 }
  0x17   :  { %669 = vmatpush3.bf16.msra.mxu0 %v749_v13  ;;  %735 = vmatpush3.bf16.msra.mxu1 %v749_v13 }
  0x18   :  { %670 = vmatprep.subr.bf16.mxu0 %v750_v14  ;;  %728 = vmatprep.subr.bf16.mxu1 %v750_v14 }
  0x1b   :  { %671 = vmatpush3.bf16.msra.mxu0 %v751_v15  ;;  %736 = vmatpush3.bf16.msra.mxu1 %v751_v15 }
  0x1c   :  { %672 = vmatprep.subr.bf16.mxu0 %v752_v16  ;;  %729 = vmatprep.subr.bf16.mxu1 %v752_v16 }
  0x1f   :  { %673 = vmatpush3.bf16.msra.mxu0 %v753_v17  ;;  %737 = vmatpush3.bf16.msra.mxu1 %v753_v17 }
  0x22   :  { %308 = vmatmul.mubr.bf16.vlgmr.msra.gmra.mrb[0].mxu0 %v754_v18  ;;  %340 = vmatmul.mubr.bf16.vlgmr.msra.gmra.mrb[0].mxu1 %v757_v19 }
  0x23   :  { %315 = vmatprep.mubr.bf16.mxu0 %v760_v20  ;;  %347 = vmatprep.mubr.bf16.mxu1 %v762_v21 }
  0x2a   :  { %316 = vmatmul.mubr.bf16.gmra.mrb[4].mxu0 %v764_v22  ;;  %348 = vmatmul.mubr.bf16.gmra.mrb[4].mxu1 %v765_v23 }
  0x2b   :  { %323 = vmatprep.mubr.bf16.mxu0 %v766_v24  ;;  %355 = vmatprep.mubr.bf16.mxu1 %v768_v25 }
  0x32   :  { %324 = vmatmul.mubr.bf16.gmra.mrb[8].mxu0 %v770_v26  ;;  %356 = vmatmul.mubr.bf16.gmra.mrb[8].mxu1 %v771_v27 }
  0x33   :  { %331 = vmatprep.mubr.bf16.mxu0 %v772_v28  ;;  %363 = vmatprep.mubr.bf16.mxu1 %v774_v29 }
  0x3a   :  { %332 = vmatmul.mubr.bf16.gmra.mrb[12].mxu0 %v776_v30  ;;  %364 = vmatmul.mubr.bf16.gmra.mrb[12].mxu1 %v777_v31 }
  0xf5   :  { %v674_v32 = vpop.f32.mrb[0].mxu0  ;;  %v698_v33 = vpop.f32.mrb[0].mxu1 }
  0xf6   :  { %v675_v34 = vpop.f32.mrb[1].mxu0  ;;  %v699_v36 = vpop.f32.mrb[1].mxu1 }
  0xf7   :  { %v676_v37 = vadd.f32 %v675_v34, %v674_v32  ;;  %v700_v38 = vadd.f32 %v699_v36, %v698_v33  ;;  %v677_v39 = vpop.f32.mrb[2].mxu0  ;;  %v701_v40 = vpop.f32.mrb[2].mxu1 }
  0xf8   :  { %v678_v41 = vpop.f32.mrb[3].mxu0  ;;  %v702_v42 = vpop.f32.mrb[3].mxu1 }
  0xf9   :  { %v430_v43 = vadd.f32 %v676_v37, %v897_v35  ;;  %v438_v44 = vadd.f32 %v700_v38, %v897_v35  ;;  %v679_v45 = vadd.f32 %v678_v41, %v677_v39  ;;  %v703_v46 = vadd.f32 %v702_v42, %v701_v40 }
  0xfb   :  { %v431_v47 = vadd.f32 %v679_v45, %v897_v35  ;;  %v439_v48 = vadd.f32 %v703_v46, %v897_v35  ;;  %v446_v49 = vmax.f32 %v430_v43, 0.0  ;;  %v454_v50 = vmax.f32 %v438_v44, 0.0 }
  0xfd   :  { %v447_v51 = vmax.f32 %v431_v47, 0.0  ;;  %v455_v52 = vmax.f32 %v439_v48, 0.0  ;;  %v680_v53 = vpop.f32.mrb[4].mxu0  ;;  %v704_v54 = vpop.f32.mrb[4].mxu1 }
  0xfe   :  { %v681_v55 = vpop.f32.mrb[5].mxu0  ;;  %v705_v56 = vpop.f32.mrb[5].mxu1 }
  0xff   :  { %v614_v57 = vpack.c.bf16 %v447_v51, %v446_v49  ;;  %v634_v58 = vpack.c.bf16 %v455_v52, %v454_v50  ;;  %v682_v59 = vadd.f32 %v681_v55, %v680_v53  ;;  %v706_v60 = vadd.f32 %v705_v56, %v704_v54  ;;  %v683_v61 = vpop.f32.mrb[6].mxu0  ;;  %v707_v62 = vpop.f32.mrb[6].mxu1 }
 0x100   :  { %v684_v63 = vpop.f32.mrb[7].mxu0  ;;  %v708_v0 = vpop.f32.mrb[7].mxu1 }
 0x101   :  { %615 = vst [vmem:[%s942_s3] sm:$0xff] %v614_v57   ;;  %654 = vst [vmem:[%s942_s3 + $0x20] sm:$0xff] %v634_v58   ;;  %v432_v1 = vadd.f32 %v682_v59, %v897_v35  ;;  %v440_v2 = vadd.f32 %v706_v60, %v897_v35  ;;  %v685_v3 = vadd.f32 %v684_v63, %v683_v61 }
 0x102   :  { %v709_v4 = vadd.f32 %v708_v0, %v707_v62 }
 0x103   :  { %v433_v5 = vadd.f32 %v685_v3, %v897_v35  ;;  %v448_v7 = vmax.f32 %v432_v1, 0.0  ;;  %v456_v8 = vmax.f32 %v440_v2, 0.0 }
 0x104   :  { %v441_v6 = vadd.f32 %v709_v4, %v897_v35 }
 0x105   :  { %v449_v9 = vmax.f32 %v433_v5, 0.0  ;;  %v686_v11 = vpop.f32.mrb[8].mxu0  ;;  %v710_v12 = vpop.f32.mrb[8].mxu1 }
 0x106   :  { %v457_v10 = vmax.f32 %v441_v6, 0.0  ;;  %v687_v13 = vpop.f32.mrb[9].mxu0  ;;  %v711_v14 = vpop.f32.mrb[9].mxu1 }
 0x107   :  { %v619_v15 = vpack.c.bf16 %v449_v9, %v448_v7  ;;  %v688_v17 = vadd.f32 %v687_v13, %v686_v11  ;;  %v712_v18 = vadd.f32 %v711_v14, %v710_v12  ;;  %v689_v19 = vpop.f32.mrb[10].mxu0  ;;  %v713_v20 = vpop.f32.mrb[10].mxu1 }
 0x108   :  { %v639_v16 = vpack.c.bf16 %v457_v10, %v456_v8  ;;  %v690_v21 = vpop.f32.mrb[11].mxu0  ;;  %v714_v22 = vpop.f32.mrb[11].mxu1 }
 0x109   :  { %651 = vst [vmem:[%s942_s3 + $0x8] sm:$0xff] %v619_v15   ;;  %v434_v23 = vadd.f32 %v688_v17, %v897_v35  ;;  %v442_v24 = vadd.f32 %v712_v18, %v897_v35  ;;  %v691_v25 = vadd.f32 %v690_v21, %v689_v19  ;;  %v715_v26 = vadd.f32 %v714_v22, %v713_v20 }
 0x10a   :  { %655 = vst [vmem:[%s942_s3 + $0x28] sm:$0xff] %v639_v16  }
 0x10b   :  { %v435_v27 = vadd.f32 %v691_v25, %v897_v35  ;;  %v443_v28 = vadd.f32 %v715_v26, %v897_v35  ;;  %v450_v29 = vmax.f32 %v434_v23, 0.0  ;;  %v458_v30 = vmax.f32 %v442_v24, 0.0 }
 0x10d   :  { %v451_v31 = vmax.f32 %v435_v27, 0.0  ;;  %v459_v32 = vmax.f32 %v443_v28, 0.0  ;;  %v692_v33 = vpop.f32.mrb[12].mxu0  ;;  %v716_v34 = vpop.f32.mrb[12].mxu1 }
 0x10e   :  { %v693_v36 = vpop.f32.mrb[13].mxu0  ;;  %v717_v37 = vpop.f32.mrb[13].mxu1 }
 0x10f   :  { %v624_v38 = vpack.c.bf16 %v451_v31, %v450_v29  ;;  %v644_v39 = vpack.c.bf16 %v459_v32, %v458_v30  ;;  %v694_v40 = vadd.f32 %v693_v36, %v692_v33  ;;  %v718_v41 = vadd.f32 %v717_v37, %v716_v34  ;;  %v695_v42 = vpop.f32.mrb[14].mxu0  ;;  %v719_v43 = vpop.f32.mrb[14].mxu1 }
 0x110   :  { %v696_v44 = vpop.f32.mrb[15].mxu0  ;;  %v720_v45 = vpop.f32.mrb[15].mxu1 }
 0x111   :  { %652 = vst [vmem:[%s942_s3 + $0x10] sm:$0xff] %v624_v38   ;;  %656 = vst [vmem:[%s942_s3 + $0x30] sm:$0xff] %v644_v39   ;;  %v436_v46 = vadd.f32 %v694_v40, %v897_v35  ;;  %v444_v47 = vadd.f32 %v718_v41, %v897_v35  ;;  %v697_v48 = vadd.f32 %v696_v44, %v695_v42 }
 0x112   :  { %v721_v49 = vadd.f32 %v720_v45, %v719_v43 }
 0x113   :  { %v437_v50 = vadd.f32 %v697_v48, %v897_v35  ;;  %v452_v52 = vmax.f32 %v436_v46, 0.0  ;;  %v460_v53 = vmax.f32 %v444_v47, 0.0 }
 0x114   :  { %v445_v51 = vadd.f32 %v721_v49, %v897_v35 }
 0x115   :  { %v453_v54 = vmax.f32 %v437_v50, 0.0 }
 0x116   :  { %v461_v55 = vmax.f32 %v445_v51, 0.0 }
 0x117   :  { %v629_v56 = vpack.c.bf16 %v453_v54, %v452_v52 }
 0x118   :  { %v649_v57 = vpack.c.bf16 %v461_v55, %v460_v53 }
 0x119   :  { %653 = vst [vmem:[%s942_s3 + $0x18] sm:$0xff] %v629_v56  }
 0x11a   :  { %657 = vst [vmem:[%s942_s3 + $0x38] sm:$0xff] %v649_v57  }

// kernel: vae_forward.30
= control target key start
LH: loop header
LB: loop body
LE: loop exit
PB: predicated region body
PF: predicated region fallthrough
CT: control target
= control target key end

     0   :  { %s1532_s12 = smov 0   ;;  %s1534_s13 = smov 0   ;;  %s1709_s0 = inlined_call_operand.vmem [shape: bf16[512,128], index: 0, kind: input, shape index: {}]   ;;  %s1710_s1 = inlined_call_operand.vmem [shape: bf16[128,128], index: 1, kind: input, shape index: {}]   ;;  %s1711_s2 = inlined_call_operand.vmem [shape: f32[1,128], index: 2, kind: input, shape index: {}]   ;;  %s1712_s3 = inlined_call_operand.vmem [shape: f32[512,128], index: 3, kind: output, shape index: {}]  }
   0x1   :  { %s1536_s14 = smov 0  }
   0x2 LB: > { %s32_s15 = sadd.s32 1, %s1506_s13  ;;  %p1160_p0 = scmp.ge.s32.totalorder %s1510_s14, 1  ;;  %s1510_s14 = sphi %s1536_s14, %s13_s14   ;;  %s1506_s13 = sphi %s1534_s13, %s1714_s13   ;;  %s1502_s12 = sphi %s1532_s12, %s1713_s12  }
   0x3   : > { %p34_p1 = scmp.ge.s32.totalorder %s32_s15, 2  ;;  %p188_p2 = scmp.lt.s32.totalorder %s1510_s14, 3 }
   0x5   : > { %s1716_s15 = smov (%p34_p1, %s32_s15), 0  ;;  %p189_p3 = pnand %p1160_p0, %p188_p2 }
   0x6   : > { %v1336_v0 = vld [vmem:[%s1710_s1] sm:$0xff] (!%p189_p3)   ;;  %s1161_s18 = sshll.u32 (!%p189_p3), %s1502_s12, 5  ;;  %v1337_v1 = vld [vmem:[%s1710_s1 + $0x8] sm:$0xff] (!%p189_p3)   ;;  %v1338_v2 = vld [vmem:[%s1710_s1 + $0x10] sm:$0xff] (!%p189_p3)  }
   0x7   : > { %192 = sbr.rel (%p189_p3) target bundleno = 339 (0x153), region = 32  ;;  %p230_p4 = scmp.lt.s32.totalorder (!%p189_p3), %s1161_s18, 63  ;;  %1248 = vmatprep.subr.bf16.mxu0 (!%p189_p3), %v1336_v0  ;;  %1296 = vmatprep.subr.bf16.mxu1 (!%p189_p3), %v1336_v0  ;;  %v1339_v3 = vld [vmem:[%s1710_s1 + $0x18] sm:$0xff] (!%p189_p3)   ;;  %v1340_v6 = vld [vmem:[%s1710_s1 + $0x20] sm:$0xff] (!%p189_p3)   ;;  %v1341_v7 = vld [vmem:[%s1710_s1 + $0x28] sm:$0xff] (!%p189_p3)  }
   0x8   : > { %1249 = vmatpush3.bf16.msra.mxu0 (!%p189_p3), %v1336_v0  ;;  %1304 = vmatpush3.bf16.msra.mxu1 (!%p189_p3), %v1336_v0  ;;  %v1342_v8 = vld [vmem:[%s1710_s1 + $0x30] sm:$0xff] (!%p189_p3)   ;;  %v1343_v9 = vld [vmem:[%s1710_s1 + $0x38] sm:$0xff] (!%p189_p3)   ;;  %v1601_v24 = vld [vmem:[%s1711_s2] ss:$0 sm:$0xff] (!%p189_p3) }
   0x9   : > { %1250 = vmatprep.subr.bf16.mxu0 (!%p189_p3), %v1337_v1  ;;  %1297 = vmatprep.subr.bf16.mxu1 (!%p189_p3), %v1337_v1 }
   0xc   : > { %1251 = vmatpush3.bf16.msra.mxu0 (!%p189_p3), %v1337_v1  ;;  %1305 = vmatpush3.bf16.msra.mxu1 (!%p189_p3), %v1337_v1 }
   0xd   : > { %1252 = vmatprep.subr.bf16.mxu0 (!%p189_p3), %v1338_v2  ;;  %1298 = vmatprep.subr.bf16.mxu1 (!%p189_p3), %v1338_v2 }
   0xe   : > { %s1718_s18 = smov (!%p230_p4, %s1161_s18), 63 }
   0xf   : > { %s1162_s23 = sshll.u32 %s1718_s18, 2  ;;  %s1164_s12 = sshll.u32 %s1718_s18, 3 }
  0x10   : > { %s1565_s26 = scalar_lea.vmem %s1709_s0, %s1162_s23  ;;  %1253 = vmatpush3.bf16.msra.mxu0 %v1338_v2  ;;  %1306 = vmatpush3.bf16.msra.mxu1 %v1338_v2  ;;  %s1631_s18 = scalar_lea.vmem %s1712_s3, %s1164_s12 }
  0x11   : > { %v1344_v4 = vld [vmem:[%s1565_s26] sm:$0xff]   ;;  %1254 = vmatprep.subr.bf16.mxu0 %v1339_v3  ;;  %1299 = vmatprep.subr.bf16.mxu1 %v1339_v3  ;;  %v1346_v10 = vld [vmem:[%s1565_s26 + $0x8] sm:$0xff]   ;;  %v1348_v12 = vld [vmem:[%s1565_s26 + $0x10] sm:$0xff]  }
  0x12   : > { %v1345_v5 = vld [vmem:[%s1565_s26 + $0x40] sm:$0xff]   ;;  %1264 = vmatprep.mubr.bf16.mxu0 %v1344_v4  ;;  %v1347_v11 = vld [vmem:[%s1565_s26 + $0x48] sm:$0xff]   ;;  %v1349_v13 = vld [vmem:[%s1565_s26 + $0x50] sm:$0xff]  }
  0x13   : > { %1280 = vmatprep.mubr.bf16.mxu1 %v1345_v5  ;;  %v1350_v14 = vld [vmem:[%s1565_s26 + $0x18] sm:$0xff]   ;;  %v1352_v16 = vld [vmem:[%s1565_s26 + $0x20] sm:$0xff]   ;;  %v1354_v18 = vld [vmem:[%s1565_s26 + $0x28] sm:$0xff]  }
  0x14   : > { %1255 = vmatpush3.bf16.msra.mxu0 %v1339_v3  ;;  %1307 = vmatpush3.bf16.msra.mxu1 %v1339_v3  ;;  %v1351_v15 = vld [vmem:[%s1565_s26 + $0x58] sm:$0xff]   ;;  %v1353_v17 = vld [vmem:[%s1565_s26 + $0x60] sm:$0xff]   ;;  %v1355_v19 = vld [vmem:[%s1565_s26 + $0x68] sm:$0xff]  }
  0x15   : > { %1256 = vmatprep.subr.bf16.mxu0 %v1340_v6  ;;  %1300 = vmatprep.subr.bf16.mxu1 %v1340_v6  ;;  %v1356_v20 = vld [vmem:[%s1565_s26 + $0x30] sm:$0xff]   ;;  %v1358_v22 = vld [vmem:[%s1565_s26 + $0x38] sm:$0xff]  }
  0x16   : > { %v1357_v21 = vld [vmem:[%s1565_s26 + $0x70] sm:$0xff]   ;;  %v1359_v23 = vld [vmem:[%s1565_s26 + $0x78] sm:$0xff]  }
  0x18   : > { %1257 = vmatpush3.bf16.msra.mxu0 %v1340_v6  ;;  %1308 = vmatpush3.bf16.msra.mxu1 %v1340_v6 }
  0x19   : > { %1258 = vmatprep.subr.bf16.mxu0 %v1341_v7  ;;  %1301 = vmatprep.subr.bf16.mxu1 %v1341_v7 }
  0x1c   : > { %1259 = vmatpush3.bf16.msra.mxu0 %v1341_v7  ;;  %1309 = vmatpush3.bf16.msra.mxu1 %v1341_v7 }
  0x1d   : > { %1260 = vmatprep.subr.bf16.mxu0 %v1342_v8  ;;  %1302 = vmatprep.subr.bf16.mxu1 %v1342_v8 }
  0x20   : > { %1261 = vmatpush3.bf16.msra.mxu0 %v1342_v8  ;;  %1310 = vmatpush3.bf16.msra.mxu1 %v1342_v8 }
  0x21   : > { %1262 = vmatprep.subr.bf16.mxu0 %v1343_v9  ;;  %1303 = vmatprep.subr.bf16.mxu1 %v1343_v9 }
  0x24   : > { %1263 = vmatpush3.bf16.msra.mxu0 %v1343_v9  ;;  %1311 = vmatpush3.bf16.msra.mxu1 %v1343_v9 }
  0x27   : > { %1265 = vmatmul.mubr.bf16.vlgmr.msra.gmra.mrb[0].mxu0 %v1346_v10  ;;  %1281 = vmatmul.mubr.bf16.vlgmr.msra.gmra.mrb[0].mxu1 %v1347_v11 }
  0x28   : > { %1268 = vmatprep.mubr.bf16.mxu0 %v1348_v12  ;;  %1284 = vmatprep.mubr.bf16.mxu1 %v1349_v13 }
  0x2f   : > { %1269 = vmatmul.mubr.bf16.gmra.mrb[4].mxu0 %v1350_v14  ;;  %1285 = vmatmul.mubr.bf16.gmra.mrb[4].mxu1 %v1351_v15 }
  0x30   : > { %1272 = vmatprep.mubr.bf16.mxu0 %v1352_v16  ;;  %1288 = vmatprep.mubr.bf16.mxu1 %v1353_v17 }
  0x37   : > { %1273 = vmatmul.mubr.bf16.gmra.mrb[8].mxu0 %v1354_v18  ;;  %1289 = vmatmul.mubr.bf16.gmra.mrb[8].mxu1 %v1355_v19 }
  0x38   : > { %1276 = vmatprep.mubr.bf16.mxu0 %v1356_v20  ;;  %1292 = vmatprep.mubr.bf16.mxu1 %v1357_v21 }
  0x3f   : > { %1277 = vmatmul.mubr.bf16.gmra.mrb[12].mxu0 %v1358_v22  ;;  %1293 = vmatmul.mubr.bf16.gmra.mrb[12].mxu1 %v1359_v23 }
  0xfa   : > { %v1266_v25 = vpop.f32.mrb[0].mxu0  ;;  %v1282_v26 = vpop.f32.mrb[0].mxu1 }
  0xfb   : > { %v789_v27 = vadd.f32 %v1266_v25, %v1601_v24  ;;  %v805_v28 = vadd.f32 %v1282_v26, %v1601_v24  ;;  %v554_v29 = vpop.f32.mrb[1].mxu0  ;;  %v618_v30 = vpop.f32.mrb[1].mxu1 }
  0xfc   : > { %v787_v31 = vadd.f32 %v1601_v24, %v554_v29  ;;  %v803_v32 = vadd.f32 %v1601_v24, %v618_v30  ;;  %v1267_v33 = vpop.f32.mrb[2].mxu0  ;;  %v1283_v34 = vpop.f32.mrb[2].mxu1 }
  0xfd   : > { %v1192_v35 = vmul.f32 -1.442695, %v789_v27  ;;  %v1208_v36 = vmul.f32 -1.442695, %v805_v28  ;;  %v790_v37 = vadd.f32 %v1267_v33, %v1601_v24  ;;  %v806_v38 = vadd.f32 %v1283_v34, %v1601_v24  ;;  %v557_v39 = vpop.f32.mrb[3].mxu0  ;;  %v621_v40 = vpop.f32.mrb[3].mxu1 }
  0xfe   : > { %v1190_v41 = vmul.f32 -1.442695, %v787_v31  ;;  %v1206_v42 = vmul.f32 -1.442695, %v803_v32  ;;  %v788_v43 = vadd.f32 %v1601_v24, %v557_v39  ;;  %v804_v44 = vadd.f32 %v1601_v24, %v621_v40 }
  0xff   : > { %1360 = vpow2.f32 %v1192_v35  ;;  %v1193_v45 = vmul.f32 -1.442695, %v790_v37  ;;  %v1209_v46 = vmul.f32 -1.442695, %v806_v38 }
 0x100   : > { %1362 = vpow2.f32 %v1208_v36  ;;  %v1191_v47 = vmul.f32 -1.442695, %v788_v43  ;;  %v1207_v48 = vmul.f32 -1.442695, %v804_v44 }
 0x101   : > { %1364 = vpow2.f32 %v1190_v41 }
 0x102   : > { %1366 = vpow2.f32 %v1206_v42  ;;  %v1270_v49 = vpop.f32.mrb[4].mxu0  ;;  %v1286_v50 = vpop.f32.mrb[4].mxu1 }
 0x103   : > { %1368 = vpow2.f32 %v1193_v45  ;;  %v793_v51 = vadd.f32 %v1270_v49, %v1601_v24  ;;  %v809_v52 = vadd.f32 %v1286_v50, %v1601_v24  ;;  %v570_v53 = vpop.f32.mrb[5].mxu0  ;;  %v634_v54 = vpop.f32.mrb[5].mxu1 }
 0x104   : > { %1370 = vpow2.f32 %v1209_v46  ;;  %v791_v55 = vadd.f32 %v1601_v24, %v570_v53  ;;  %v807_v56 = vadd.f32 %v1601_v24, %v634_v54  ;;  %v1271_v57 = vpop.f32.mrb[6].mxu0  ;;  %v1287_v58 = vpop.f32.mrb[6].mxu1 }
 0x105   : > { %1372 = vpow2.f32 %v1191_v47  ;;  %v1196_v59 = vmul.f32 -1.442695, %v793_v51  ;;  %v1212_v60 = vmul.f32 -1.442695, %v809_v52  ;;  %v794_v61 = vadd.f32 %v1271_v57, %v1601_v24  ;;  %v573_v62 = vpop.f32.mrb[7].mxu0  ;;  %v637_v63 = vpop.f32.mrb[7].mxu1 }
 0x106   : > { %1374 = vpow2.f32 %v1207_v48  ;;  %v1194_v0 = vmul.f32 -1.442695, %v791_v55  ;;  %v1210_v1 = vmul.f32 -1.442695, %v807_v56  ;;  %v810_v29 = vadd.f32 %v1287_v58, %v1601_v24 }
 0x107   : > { %1376 = vpow2.f32 %v1196_v59  ;;  %v1197_v2 = vmul.f32 -1.442695, %v794_v61  ;;  %v792_v32 = vadd.f32 %v1601_v24, %v573_v62  ;;  %v808_v36 = vadd.f32 %v1601_v24, %v637_v63 }
 0x108   : > { %1378 = vpow2.f32 %v1212_v60  ;;  %v1213_v46 = vmul.f32 -1.442695, %v810_v29 }
 0x109   : > { %v1361_v3 = vpop.eup %1360  ;;  %1380 = vpow2.f32 %v1194_v0  ;;  %v1195_v52 = vmul.f32 -1.442695, %v792_v32  ;;  %v1211_v56 = vmul.f32 -1.442695, %v808_v36 }
 0x10a   : > { %v1363_v4 = vpop.eup %1362  ;;  %v917_v5 = vadd.f32 1.0, %v1361_v3  ;;  %1382 = vpow2.f32 %v1210_v1  ;;  %v1274_v6 = vpop.f32.mrb[8].mxu0 }
 0x10b   : > { %v1290_v7 = vpop.f32.mrb[8].mxu1  ;;  %v1365_v8 = vpop.eup %1364  ;;  %v933_v9 = vadd.f32 1.0, %v1363_v4  ;;  %1384 = vpow2.f32 %v1197_v2  ;;  %v797_v41 = vadd.f32 %v1274_v6, %v1601_v24 }
 0x10c   : > { %v586_v10 = vpop.f32.mrb[9].mxu0  ;;  %v650_v11 = vpop.f32.mrb[9].mxu1  ;;  %1386 = vrcp.f32 %v917_v5  ;;  %v915_v13 = vadd.f32 1.0, %v1365_v8  ;;  %v813_v47 = vadd.f32 %v1290_v7, %v1601_v24 }
 0x10d   : > { %v1367_v12 = vpop.eup %1366  ;;  %v1275_v14 = vpop.f32.mrb[10].mxu0  ;;  %1388 = vrcp.f32 %v933_v9  ;;  %v795_v53 = vadd.f32 %v1601_v24, %v586_v10  ;;  %v811_v57 = vadd.f32 %v1601_v24, %v650_v11  ;;  %v1200_v59 = vmul.f32 -1.442695, %v797_v41 }
 0x10e   : > { %v1616_v15 = vpop.f32.mrb[10].mxu1  ;;  %v1369_v16 = vpop.eup %1368  ;;  %v931_v17 = vadd.f32 1.0, %v1367_v12  ;;  %1390 = vrcp.f32 %v915_v13  ;;  %v798_v60 = vadd.f32 %v1275_v14, %v1601_v24  ;;  %v1216_v62 = vmul.f32 -1.442695, %v813_v47 }
 0x10f   : > { %v1618_v18 = vpop.f32.mrb[11].mxu0  ;;  %v1371_v19 = vpop.eup %1370  ;;  %v918_v20 = vadd.f32 1.0, %v1369_v16  ;;  %v814_v63 = vadd.f32 %v1616_v15, %v1601_v24  ;;  %v1198_v1 = vmul.f32 -1.442695, %v795_v53  ;;  %v1214_v4 = vmul.f32 -1.442695, %v811_v57 }
 0x110   : > { %v1620_v21 = vpop.f32.mrb[11].mxu1  ;;  %v1373_v22 = vpop.eup %1372  ;;  %1392 = vrcp.f32 %v931_v17  ;;  %v934_v23 = vadd.f32 1.0, %v1371_v19  ;;  %v796_v2 = vadd.f32 %v1601_v24, %v1618_v18  ;;  %v1201_v7 = vmul.f32 -1.442695, %v798_v60 }
 0x111   : > { %v1375_v25 = vpop.eup %1374  ;;  %1394 = vrcp.f32 %v918_v20  ;;  %v916_v26 = vadd.f32 1.0, %v1373_v22  ;;  %v812_v5 = vadd.f32 %v1601_v24, %v1620_v21  ;;  %v1217_v10 = vmul.f32 -1.442695, %v814_v63 }
 0x112   : > { %v1377_v27 = vpop.eup %1376  ;;  %1396 = vrcp.f32 %v934_v23  ;;  %v932_v28 = vadd.f32 1.0, %v1375_v25  ;;  %v1278_v33 = vpop.f32.mrb[12].mxu0  ;;  %v1199_v13 = vmul.f32 -1.442695, %v796_v2 }
 0x113   : > { %v1379_v30 = vpop.eup %1378  ;;  %1398 = vrcp.f32 %v916_v26  ;;  %v921_v31 = vadd.f32 1.0, %v1377_v27  ;;  %v1294_v37 = vpop.f32.mrb[12].mxu1  ;;  %v801_v8 = vadd.f32 %v1278_v33, %v1601_v24  ;;  %v1215_v15 = vmul.f32 -1.442695, %v812_v5 }
 0x114   : > { %v1381_v34 = vpop.eup %1380  ;;  %1400 = vrcp.f32 %v932_v28  ;;  %v937_v35 = vadd.f32 1.0, %v1379_v30  ;;  %v1626_v38 = vpop.f32.mrb[13].mxu0  ;;  %v817_v11 = vadd.f32 %v1294_v37, %v1601_v24 }
 0x115   : > { %v1383_v39 = vpop.eup %1382  ;;  %1402 = vrcp.f32 %v921_v31  ;;  %v919_v40 = vadd.f32 1.0, %v1381_v34  ;;  %v1634_v42 = vpop.f32.mrb[13].mxu1  ;;  %v1204_v17 = vmul.f32 -1.442695, %v801_v8 }
 0x116   : > { %v1636_v43 = vpop.f32.mrb[14].mxu0  ;;  %v1385_v44 = vpop.eup %1384  ;;  %1404 = vrcp.f32 %v937_v35  ;;  %v935_v45 = vadd.f32 1.0, %v1383_v39  ;;  %v1220_v19 = vmul.f32 -1.442695, %v817_v11 }
 0x117   : > { %v1639_v48 = vpop.f32.mrb[14].mxu1  ;;  %v1641_v49 = vpop.f32.mrb[15].mxu0  ;;  %1406 = vrcp.f32 %v919_v40  ;;  %v922_v51 = vadd.f32 1.0, %v1385_v44  ;;  %v799_v40 = vadd.f32 %v1601_v24, %v1626_v38 }
 0x118   : > { %v1387_v50 = vpop.eup %1386  ;;  %v1644_v54 = vpop.f32.mrb[15].mxu1  ;;  %1408 = vrcp.f32 %v935_v45  ;;  %v815_v45 = vadd.f32 %v1601_v24, %v1634_v42  ;;  %v818_v53 = vadd.f32 %v1639_v48, %v1601_v24  ;;  %v800_v42 = vadd.f32 %v1601_v24, %v1641_v49 }
 0x119   : > { %v1389_v55 = vpop.eup %1388  ;;  %1013 = vst [vmem:[%s1631_s18 + $0x10] sm:$0xff] %v1387_v50  ;;  %1410 = vrcp.f32 %v922_v51  ;;  %v802_v50 = vadd.f32 %v1636_v43, %v1601_v24 }
 0x11a   : > { %v1391_v58 = vpop.eup %1390  ;;  %1029 = vst [vmem:[%s1631_s18 + $0x90] sm:$0xff] %v1389_v55  ;;  %1412 = vpow2.f32 %v1213_v46  ;;  %v1218_v43 = vmul.f32 -1.442695, %v815_v45  ;;  %v1203_v63 = vmul.f32 -1.442695, %v800_v42 }
 0x11b   : > { %v1393_v61 = vpop.eup %1392  ;;  %1011 = vst [vmem:[%s1631_s18] sm:$0xff] %v1391_v58  ;;  %1414 = vpow2.f32 %v1195_v52  ;;  %v1205_v48 = vmul.f32 -1.442695, %v802_v50 }
 0x11c   : > { %v1395_v0 = vpop.eup %1394  ;;  %1027 = vst [vmem:[%s1631_s18 + $0x80] sm:$0xff] %v1393_v61  ;;  %1416 = vpow2.f32 %v1211_v56  ;;  %v1202_v56 = vmul.f32 -1.442695, %v799_v40 }
 0x11d   : > { %v1397_v3 = vpop.eup %1396  ;;  %1014 = vst [vmem:[%s1631_s18 + $0x18] sm:$0xff] %v1395_v0  ;;  %1418 = vpow2.f32 %v1200_v59  ;;  %v816_v59 = vadd.f32 %v1601_v24, %v1644_v54 }
 0x11e   : > { %v1399_v6 = vpop.eup %1398  ;;  %1030 = vst [vmem:[%s1631_s18 + $0x98] sm:$0xff] %v1397_v3  ;;  %1420 = vpow2.f32 %v1216_v62  ;;  %v1221_v62 = vmul.f32 -1.442695, %v818_v53 }
 0x11f   : > { %v1401_v9 = vpop.eup %1400  ;;  %1012 = vst [vmem:[%s1631_s18 + $0x8] sm:$0xff] %v1399_v6  ;;  %1422 = vpow2.f32 %v1198_v1  ;;  %v1219_v24 = vmul.f32 -1.442695, %v816_v59 }
 0x120   : > { %v1403_v12 = vpop.eup %1402  ;;  %1028 = vst [vmem:[%s1631_s18 + $0x88] sm:$0xff] %v1401_v9  ;;  %1424 = vpow2.f32 %v1214_v4 }
 0x121   : > { %v1405_v14 = vpop.eup %1404  ;;  %1017 = vst [vmem:[%s1631_s18 + $0x30] sm:$0xff] %v1403_v12  ;;  %1426 = vpow2.f32 %v1201_v7 }
 0x122   : > { %v1407_v16 = vpop.eup %1406  ;;  %1033 = vst [vmem:[%s1631_s18 + $0xb0] sm:$0xff] %v1405_v14  ;;  %1428 = vpow2.f32 %v1217_v10 }
 0x123   : > { %v1409_v18 = vpop.eup %1408  ;;  %1015 = vst [vmem:[%s1631_s18 + $0x20] sm:$0xff] %v1407_v16  ;;  %1430 = vpow2.f32 %v1199_v13 }
 0x124   : > { %v1411_v20 = vpop.eup %1410  ;;  %1031 = vst [vmem:[%s1631_s18 + $0xa0] sm:$0xff] %v1409_v18  ;;  %1432 = vpow2.f32 %v1215_v15 }
 0x125   : > { %v1413_v21 = vpop.eup %1412  ;;  %1018 = vst [vmem:[%s1631_s18 + $0x38] sm:$0xff] %v1411_v20  ;;  %1434 = vpow2.f32 %v1204_v17 }
 0x126   : > { %v1415_v22 = vpop.eup %1414  ;;  %v938_v23 = vadd.f32 1.0, %v1413_v21  ;;  %1436 = vpow2.f32 %v1220_v19 }
 0x127   : > { %v1417_v25 = vpop.eup %1416  ;;  %v920_v26 = vadd.f32 1.0, %v1415_v22 }
 0x128   : > { %v1419_v27 = vpop.eup %1418  ;;  %1438 = vrcp.f32 %v938_v23  ;;  %v936_v28 = vadd.f32 1.0, %v1417_v25 }
 0x129   : > { %v1421_v29 = vpop.eup %1420  ;;  %1440 = vrcp.f32 %v920_v26  ;;  %v925_v30 = vadd.f32 1.0, %v1419_v27 }
 0x12a   : > { %v1423_v31 = vpop.eup %1422  ;;  %1442 = vrcp.f32 %v936_v28  ;;  %v941_v32 = vadd.f32 1.0, %v1421_v29 }
 0x12b   : > { %v1425_v33 = vpop.eup %1424  ;;  %1444 = vrcp.f32 %v925_v30  ;;  %v923_v34 = vadd.f32 1.0, %v1423_v31 }
 0x12c   : > { %v1427_v35 = vpop.eup %1426  ;;  %1446 = vrcp.f32 %v941_v32  ;;  %v939_v36 = vadd.f32 1.0, %v1425_v33 }
 0x12d   : > { %v1429_v37 = vpop.eup %1428  ;;  %1448 = vrcp.f32 %v923_v34  ;;  %v926_v39 = vadd.f32 1.0, %v1427_v35 }
 0x12e   : > { %v1431_v41 = vpop.eup %1430  ;;  %1450 = vrcp.f32 %v939_v36  ;;  %v942_v44 = vadd.f32 1.0, %v1429_v37 }
 0x12f   : > { %v1433_v46 = vpop.eup %1432  ;;  %1452 = vrcp.f32 %v926_v39  ;;  %v924_v47 = vadd.f32 1.0, %v1431_v41 }
 0x130   : > { %v1435_v51 = vpop.eup %1434  ;;  %1454 = vrcp.f32 %v942_v44  ;;  %v940_v52 = vadd.f32 1.0, %v1433_v46 }
 0x131   : > { %v1437_v38 = vpop.eup %1436  ;;  %1456 = vrcp.f32 %v924_v47  ;;  %v929_v55 = vadd.f32 1.0, %v1435_v51 }
 0x132   : > { %v1439_v57 = vpop.eup %1438  ;;  %1458 = vrcp.f32 %v940_v52  ;;  %v945_v58 = vadd.f32 1.0, %v1437_v38 }
 0x133   : > { %v1441_v60 = vpop.eup %1440  ;;  %1034 = vst [vmem:[%s1631_s18 + $0xb8] sm:$0xff] %v1439_v57  ;;  %1460 = vrcp.f32 %v929_v55 }
 0x134   : > { %v1443_v61 = vpop.eup %1442  ;;  %1016 = vst [vmem:[%s1631_s18 + $0x28] sm:$0xff] %v1441_v60  ;;  %1462 = vrcp.f32 %v945_v58 }
 0x135   : > { %v1445_v49 = vpop.eup %1444  ;;  %1032 = vst [vmem:[%s1631_s18 + $0xa8] sm:$0xff] %v1443_v61  ;;  %1464 = vpow2.f32 %v1202_v56 }
 0x136   : > { %v1447_v0 = vpop.eup %1446  ;;  %1021 = vst [vmem:[%s1631_s18 + $0x50] sm:$0xff] %v1445_v49  ;;  %1466 = vpow2.f32 %v1218_v43 }
 0x137   : > { %v1449_v54 = vpop.eup %1448  ;;  %1037 = vst [vmem:[%s1631_s18 + $0xd0] sm:$0xff] %v1447_v0  ;;  %1468 = vpow2.f32 %v1205_v48 }
 0x138   : > { %v1451_v1 = vpop.eup %1450  ;;  %1019 = vst [vmem:[%s1631_s18 + $0x40] sm:$0xff] %v1449_v54  ;;  %1470 = vpow2.f32 %v1221_v62 }
 0x139   : > { %v1453_v2 = vpop.eup %1452  ;;  %1035 = vst [vmem:[%s1631_s18 + $0xc0] sm:$0xff] %v1451_v1  ;;  %1472 = vpow2.f32 %v1203_v63 }
 0x13a   : > { %v1455_v3 = vpop.eup %1454  ;;  %1022 = vst [vmem:[%s1631_s18 + $0x58] sm:$0xff] %v1453_v2  ;;  %1474 = vpow2.f32 %v1219_v24 }
 0x13b   : > { %v1457_v4 = vpop.eup %1456  ;;  %1038 = vst [vmem:[%s1631_s18 + $0xd8] sm:$0xff] %v1455_v3 }
 0x13c   : > { %v1459_v5 = vpop.eup %1458  ;;  %1020 = vst [vmem:[%s1631_s18 + $0x48] sm:$0xff] %v1457_v4 }
 0x13d   : > { %v1461_v6 = vpop.eup %1460  ;;  %1036 = vst [vmem:[%s1631_s18 + $0xc8] sm:$0xff] %v1459_v5 }
 0x13e   : > { %v1463_v7 = vpop.eup %1462  ;;  %1025 = vst [vmem:[%s1631_s18 + $0x70] sm:$0xff] %v1461_v6 }
 0x13f   : > { %v1465_v8 = vpop.eup %1464  ;;  %1041 = vst [vmem:[%s1631_s18 + $0xf0] sm:$0xff] %v1463_v7 }
 0x140   : > { %v1467_v9 = vpop.eup %1466  ;;  %v927_v10 = vadd.f32 1.0, %v1465_v8 }
 0x141   : > { %v1469_v11 = vpop.eup %1468  ;;  %v943_v12 = vadd.f32 1.0, %v1467_v9 }
 0x142   : > { %v1471_v13 = vpop.eup %1470  ;;  %1476 = vrcp.f32 %v927_v10  ;;  %v930_v14 = vadd.f32 1.0, %v1469_v11 }
 0x143   : > { %v1473_v15 = vpop.eup %1472  ;;  %1478 = vrcp.f32 %v943_v12  ;;  %v946_v16 = vadd.f32 1.0, %v1471_v13 }
 0x144   : > { %v1475_v17 = vpop.eup %1474  ;;  %1480 = vrcp.f32 %v930_v14  ;;  %v928_v18 = vadd.f32 1.0, %v1473_v15 }
 0x145   : > { %1482 = vrcp.f32 %v946_v16  ;;  %v944_v19 = vadd.f32 1.0, %v1475_v17 }
 0x146   : > { %1484 = vrcp.f32 %v928_v18 }
 0x147   : > { %1486 = vrcp.f32 %v944_v19 }
 0x14c   : > { %v1477_v20 = vpop.eup %1476 }
 0x14d   : > { %v1479_v21 = vpop.eup %1478  ;;  %1023 = vst [vmem:[%s1631_s18 + $0x60] sm:$0xff] %v1477_v20 }
 0x14e   : > { %v1481_v22 = vpop.eup %1480  ;;  %1039 = vst [vmem:[%s1631_s18 + $0xe0] sm:$0xff] %v1479_v21 }
 0x14f   : > { %v1483_v23 = vpop.eup %1482  ;;  %1026 = vst [vmem:[%s1631_s18 + $0x78] sm:$0xff] %v1481_v22 }
 0x150   : > { %v1485_v25 = vpop.eup %1484  ;;  %1042 = vst [vmem:[%s1631_s18 + $0xf8] sm:$0xff] %v1483_v23 }
 0x151   : > { %v1487_v26 = vpop.eup %1486  ;;  %1024 = vst [vmem:[%s1631_s18 + $0x68] sm:$0xff] %v1485_v25 }
 0x152   : > { %1040 = vst [vmem:[%s1631_s18 + $0xe8] sm:$0xff] %v1487_v26 }
 0x153 PF: > { %s13_s14 = sadd.s32 1, %s1510_s14   ;;  %s1713_s12 = smov %s1506_s13 }
 0x154   : > { %p10_p5 = scmp.ge.s32.totalorder %s13_s14, 4   ;;  %s1714_s13 = smov %s1716_s15 }
 0x156   :  { %12 = sbr.rel (!%p10_p5) target bundleno = 2 (0x2), region = 76 }

</bundles_post_ra>
